<compile_context>
chip_gen: v7x
topology: tpu7x:2x2x1
jax: 0.10.0
libtpu: 0.0.40
codegen_flags: <defaults>
</compile_context>

<pallas_src>
import functools

import jax
import jax.numpy as jnp
from jax.experimental import pallas as pl
from jax.experimental.pallas import tpu as pltpu

_LANE = 128
_VMEM_LIMIT = 48 * 1024 * 1024  # comfortably inside v7x's 64 MiB physical VMEM


def _round_up(x, m):
    return (x + m - 1) // m * m


def _largest_divisor_leq(n, cap):
    cap = max(1, min(n, cap))
    for d in range(cap, 0, -1):
        if n % d == 0:
            return d
    return 1


def _apply_act(y, act):
    if act == 'silu':
        # keep the divide on the EUP slot
        return y * pl.reciprocal(1.0 + jnp.exp(-y), approx=True)
    if act == 'relu':
        return jnp.maximum(y, 0.0)
    if act == 'lrelu':
        return jnp.where(y > 0, y, 0.1 * y)
    if act is None:
        return y
    raise AttributeError('Unsupported act type: {}'.format(act))


def _conv_stats_kernel(x_ref, w_ref, y_ref, st_ref, *, ksize, stride, tile_h,
                       wo, cp, act, fuse_act):
    """Pass 1: k*k-tap conv matmuls for one (batch, row-tile) + BN partial sums.

    x_ref : (1, Hp, Wp, Cin)      padded NHWC image of this batch element (bf16)
    w_ref : (k*k, Cin, Cp)        conv weight, tap-major, Cout zero-padded (bf16)
    y_ref : (1, tile_h*Wo, Cp)    conv output rows of this tile (f32)
    st_ref: (1, 1, 8, Cp)         row 0: per-channel sum, row 1: sum of squares
    """
    t = pl.program_id(1)
    cin = x_ref.shape[3]
    tile_m = tile_h * wo
    row0 = pl.multiple_of(t * (tile_h * stride), tile_h * stride)

    acc = jnp.zeros((tile_m, cp), dtype=jnp.float32)
    for kh in range(ksize):
        for kw in range(ksize):
            if stride == 1:
                xwin = x_ref[0, pl.ds(row0 + kh, tile_h), pl.ds(kw, wo), :]
            else:
                xwin = x_ref[0, pl.ds(row0 + kh, tile_h, stride),
                             pl.ds(kw, wo, stride), :]
            a2d = xwin.reshape(tile_m, cin)
            acc += jnp.dot(a2d, w_ref[kh * ksize + kw],
                           preferred_element_type=jnp.float32)

    out = _apply_act(acc, act) if fuse_act else acc
    y_ref[0] = out.astype(y_ref.dtype)

    # Single-pass partial statistics (var = E[x^2]-E[x]^2 later), f32 accumulation.
    s = jnp.sum(acc, axis=0, keepdims=True)
    sq = jnp.sum(acc * acc, axis=0, keepdims=True)
    st_ref[0, 0] = jnp.concatenate(
        [s, sq, jnp.zeros((6, cp), jnp.float32)], axis=0)


def _bn_act_kernel(y_ref, scale_ref, shift_ref, o_ref, *, act, with_norm):
    """Pass 2: folded BN (single FMA per element) followed by the activation."""
    y = y_ref[...]
    if with_norm:
        y = y * scale_ref[...] + shift_ref[...]
    o_ref[...] = _apply_act(y, act).astype(o_ref.dtype)


def base_conv_forward(x_nchw, conv_w, bn_gamma, bn_beta, *, ksize, stride=1,
                      groups=1, act='silu', norm='bn', eps=1e-5):
    """Pallas implementation of BaseConv.forward (conv bias=False)."""
    assert groups == 1  # TODO(synk): grouped conv (groups > 1) not implemented
    if norm not in (None, 'bn'):
        raise NotImplementedError(norm)  # TODO(synk): GroupNorm ('gn') not implemented
    if act not in (None, 'silu', 'relu', 'lrelu'):
        raise AttributeError('Unsupported act type: {}'.format(act))

    n, cin, h, w = x_nchw.shape
    cout = conv_w.shape[0]
    pad = (ksize - 1) // 2
    ho = (h + 2 * pad - ksize) // stride + 1
    wo = (w + 2 * pad - ksize) // stride + 1
    m = n * ho * wo
    cp = _round_up(cout, _LANE)  # lane-dense channel dim
    with_norm = norm is not None

    # ---- glue (layout only): NCHW -> padded NHWC bf16, weight repack + pad ----
    x_nhwc = jnp.transpose(x_nchw, (0, 2, 3, 1))
    xp = jnp.pad(x_nhwc, ((0, 0), (pad, pad), (pad, pad), (0, 0)))
    xp = xp.astype(jnp.bfloat16)
    hp, wp = int(xp.shape[1]), int(xp.shape[2])
    wm = jnp.transpose(conv_w, (2, 3, 1, 0))                       # (kh, kw, Cin, Cout)
    wm = jnp.pad(wm, ((0, 0), (0, 0), (0, 0), (0, cp - cout)))
    wm = wm.reshape(ksize * ksize, cin, cp).astype(jnp.bfloat16)

    # Output-row tile: divides Ho exactly (so BN partial sums stay exact), targets
    # ~1024 matmul rows per tile and keeps double-buffered blocks << 48 MiB VMEM.
    tile_h = _largest_divisor_leq(ho, max(1, 1024 // max(1, wo)))
    n_t = ho // tile_h
    tile_m = tile_h * wo
    # TODO(synk): for very large Hp*Wp*Cin the per-image x block should additionally
    # be halo-tiled along H rather than keeping the whole padded image in VMEM.

    fuse_act = not with_norm  # no norm -> apply activation directly in pass 1
    kernel1 = functools.partial(
        _conv_stats_kernel, ksize=ksize, stride=stride, tile_h=tile_h, wo=wo,
        cp=cp, act=act, fuse_act=fuse_act)
    bytes1 = (n * hp * wp * cin * 2 + ksize * ksize * cin * cp * 2
              + m * cp * 4 + n * n_t * 8 * cp * 4)
    conv3d, stats = pl.pallas_call(
        kernel1,
        out_shape=(jax.ShapeDtypeStruct((n * n_t, tile_m, cp), jnp.float32),
                   jax.ShapeDtypeStruct((n, n_t, 8, cp), jnp.float32)),
        grid=(n, n_t),
        in_specs=[
            pl.BlockSpec((1, hp, wp, cin), lambda b, t: (b, 0, 0, 0)),
            pl.BlockSpec((ksize * ksize, cin, cp), lambda b, t: (0, 0, 0)),
        ],
        out_specs=(
            pl.BlockSpec((1, tile_m, cp), lambda b, t: (b * n_t + t, 0, 0)),
            pl.BlockSpec((1, 1, 8, cp), lambda b, t: (b, t, 0, 0)),
        ),
        compiler_params=pltpu.CompilerParams(
            dimension_semantics=("parallel", "parallel"),
            vmem_limit_bytes=_VMEM_LIMIT),
        cost_estimate=pl.CostEstimate(
            flops=2 * m * ksize * ksize * cin * cp, transcendentals=0,
            bytes_accessed=bytes1),
    )(xp, wm)

    conv2d = conv3d.reshape(m, cp)  # contiguous; row order == flattened (N, Ho, Wo)

    if not with_norm:
        out2d = conv2d  # activation already fused in pass 1
    else:
        # Tiny O(C) reduction + BN fold (glue): one FMA per element in pass 2.
        ssum = jnp.sum(stats[:, :, 0, :], axis=(0, 1))
        ssq = jnp.sum(stats[:, :, 1, :], axis=(0, 1))
        mean = ssum / m
        var = jnp.maximum(ssq / m - mean * mean, 0.0)   # biased (train-mode BN)
        gam = jnp.pad(jnp.asarray(bn_gamma, jnp.float32).reshape(-1),
                      (0, cp - cout), constant_values=1.0)
        bet = jnp.pad(jnp.asarray(bn_beta, jnp.float32).reshape(-1),
                      (0, cp - cout))
        scale1 = gam * jax.lax.rsqrt(var + eps)
        shift1 = bet - mean * scale1
        scale = scale1.reshape(1, cp)
        shift = shift1.reshape(1, cp)

        tile_m2 = min(m, 2048)
        kernel2 = functools.partial(_bn_act_kernel, act=act, with_norm=True)
        out2d = pl.pallas_call(
            kernel2,
            out_shape=jax.ShapeDtypeStruct((m, cp), jnp.float32),
            grid=(pl.cdiv(m, tile_m2),),
            in_specs=[
                pl.BlockSpec((tile_m2, cp), lambda i: (i, 0)),
                pl.BlockSpec((1, cp), lambda i: (0, 0)),
                pl.BlockSpec((1, cp), lambda i: (0, 0)),
            ],
            out_specs=pl.BlockSpec((tile_m2, cp), lambda i: (i, 0)),
            compiler_params=pltpu.CompilerParams(
                dimension_semantics=("parallel",),
                vmem_limit_bytes=_VMEM_LIMIT),
            cost_estimate=pl.CostEstimate(
                flops=4 * m * cp, transcendentals=m * cp,
                bytes_accessed=2 * m * cp * 4),
        )(conv2d, scale, shift)

    y = out2d[:, :cout].reshape(n, ho, wo, cout)
    return jnp.transpose(y, (0, 3, 1, 2)).astype(jnp.float32)   # back to NCHW


def _reference(x, conv_w, gamma, beta, ksize, stride, eps):
    """Pure-JAX reference of the same forward (conv + train-mode BN + SiLU)."""
    pad = (ksize - 1) // 2
    conv = jax.lax.conv_general_dilated(
        x, conv_w, window_strides=(stride, stride),
        padding=((pad, pad), (pad, pad)),
        dimension_numbers=('NCHW', 'OIHW', 'NCHW'))
    mean = jnp.mean(conv, axis=(0, 2, 3), keepdims=True)
    var = jnp.mean(jnp.square(conv - mean), axis=(0, 2, 3), keepdims=True)
    y = (conv - mean) * jax.lax.rsqrt(var + eps)
    y = y * gamma.reshape(1, -1, 1, 1) + beta.reshape(1, -1, 1, 1)
    return y * (1.0 / (1.0 + jnp.exp(-y)))


if __name__ == "__main__":
    # BaseConv(in_channels=4, out_channels=8, ksize=3, stride=1, act='silu', norm='bn')
    n, cin, h, w = 2, 4, 16, 16
    cout, ksize, stride = 8, 3, 1

    key = jax.random.PRNGKey(0)
    kx, kw = jax.random.split(key)
    x = jax.random.normal(kx, (n, cin, h, w), jnp.float32)
    # Conv2d default init: kaiming-uniform-ish bound = 1/sqrt(fan_in), bias=False
    fan_in = cin * ksize * ksize
    bound = 1.0 / (fan_in ** 0.5)
    conv_w = jax.random.uniform(kw, (cout, cin, ksize, ksize), jnp.float32,
                                minval=-bound, maxval=bound)
    # BatchNorm2d default init: weight=1, bias=0 (running stats unused in train fwd)
    gamma = jnp.ones((cout,), jnp.float32)
    beta = jnp.zeros((cout,), jnp.float32)

    out = base_conv_forward(x, conv_w, gamma, beta, ksize=ksize, stride=stride,
                            groups=1, act='silu', norm='bn')
    out = jax.block_until_ready(out)

    assert out.shape == (n, cout, h, w), out.shape
    ref = _reference(x, conv_w, gamma, beta, ksize, stride, 1e-5)
    max_err = float(jnp.max(jnp.abs(out - ref)))
    assert jnp.allclose(out, ref, atol=2e-2, rtol=2e-2), max_err

    print("KERNEL_OK")
</pallas_src>

<mosaic_0001>
module attributes {stable_mosaic.version = 11 : i64} {
  func.func @_conv_stats_kernel(%arg0: i32, %arg1: i32, %arg2: memref<1x18x18x4xbf16, #tpu.memory_space<vmem>>, %arg3: memref<9x4x128xbf16, #tpu.memory_space<vmem>>, %arg4: memref<1x256x128xf32, #tpu.memory_space<vmem>>, %arg5: memref<1x1x8x128xf32, #tpu.memory_space<vmem>>) attributes {dimension_semantics = [#tpu.dimension_semantics<parallel>, #tpu.dimension_semantics<parallel>], iteration_bounds = array<i64: 2, 1>, scalar_prefetch = 0 : i64, scratch_operands = 0 : i64, tpu.core_type = #tpu.core_type<tc>, window_params = [{transform_indices = @transform_0, window_bounds = array<i64: 1, 18, 18, 4>}, {pipeline_mode = #tpu.pipeline_mode<synchronous>, transform_indices = @transform_1, window_bounds = array<i64: 9, 4, 128>}, {transform_indices = @transform_2, window_bounds = array<i64: 1, 256, 128>}, {transform_indices = @transform_3, window_bounds = array<i64: 1, 1, 8, 128>}]} {
    %c16_i32 = arith.constant 16 : i32
    %0 = arith.muli %arg1, %c16_i32 : i32
    %1 = tpu.assume_multiple %0, 16 : i32
    %cst = arith.constant 0.000000e+00 : f32
    %2 = vector.broadcast %cst : f32 to vector<256x128xf32>
    %c0_i32 = arith.constant 0 : i32
    %3 = arith.addi %1, %c0_i32 : i32
    %c0 = arith.constant 0 : index
    %4 = arith.index_cast %3 : i32 to index
    %c0_0 = arith.constant 0 : index
    %c0_1 = arith.constant 0 : index
    %5 = vector.load %arg2[%c0, %4, %c0_0, %c0_1] : memref<1x18x18x4xbf16, #tpu.memory_space<vmem>>, vector<1x16x16x4xbf16>
    %6 = vector.shape_cast %5 : vector<1x16x16x4xbf16> to vector<16x16x4xbf16>
    %7 = vector.shape_cast %6 : vector<16x16x4xbf16> to vector<256x4xbf16>
    %c0_2 = arith.constant 0 : index
    %c0_3 = arith.constant 0 : index
    %c0_4 = arith.constant 0 : index
    %8 = vector.load %arg3[%c0_2, %c0_3, %c0_4] : memref<9x4x128xbf16, #tpu.memory_space<vmem>>, vector<1x4x128xbf16>
    %9 = vector.shape_cast %8 : vector<1x4x128xbf16> to vector<4x128xbf16>
    %cst_5 = arith.constant dense<0.000000e+00> : vector<256x128xf32>
    %10 = tpu.matmul %7, %9, %cst_5 {dimension_numbers = #tpu.dot_dimension_numbers<[1], [0], [0], [1], [0, 0, 1, 1], [], []>} : vector<256x4xbf16>, vector<4x128xbf16>, vector<256x128xf32> -> vector<256x128xf32>
    %11 = arith.addf %2, %10 : vector<256x128xf32>
    %c0_i32_6 = arith.constant 0 : i32
    %12 = arith.addi %1, %c0_i32_6 : i32
    %c0_7 = arith.constant 0 : index
    %13 = arith.index_cast %12 : i32 to index
    %c1 = arith.constant 1 : index
    %c0_8 = arith.constant 0 : index
    %14 = vector.load %arg2[%c0_7, %13, %c1, %c0_8] : memref<1x18x18x4xbf16, #tpu.memory_space<vmem>>, vector<1x16x16x4xbf16>
    %15 = vector.shape_cast %14 : vector<1x16x16x4xbf16> to vector<16x16x4xbf16>
    %16 = vector.shape_cast %15 : vector<16x16x4xbf16> to vector<256x4xbf16>
    %c1_9 = arith.constant 1 : index
    %c0_10 = arith.constant 0 : index
    %c0_11 = arith.constant 0 : index
    %17 = vector.load %arg3[%c1_9, %c0_10, %c0_11] : memref<9x4x128xbf16, #tpu.memory_space<vmem>>, vector<1x4x128xbf16>
    %18 = vector.shape_cast %17 : vector<1x4x128xbf16> to vector<4x128xbf16>
    %cst_12 = arith.constant dense<0.000000e+00> : vector<256x128xf32>
    %19 = tpu.matmul %16, %18, %cst_12 {dimension_numbers = #tpu.dot_dimension_numbers<[1], [0], [0], [1], [0, 0, 1, 1], [], []>} : vector<256x4xbf16>, vector<4x128xbf16>, vector<256x128xf32> -> vector<256x128xf32>
    %20 = arith.addf %11, %19 : vector<256x128xf32>
    %c0_i32_13 = arith.constant 0 : i32
    %21 = arith.addi %1, %c0_i32_13 : i32
    %c0_14 = arith.constant 0 : index
    %22 = arith.index_cast %21 : i32 to index
    %c2 = arith.constant 2 : index
    %c0_15 = arith.constant 0 : index
    %23 = vector.load %arg2[%c0_14, %22, %c2, %c0_15] : memref<1x18x18x4xbf16, #tpu.memory_space<vmem>>, vector<1x16x16x4xbf16>
    %24 = vector.shape_cast %23 : vector<1x16x16x4xbf16> to vector<16x16x4xbf16>
    %25 = vector.shape_cast %24 : vector<16x16x4xbf16> to vector<256x4xbf16>
    %c2_16 = arith.constant 2 : index
    %c0_17 = arith.constant 0 : index
    %c0_18 = arith.constant 0 : index
    %26 = vector.load %arg3[%c2_16, %c0_17, %c0_18] : memref<9x4x128xbf16, #tpu.memory_space<vmem>>, vector<1x4x128xbf16>
    %27 = vector.shape_cast %26 : vector<1x4x128xbf16> to vector<4x128xbf16>
    %cst_19 = arith.constant dense<0.000000e+00> : vector<256x128xf32>
    %28 = tpu.matmul %25, %27, %cst_19 {dimension_numbers = #tpu.dot_dimension_numbers<[1], [0], [0], [1], [0, 0, 1, 1], [], []>} : vector<256x4xbf16>, vector<4x128xbf16>, vector<256x128xf32> -> vector<256x128xf32>
    %29 = arith.addf %20, %28 : vector<256x128xf32>
    %c1_i32 = arith.constant 1 : i32
    %30 = arith.addi %1, %c1_i32 : i32
    %c0_20 = arith.constant 0 : index
    %31 = arith.index_cast %30 : i32 to index
    %c0_21 = arith.constant 0 : index
    %c0_22 = arith.constant 0 : index
    %32 = vector.load %arg2[%c0_20, %31, %c0_21, %c0_22] : memref<1x18x18x4xbf16, #tpu.memory_space<vmem>>, vector<1x16x16x4xbf16>
    %33 = vector.shape_cast %32 : vector<1x16x16x4xbf16> to vector<16x16x4xbf16>
    %34 = vector.shape_cast %33 : vector<16x16x4xbf16> to vector<256x4xbf16>
    %c3 = arith.constant 3 : index
    %c0_23 = arith.constant 0 : index
    %c0_24 = arith.constant 0 : index
    %35 = vector.load %arg3[%c3, %c0_23, %c0_24] : memref<9x4x128xbf16, #tpu.memory_space<vmem>>, vector<1x4x128xbf16>
    %36 = vector.shape_cast %35 : vector<1x4x128xbf16> to vector<4x128xbf16>
    %cst_25 = arith.constant dense<0.000000e+00> : vector<256x128xf32>
    %37 = tpu.matmul %34, %36, %cst_25 {dimension_numbers = #tpu.dot_dimension_numbers<[1], [0], [0], [1], [0, 0, 1, 1], [], []>} : vector<256x4xbf16>, vector<4x128xbf16>, vector<256x128xf32> -> vector<256x128xf32>
    %38 = arith.addf %29, %37 : vector<256x128xf32>
    %c1_i32_26 = arith.constant 1 : i32
    %39 = arith.addi %1, %c1_i32_26 : i32
    %c0_27 = arith.constant 0 : index
    %40 = arith.index_cast %39 : i32 to index
    %c1_28 = arith.constant 1 : index
    %c0_29 = arith.constant 0 : index
    %41 = vector.load %arg2[%c0_27, %40, %c1_28, %c0_29] : memref<1x18x18x4xbf16, #tpu.memory_space<vmem>>, vector<1x16x16x4xbf16>
    %42 = vector.shape_cast %41 : vector<1x16x16x4xbf16> to vector<16x16x4xbf16>
    %43 = vector.shape_cast %42 : vector<16x16x4xbf16> to vector<256x4xbf16>
    %c4 = arith.constant 4 : index
    %c0_30 = arith.constant 0 : index
    %c0_31 = arith.constant 0 : index
    %44 = vector.load %arg3[%c4, %c0_30, %c0_31] : memref<9x4x128xbf16, #tpu.memory_space<vmem>>, vector<1x4x128xbf16>
    %45 = vector.shape_cast %44 : vector<1x4x128xbf16> to vector<4x128xbf16>
    %cst_32 = arith.constant dense<0.000000e+00> : vector<256x128xf32>
    %46 = tpu.matmul %43, %45, %cst_32 {dimension_numbers = #tpu.dot_dimension_numbers<[1], [0], [0], [1], [0, 0, 1, 1], [], []>} : vector<256x4xbf16>, vector<4x128xbf16>, vector<256x128xf32> -> vector<256x128xf32>
    %47 = arith.addf %38, %46 : vector<256x128xf32>
    %c1_i32_33 = arith.constant 1 : i32
    %48 = arith.addi %1, %c1_i32_33 : i32
    %c0_34 = arith.constant 0 : index
    %49 = arith.index_cast %48 : i32 to index
    %c2_35 = arith.constant 2 : index
    %c0_36 = arith.constant 0 : index
    %50 = vector.load %arg2[%c0_34, %49, %c2_35, %c0_36] : memref<1x18x18x4xbf16, #tpu.memory_space<vmem>>, vector<1x16x16x4xbf16>
    %51 = vector.shape_cast %50 : vector<1x16x16x4xbf16> to vector<16x16x4xbf16>
    %52 = vector.shape_cast %51 : vector<16x16x4xbf16> to vector<256x4xbf16>
    %c5 = arith.constant 5 : index
    %c0_37 = arith.constant 0 : index
    %c0_38 = arith.constant 0 : index
    %53 = vector.load %arg3[%c5, %c0_37, %c0_38] : memref<9x4x128xbf16, #tpu.memory_space<vmem>>, vector<1x4x128xbf16>
    %54 = vector.shape_cast %53 : vector<1x4x128xbf16> to vector<4x128xbf16>
    %cst_39 = arith.constant dense<0.000000e+00> : vector<256x128xf32>
    %55 = tpu.matmul %52, %54, %cst_39 {dimension_numbers = #tpu.dot_dimension_numbers<[1], [0], [0], [1], [0, 0, 1, 1], [], []>} : vector<256x4xbf16>, vector<4x128xbf16>, vector<256x128xf32> -> vector<256x128xf32>
    %56 = arith.addf %47, %55 : vector<256x128xf32>
    %c2_i32 = arith.constant 2 : i32
    %57 = arith.addi %1, %c2_i32 : i32
    %c0_40 = arith.constant 0 : index
    %58 = arith.index_cast %57 : i32 to index
    %c0_41 = arith.constant 0 : index
    %c0_42 = arith.constant 0 : index
    %59 = vector.load %arg2[%c0_40, %58, %c0_41, %c0_42] : memref<1x18x18x4xbf16, #tpu.memory_space<vmem>>, vector<1x16x16x4xbf16>
    %60 = vector.shape_cast %59 : vector<1x16x16x4xbf16> to vector<16x16x4xbf16>
    %61 = vector.shape_cast %60 : vector<16x16x4xbf16> to vector<256x4xbf16>
    %c6 = arith.constant 6 : index
    %c0_43 = arith.constant 0 : index
    %c0_44 = arith.constant 0 : index
    %62 = vector.load %arg3[%c6, %c0_43, %c0_44] : memref<9x4x128xbf16, #tpu.memory_space<vmem>>, vector<1x4x128xbf16>
    %63 = vector.shape_cast %62 : vector<1x4x128xbf16> to vector<4x128xbf16>
    %cst_45 = arith.constant dense<0.000000e+00> : vector<256x128xf32>
    %64 = tpu.matmul %61, %63, %cst_45 {dimension_numbers = #tpu.dot_dimension_numbers<[1], [0], [0], [1], [0, 0, 1, 1], [], []>} : vector<256x4xbf16>, vector<4x128xbf16>, vector<256x128xf32> -> vector<256x128xf32>
    %65 = arith.addf %56, %64 : vector<256x128xf32>
    %c2_i32_46 = arith.constant 2 : i32
    %66 = arith.addi %1, %c2_i32_46 : i32
    %c0_47 = arith.constant 0 : index
    %67 = arith.index_cast %66 : i32 to index
    %c1_48 = arith.constant 1 : index
    %c0_49 = arith.constant 0 : index
    %68 = vector.load %arg2[%c0_47, %67, %c1_48, %c0_49] : memref<1x18x18x4xbf16, #tpu.memory_space<vmem>>, vector<1x16x16x4xbf16>
    %69 = vector.shape_cast %68 : vector<1x16x16x4xbf16> to vector<16x16x4xbf16>
    %70 = vector.shape_cast %69 : vector<16x16x4xbf16> to vector<256x4xbf16>
    %c7 = arith.constant 7 : index
    %c0_50 = arith.constant 0 : index
    %c0_51 = arith.constant 0 : index
    %71 = vector.load %arg3[%c7, %c0_50, %c0_51] : memref<9x4x128xbf16, #tpu.memory_space<vmem>>, vector<1x4x128xbf16>
    %72 = vector.shape_cast %71 : vector<1x4x128xbf16> to vector<4x128xbf16>
    %cst_52 = arith.constant dense<0.000000e+00> : vector<256x128xf32>
    %73 = tpu.matmul %70, %72, %cst_52 {dimension_numbers = #tpu.dot_dimension_numbers<[1], [0], [0], [1], [0, 0, 1, 1], [], []>} : vector<256x4xbf16>, vector<4x128xbf16>, vector<256x128xf32> -> vector<256x128xf32>
    %74 = arith.addf %65, %73 : vector<256x128xf32>
    %c2_i32_53 = arith.constant 2 : i32
    %75 = arith.addi %1, %c2_i32_53 : i32
    %c0_54 = arith.constant 0 : index
    %76 = arith.index_cast %75 : i32 to index
    %c2_55 = arith.constant 2 : index
    %c0_56 = arith.constant 0 : index
    %77 = vector.load %arg2[%c0_54, %76, %c2_55, %c0_56] : memref<1x18x18x4xbf16, #tpu.memory_space<vmem>>, vector<1x16x16x4xbf16>
    %78 = vector.shape_cast %77 : vector<1x16x16x4xbf16> to vector<16x16x4xbf16>
    %79 = vector.shape_cast %78 : vector<16x16x4xbf16> to vector<256x4xbf16>
    %c8 = arith.constant 8 : index
    %c0_57 = arith.constant 0 : index
    %c0_58 = arith.constant 0 : index
    %80 = vector.load %arg3[%c8, %c0_57, %c0_58] : memref<9x4x128xbf16, #tpu.memory_space<vmem>>, vector<1x4x128xbf16>
    %81 = vector.shape_cast %80 : vector<1x4x128xbf16> to vector<4x128xbf16>
    %cst_59 = arith.constant dense<0.000000e+00> : vector<256x128xf32>
    %82 = tpu.matmul %79, %81, %cst_59 {dimension_numbers = #tpu.dot_dimension_numbers<[1], [0], [0], [1], [0, 0, 1, 1], [], []>} : vector<256x4xbf16>, vector<4x128xbf16>, vector<256x128xf32> -> vector<256x128xf32>
    %83 = arith.addf %74, %82 : vector<256x128xf32>
    %c0_60 = arith.constant 0 : index
    %c0_61 = arith.constant 0 : index
    %c0_62 = arith.constant 0 : index
    %84 = vector.load %arg4[%c0_60, %c0_61, %c0_62] : memref<1x256x128xf32, #tpu.memory_space<vmem>>, vector<1x256x128xf32>
    %85 = vector.shape_cast %84 : vector<1x256x128xf32> to vector<256x128xf32>
    %86 = vector.shape_cast %83 : vector<256x128xf32> to vector<1x256x128xf32>
    tpu.vector_store %arg4[%c0_60, %c0_61, %c0_62], %86 {strides = array<i32>} : memref<1x256x128xf32, #tpu.memory_space<vmem>>, vector<1x256x128xf32>,
    %cst_63 = arith.constant dense<0.000000e+00> : vector<128xf32>
    %87 = vector.multi_reduction <add>, %83, %cst_63 [0] : vector<256x128xf32> to vector<128xf32>
    %88 = vector.shape_cast %87 : vector<128xf32> to vector<1x128xf32>
    %89 = arith.mulf %83, %83 : vector<256x128xf32>
    %cst_64 = arith.constant dense<0.000000e+00> : vector<128xf32>
    %90 = vector.multi_reduction <add>, %89, %cst_64 [0] : vector<256x128xf32> to vector<128xf32>
    %91 = vector.shape_cast %90 : vector<128xf32> to vector<1x128xf32>
    %cst_65 = arith.constant 0.000000e+00 : f32
    %92 = vector.broadcast %cst_65 : f32 to vector<6x128xf32>
    %93 = tpu.concatenate %88, %91, %92 in 0 : vector<1x128xf32>, vector<1x128xf32>, vector<6x128xf32> -> vector<8x128xf32>
    %c0_66 = arith.constant 0 : index
    %c0_67 = arith.constant 0 : index
    %c0_68 = arith.constant 0 : index
    %c0_69 = arith.constant 0 : index
    %94 = vector.load %arg5[%c0_66, %c0_67, %c0_68, %c0_69] : memref<1x1x8x128xf32, #tpu.memory_space<vmem>>, vector<1x1x8x128xf32>
    %95 = vector.shape_cast %94 : vector<1x1x8x128xf32> to vector<8x128xf32>
    %96 = vector.shape_cast %93 : vector<8x128xf32> to vector<1x1x8x128xf32>
    tpu.vector_store %arg5[%c0_66, %c0_67, %c0_68, %c0_69], %96 {strides = array<i32>} : memref<1x1x8x128xf32, #tpu.memory_space<vmem>>, vector<1x1x8x128xf32>,
    return
  }
  func.func @transform_0(%arg0: i32, %arg1: i32) -> (i32, i32, i32, i32) {
    %c0_i32 = arith.constant 0 : i32
    %c0_i32_0 = arith.constant 0 : i32
    %c0_i32_1 = arith.constant 0 : i32
    %c0_i32_2 = arith.constant 0 : i32
    return %arg0, %c0_i32, %c0_i32_0, %c0_i32_1 : i32, i32, i32, i32
  }
  func.func @transform_1(%arg0: i32, %arg1: i32) -> (i32, i32, i32) {
    %c0_i32 = arith.constant 0 : i32
    %c0_i32_0 = arith.constant 0 : i32
    %c0_i32_1 = arith.constant 0 : i32
    %c0_i32_2 = arith.constant 0 : i32
    return %c0_i32, %c0_i32_0, %c0_i32_1 : i32, i32, i32
  }
  func.func @transform_2(%arg0: i32, %arg1: i32) -> (i32, i32, i32) {
    %c1_i32 = arith.constant 1 : i32
    %0 = arith.muli %arg0, %c1_i32 : i32
    %1 = arith.addi %0, %arg1 : i32
    %c0_i32 = arith.constant 0 : i32
    %c0_i32_0 = arith.constant 0 : i32
    %c0_i32_1 = arith.constant 0 : i32
    return %1, %c0_i32, %c0_i32_0 : i32, i32, i32
  }
  func.func @transform_3(%arg0: i32, %arg1: i32) -> (i32, i32, i32, i32) {
    %c0_i32 = arith.constant 0 : i32
    %c0_i32_0 = arith.constant 0 : i32
    %c0_i32_1 = arith.constant 0 : i32
    return %arg0, %arg1, %c0_i32, %c0_i32_0 : i32, i32, i32, i32
  }
}

</mosaic_0001>

<bundles_post_ra>
// kernel: tpu_custom_call.1
= control target key start
LH: loop header
LB: loop body
LE: loop exit
PB: predicated region body
PF: predicated region fallthrough
CT: control target
= control target key end

     0   :  { %9 = vsyncpa [#allocation3], 0  ;;  %s8537_s0 = inlined_call_operand.vmem [shape: bf16[2,18,18,4], index: 0, kind: input, shape index: {}]   ;;  %s8538_s1 = inlined_call_operand.vmem [shape: bf16[9,4,128], index: 1, kind: input, shape index: {}]   ;;  %s8539_s2 = inlined_call_operand.hbm [shape: f32[2,256,128], index: 2, kind: output, shape index: {0}]   ;;  %s8540_s3 = inlined_call_operand.hbm [shape: f32[2,1,8,128], index: 3, kind: output, shape index: {1}]  }
   0x1   :  { %11 = vsyncpa [#allocation3 + $0x1], 0 }
   0x2   :  { %12 = vsyncpa [#allocation5], 0 }
   0x3   :  { %14 = vsyncpa [#allocation5 + $0x1], 0  ;;  %s6640_s12 = smov 0   ;;  %s6642_s13 = smov 0  }
   0x4   :  { %s6644_s14 = smov 0   ;;  %s6646_s15 = smov 0  }
   0x5   :  { %s6648_s16 = smov 0   ;;  %s6650_s17 = smov 0  }
   0x6 LB: > { %s5057_s18 = sadd.s32 4294967295, %s6614_s17   ;;  %s5058_s19 = sadd.s32 4294967294, %s6614_s17   ;;  %s6614_s17 = sphi %s6650_s17, %s20_s17   ;;  %s6610_s16 = sphi %s6648_s16, %s8614_s16   ;;  %s6606_s15 = sphi %s6646_s15, %s8613_s15   ;;  %s6602_s14 = sphi %s6644_s14, %s8612_s14   ;;  %s6598_s13 = sphi %s6642_s13, %s8611_s13   ;;  %s6594_s12 = sphi %s6640_s12, %s8610_s12  }
   0x7   : > { %s32_s20 = sadd.s32 1, %s6610_s16  ;;  %s88_s21 = sadd.s32 1, %s6602_s14 }
   0x8   : > { %p34_p0 = scmp.ge.s32.totalorder %s32_s20, 2  ;;  %p98_p1 = scmp.ne.s32.totalorder %s6602_s14, %s6598_s13 }
   0x9   : > { %p99_p2 = scmp.eq.s32.totalorder %s5057_s18, 1  ;;  %p104_p3 = scmp.ne.s32.totalorder %s6598_s13, %s6594_s12 }
   0xa   : > { %s8616_s20 = smov (%p34_p0, %s32_s20), 0  ;;  %p105_p5 = scmp.eq.s32.totalorder %s5058_s19, 1 }
   0xb   : > { %p6680_p4 = por %p99_p2, %p98_p1  ;;  %s85_s23 = ssub.s32 %s6610_s16, %s8616_s20 }
   0xc   : > { %p5061_p6 = scmp.ge.s32.totalorder %s6614_s17, 1  ;;  %p86_p7 = scmp.eq.s32.totalorder %s85_s23, 0 }
   0xd   : > { %p6687_p8 = por %p105_p5, %p104_p3  ;;  %p162_p9 = scmp.lt.s32.totalorder %s6614_s17, 3 }
   0xe   : > { %s6693_s25 = scalar_select %p86_p7, %s6602_s14, %s88_s21  }
   0xf   : > { %p163_p10 = pnand %p5061_p6, %p162_p9 }
  0x11   : > { %166 = sbr.rel (%p163_p10) target bundleno = 641 (0x281), region = 28 }
  0x18   : > { %v5065_v0 = vld [vmem:[%s8538_s1 + $0x2] sm:$0x3]  ;;  %vm737_vm0 = vcmask 1041408   ;;  %v5292_v1 = vld [vmem:[%s8538_s1 + $0x8] sm:$0x3]  ;;  %p191_p11 = scmp.lt.s32.totalorder %s6606_s15, 1 }
  0x19   : > { %6326 = vmatprep.subr.msk.bf16.mxu1 %vm737_vm0, %v5065_v0  ;;  %6330 = vmatprep.subr.msk.bf16.mxu0 %vm737_vm0, %v5292_v1  ;;  %v739_v2 = vsel %vm737_vm0, %v5065_v0, 0  ;;  %v6706_v3 = vsel %vm737_vm0, %v5292_v1, 0  ;;  %v234_v4 = vld [vmem:[%s8538_s1] sm:$0x3]  ;;  %v5357_v5 = vld [vmem:[%s8538_s1 + $0xa] sm:$0x3] }
  0x1a   : > { %8556 = vst [vmem:[#allocation8_spill] sm:$0xff] %v6706_v3  ;;  %5763 = vmatpush3.bf16.msra.mxu1 %v739_v2  ;;  %5899 = vmatpush3.bf16.msra.mxu0 %v6706_v3  ;;  %s192_s30 = scalar_select %p191_p11, %s6606_s15, 1  ;;  %vm251_vm1 = vsmask.f32 3328  ;;  %vm252_vm2 = vsmask.f32 7440 }
  0x1b   : > { %6327 = vmatprep.subr.msk.bf16.mxu1 %vm737_vm0, %v234_v4  ;;  %6332 = vmatprep.subr.msk.bf16.mxu0 %vm737_vm0, %v5357_v5  ;;  %vm688_vm3 = vcmask 31744   ;;  %v6734_v17 = vsel %vm737_vm0, %v234_v4, 0  ;;  %v6740_v26 = vld [vmem:[%s8538_s1 + $0xc] sm:$0x3]  ;;  %vm6747_vm4 = vmor %vm251_vm1, %vm252_vm2  ;;  %v6753_v37 = vsel %vm737_vm0, %v5357_v5, 0  ;;  %vm1242_vm5 = vcmask 1042432  }
  0x1c   : > { %s6336_s8 = smul.u32 216, %s192_s30  ;;  %v6757_v41 = vsel %vm737_vm0, %v6740_v26, 0  ;;  %vm1243_vm6 = vcmask 1046532   ;;  %s8404_s9 = sand.u32 1, %s6598_s13  }
  0x1d   : > { %vm6973_vm7 = vmor %vm1242_vm5, %vm1243_vm6  ;;  %s5062_s10 = sshll.u32 %s8404_s9, 8  ;;  %s5608_s18 = sshll.u32 %s6606_s15, 12 }
  0x1e   : > { %s6721_s11 = scalar_lea.vmem %s8537_s0, %s6336_s8  ;;  %s8452_s26 = scalar_lea.hbm %s8539_s2, %s5608_s18 }
  0x1f   : > { %v202_v6 = vld [vmem:[%s6721_s11] sm:$0xf]  ;;  %v203_v7 = vld [vmem:[%s6721_s11 + $0x4] sm:$0xf]  ;;  %v235_v8 = vld [vmem:[%s6721_s11 + $0x8] sm:$0x1] }
  0x20   : > { %v255_v9 = vshrl.u32 %v202_v6, 16  ;;  %v258_v10 = vshll.u32 %v202_v6, 16  ;;  %v264_v11 = vshll.u32 %v203_v7, 16  ;;  %v268_v12 = vshrl.u32 %v203_v7, 16  ;;  %v5244_v13 = vld [vmem:[%s6721_s11 + $0xc] sm:$0xf] }
  0x21   : > { %v274_v14 = vshll.u32 %v235_v8, 16  ;;  %v6728_v15 = vld [vmem:[%s6721_s11 + $0x10] sm:$0xf]  ;;  %v6731_v16 = vld [vmem:[%s6721_s11 + $0x14] sm:$0x1]  ;;  %v2062_v23 = vshrl.u32 %v5244_v13, 16 }
  0x22   : > { %v257_v18 = vrot.slane %v255_v9, 4  ;;  %v260_v19 = vrot.slane %v258_v10, 5  ;;  %v266_v20 = vrot.slane %v264_v11, 5  ;;  %v270_v21 = vrot.slane %v268_v12, 4  ;;  %v204_v31 = vld [vmem:[%s6721_s11 + $0xc] sm:$0xf] }
  0x23   : > { %v276_v22 = vrot.slane %v274_v14, 5  ;;  %v2065_v24 = vshll.u32 %v5244_v13, 16  ;;  %v2071_v25 = vshll.u32 %v6728_v15, 16  ;;  %v2075_v29 = vshrl.u32 %v6728_v15, 16  ;;  %v205_v36 = vld [vmem:[%s6721_s11 + $0x10] sm:$0xf] }
  0x24   : > { %v261_v27 = vor.u32 %v260_v19, %v257_v18  ;;  %v271_v28 = vor.u32 %v270_v21, %v266_v20  ;;  %v2081_v30 = vshll.u32 %v6731_v16, 16  ;;  %v2064_v33 = vrot.slane %v2062_v23, 4  ;;  %v236_v44 = vld [vmem:[%s6721_s11 + $0x14] sm:$0x1]  ;;  %v5247_v55 = vld [vmem:[%s6721_s11 + $0x18] sm:$0xf] }
  0x25   : > { %v2067_v34 = vrot.slane %v2065_v24, 5  ;;  %v2073_v35 = vrot.slane %v2071_v25, 5  ;;  %v2077_v40 = vrot.slane %v2075_v29, 4  ;;  %v279_v45 = vshrl.u32 %v204_v31, 16  ;;  %v6766_v60 = vld [vmem:[%s6721_s11 + $0x1c] sm:$0xf] }
  0x26   : > { %v262_v38 = vrot.slane %v261_v27, 4  ;;  %v272_v39 = vrot.slane %v271_v28, 4  ;;  %v2083_v43 = vrot.slane %v2081_v30, 5  ;;  %v282_v46 = vshll.u32 %v204_v31, 16  ;;  %v6774_v1 = vld [vmem:[%s6721_s11 + $0x20] sm:$0x1] }
  0x27   : > { %v2068_v42 = vor.u32 %v2067_v34, %v2064_v33  ;;  %v2078_v49 = vor.u32 %v2077_v40, %v2073_v35  ;;  %v288_v50 = vshll.u32 %v205_v36, 16  ;;  %v281_v53 = vrot.slane %v279_v45, 4  ;;  %v206_v18 = vld [vmem:[%s6721_s11 + $0x18] sm:$0xf]  ;;  %v207_v23 = vld [vmem:[%s6721_s11 + $0x1c] sm:$0xf] }
  0x28   : > { %v267_v47 = vsel %vm6747_vm4, %v262_v38, %v266_v20  ;;  %v277_v48 = vsel %vm6747_vm4, %v272_v39, %v276_v22  ;;  %v284_v54 = vrot.slane %v282_v46, 5  ;;  %v292_v58 = vshrl.u32 %v205_v36, 16  ;;  %v237_v31 = vld [vmem:[%s6721_s11 + $0x20] sm:$0x1]  ;;  %v5250_v40 = vld [vmem:[%s6721_s11 + $0x24] sm:$0xf] }
  0x29   : > { %v5066_v51 = vcombine.low %v267_v47, %v277_v48  ;;  %v2069_v52 = vrot.slane %v2068_v42, 4  ;;  %v2079_v56 = vrot.slane %v2078_v49, 4  ;;  %v290_v57 = vrot.slane %v288_v50, 5  ;;  %v6797_v46 = vld [vmem:[%s6721_s11 + $0x28] sm:$0xf]  ;;  %s4910_s27 = scalar_lea.sflag [#allocation3], %s8404_s9 }
  0x2a   : > { %v298_v59 = vshll.u32 %v236_v44, 16  ;;  %v2805_v62 = vrot.slane %v6728_v15, 5  ;;  %v2808_v63 = vrot.slane %v6731_v16, 5  ;;  %v285_v0 = vor.u32 %v284_v54, %v281_v53  ;;  %v6806_v54 = vld [vmem:[%s6721_s11 + $0x2c] sm:$0x1]  ;;  %s6616_s29 = smov [#allocation2]  }
  0x2b   : > { %5764 = vmatprep.mubr.msk.bf16.mxu1 %vm688_vm3, %v5066_v51  ;;  %v2074_v61 = vsel %vm6747_vm4, %v2069_v52, %v2073_v35  ;;  %v2084_v2 = vsel %vm6747_vm4, %v2079_v56, %v2083_v43  ;;  %v294_v4 = vrot.slane %v292_v58, 4  ;;  %v2086_v6 = vshrl.u32 %v5247_v55, 16  ;;  %v5146_v51 = vld [vmem:[%s8538_s1 + $0x4] sm:$0x3]  ;;  %v7006_v16 = vld [vmem:[%s6721_s11 + $0x7c] sm:$0xf] }
  0x2c   : > { %v300_v5 = vrot.slane %v298_v59, 5  ;;  %v5293_v7 = vcombine.low %v2074_v61, %v2084_v2  ;;  %v286_v8 = vrot.slane %v285_v0, 4  ;;  %v2089_v9 = vshll.u32 %v5247_v55, 16  ;;  %v208_v0 = vld [vmem:[%s6721_s11 + $0x24] sm:$0xf]  ;;  %s6508_s30 = sshll.u32 %s6616_s29, 4  ;;  %s6509_s30 = int_to_ptr.vmem [resolvable:$false] %s6508_s30 }
  0x2d   : > { %v2095_v10 = vshll.u32 %v6766_v60, 16  ;;  %v295_v11 = vor.u32 %v294_v4, %v290_v57  ;;  %v2088_v12 = vrot.slane %v2086_v6, 4  ;;  %v2099_v13 = vshrl.u32 %v6766_v60, 16  ;;  %s6510_s4 = scalar_lea.vmem %s6509_s30, 8192 }
  0x2e   : > { %v2105_v14 = vshll.u32 %v6774_v1, 16  ;;  %5900 = vmatprep.mubr.msk.bf16.mxu0 %vm688_vm3, %v5293_v7  ;;  %v291_v19 = vsel %vm6747_vm4, %v286_v8, %v290_v57  ;;  %v2091_v20 = vrot.slane %v2089_v9, 5  ;;  %v2812_v22 = vrot.slane %v6766_v60, 5  ;;  %v209_v7 = vld [vmem:[%s6721_s11 + $0x28] sm:$0xf] }
  0x2f   : > { %v2097_v21 = vrot.slane %v2095_v10, 5  ;;  %v296_v24 = vrot.slane %v295_v11, 4  ;;  %v2101_v25 = vrot.slane %v2099_v13, 4  ;;  %v2815_v28 = vrot.slane %v6774_v1, 5  ;;  %v238_v13 = vld [vmem:[%s6721_s11 + $0x2c] sm:$0x1] }
  0x30   : > { %v2107_v27 = vrot.slane %v2105_v14, 5  ;;  %v2092_v29 = vor.u32 %v2091_v20, %v2088_v12  ;;  %v6790_v30 = vrot.slane %v2812_v22, 4  ;;  %v303_v33 = vshrl.u32 %v206_v18, 16 }
  0x31   : > { %v306_v34 = vshll.u32 %v206_v18, 16  ;;  %v301_v35 = vsel %vm6747_vm4, %v296_v24, %v300_v5  ;;  %v2102_v36 = vor.u32 %v2101_v25, %v2097_v21  ;;  %v312_v38 = vshll.u32 %v207_v23, 16  ;;  %v5253_v24 = vld [vmem:[%s6721_s11 + $0x30] sm:$0xf] }
  0x32   : > { %v316_v39 = vshrl.u32 %v207_v23, 16  ;;  %v5067_v42 = vcombine.low %v291_v19, %v301_v35  ;;  %v2093_v43 = vrot.slane %v2092_v29, 4  ;;  %v305_v44 = vrot.slane %v303_v33, 4  ;;  %v6826_v33 = vld [vmem:[%s6721_s11 + $0x34] sm:$0xf] }
  0x33   : > { %v308_v45 = vrot.slane %v306_v34, 5  ;;  %v2103_v47 = vrot.slane %v2102_v36, 4  ;;  %v314_v48 = vrot.slane %v312_v38, 5  ;;  %v322_v50 = vshll.u32 %v237_v31, 16 }
  0x34   : > { %v318_v49 = vrot.slane %v316_v39, 4  ;;  %5765 = vmatmul.mubr.msk.bf16.vlgmr.msra.gmra.mrb[0].mxu1 %vm688_vm3, %v5067_v42  ;;  %v2098_v52 = vsel %vm6747_vm4, %v2093_v43, %v2097_v21  ;;  %v2110_v55 = vshrl.u32 %v5250_v40, 16  ;;  %v2113_v56 = vshll.u32 %v5250_v40, 16  ;;  %v6834_v40 = vld [vmem:[%s6721_s11 + $0x38] sm:$0x1] }
  0x35   : > { %v309_v53 = vor.u32 %v308_v45, %v305_v44  ;;  %5797 = vmatpush3.bf16.msra.mxu1 %v6734_v17  ;;  %v2108_v57 = vsel %vm6747_vm4, %v2103_v47, %v2107_v27  ;;  %v324_v59 = vrot.slane %v322_v50, 5  ;;  %v2119_v61 = vshll.u32 %v6797_v46, 16 }
  0x36   : > { %v319_v58 = vor.u32 %v318_v49, %v314_v48  ;;  %v5294_v2 = vcombine.low %v2098_v52, %v2108_v57  ;;  %v2112_v5 = vrot.slane %v2110_v55, 4  ;;  %v2115_v6 = vrot.slane %v2113_v56, 5  ;;  %6328 = vmatprep.subr.msk.bf16.mxu1 %vm737_vm0, %v5146_v51  ;;  %v210_v52 = vld [vmem:[%s6721_s11 + $0x30] sm:$0xf] }
  0x37   : > { %v310_v4 = vrot.slane %v309_v53, 4  ;;  %v2121_v9 = vrot.slane %v2119_v61, 5  ;;  %v2123_v17 = vshrl.u32 %v6797_v46, 16  ;;  %v2129_v10 = vshll.u32 %v6806_v54, 16 }
  0x38   : > { %v320_v8 = vrot.slane %v319_v58, 4  ;;  %5901 = vmatmul.mubr.msk.bf16.vlgmr.msra.gmra.mrb[0].mxu0 %vm688_vm3, %v5294_v2  ;;  %v2116_v12 = vor.u32 %v2115_v6, %v2112_v5  ;;  %v327_v14 = vshrl.u32 %v208_v0, 16  ;;  %v330_v18 = vshll.u32 %v208_v0, 16  ;;  %v211_v58 = vld [vmem:[%s6721_s11 + $0x34] sm:$0xf] }
  0x39   : > { %v315_v11 = vsel %vm6747_vm4, %v310_v4, %v314_v48  ;;  %5933 = vmatpush3.bf16.msra.mxu0 %v6753_v37  ;;  %v2125_v20 = vrot.slane %v2123_v17, 4  ;;  %v2131_v21 = vrot.slane %v2129_v10, 5  ;;  %v336_v23 = vshll.u32 %v209_v7, 16  ;;  %v239_v4 = vld [vmem:[%s6721_s11 + $0x38] sm:$0x1] }
  0x3a   : > { %v325_v19 = vsel %vm6747_vm4, %v320_v8, %v324_v59  ;;  %v2117_v27 = vrot.slane %v2116_v12, 4  ;;  %v329_v29 = vrot.slane %v327_v14, 4  ;;  %v332_v31 = vrot.slane %v330_v18, 5  ;;  %6333 = vmatprep.subr.msk.bf16.mxu0 %vm737_vm0, %v6740_v26  ;;  %v5256_v12 = vld [vmem:[%s6721_s11 + $0x3c] sm:$0xf] }
  0x3b   : > { %v5068_v25 = vcombine.low %v315_v11, %v325_v19  ;;  %v2126_v34 = vor.u32 %v2125_v20, %v2121_v9  ;;  %v338_v35 = vrot.slane %v336_v23, 5  ;;  %v340_v37 = vshrl.u32 %v209_v7, 16  ;;  %v6851_v20 = vld [vmem:[%s6721_s11 + $0x40] sm:$0xf] }
  0x3c   : > { %v346_v36 = vshll.u32 %v238_v13, 16  ;;  %v2122_v38 = vsel %vm6747_vm4, %v2117_v27, %v2121_v9  ;;  %v333_v39 = vor.u32 %v332_v31, %v329_v29  ;;  %v2134_v42 = vshrl.u32 %v5253_v24, 16 }
  0x3d   : > { %5768 = vmatprep.mubr.msk.bf16.mxu1 %vm688_vm3, %v5068_v25  ;;  %v2137_v43 = vshll.u32 %v5253_v24, 16  ;;  %v2127_v44 = vrot.slane %v2126_v34, 4  ;;  %v342_v45 = vrot.slane %v340_v37, 4  ;;  %v2143_v26 = vshll.u32 %v6826_v33, 16  ;;  %v6856_v34 = vld [vmem:[%s6721_s11 + $0x44] sm:$0x1] }
  0x3e   : > { %v348_v47 = vrot.slane %v346_v36, 5  ;;  %v334_v48 = vrot.slane %v333_v39, 4  ;;  %v2136_v49 = vrot.slane %v2134_v42, 4  ;;  %v2147_v51 = vshrl.u32 %v6826_v33, 16  ;;  %v212_v42 = vld [vmem:[%s6721_s11 + $0x3c] sm:$0xf] }
  0x3f   : > { %v2139_v50 = vrot.slane %v2137_v43, 5  ;;  %v2132_v53 = vsel %vm6747_vm4, %v2127_v44, %v2131_v21  ;;  %v343_v55 = vor.u32 %v342_v45, %v338_v35  ;;  %v2145_v56 = vrot.slane %v2143_v26, 5  ;;  %v213_v26 = vld [vmem:[%s6721_s11 + $0x40] sm:$0xf] }
  0x40   : > { %v2153_v57 = vshll.u32 %v6834_v40, 16  ;;  %v5295_v59 = vcombine.low %v2122_v38, %v2132_v53  ;;  %v339_v61 = vsel %vm6747_vm4, %v334_v48, %v338_v35  ;;  %v2149_v2 = vrot.slane %v2147_v51, 4 }
  0x41   : > { %v2140_v0 = vor.u32 %v2139_v50, %v2136_v49  ;;  %v344_v5 = vrot.slane %v343_v55, 4  ;;  %v351_v7 = vshrl.u32 %v210_v52, 16  ;;  %v354_v8 = vshll.u32 %v210_v52, 16 }
  0x42   : > { %v2155_v6 = vrot.slane %v2153_v57, 5  ;;  %5904 = vmatprep.mubr.msk.bf16.mxu0 %vm688_vm3, %v5295_v59  ;;  %v2150_v17 = vor.u32 %v2149_v2, %v2145_v56  ;;  %v360_v10 = vshll.u32 %v211_v58, 16  ;;  %v364_v11 = vshrl.u32 %v211_v58, 16  ;;  %v5259_v2 = vld [vmem:[%s6721_s11 + $0x48] sm:$0xf] }
  0x43   : > { %v2141_v9 = vrot.slane %v2140_v0, 4  ;;  %v349_v13 = vsel %vm6747_vm4, %v344_v5, %v348_v47  ;;  %v353_v14 = vrot.slane %v351_v7, 4  ;;  %v356_v18 = vrot.slane %v354_v8, 5  ;;  %v6874_v8 = vld [vmem:[%s6721_s11 + $0x4c] sm:$0xf] }
  0x44   : > { %v370_v19 = vshll.u32 %v239_v4, 16  ;;  %v5069_v21 = vcombine.low %v339_v61, %v349_v13  ;;  %v2151_v24 = vrot.slane %v2150_v17, 4  ;;  %v362_v25 = vrot.slane %v360_v10, 5  ;;  %v240_v61 = vld [vmem:[%s6721_s11 + $0x44] sm:$0x1] }
  0x45   : > { %v2146_v23 = vsel %vm6747_vm4, %v2141_v9, %v2145_v56  ;;  %v357_v27 = vor.u32 %v356_v18, %v353_v14  ;;  %v366_v29 = vrot.slane %v364_v11, 4  ;;  %v2158_v35 = vshrl.u32 %v5256_v12, 16 }
  0x46   : > { %v372_v31 = vrot.slane %v370_v19, 5  ;;  %5769 = vmatmul.mubr.msk.bf16.gmra.mrb[4].mxu1 %vm688_vm3, %v5069_v21  ;;  %v2156_v37 = vsel %vm6747_vm4, %v2151_v24, %v2155_v6  ;;  %v2161_v36 = vshll.u32 %v5256_v12, 16  ;;  %v2167_v38 = vshll.u32 %v6851_v20, 16 }
  0x47   : > { %v2171_v39 = vshrl.u32 %v6851_v20, 16  ;;  %v5296_v43 = vcombine.low %v2146_v23, %v2156_v37  ;;  %v358_v44 = vrot.slane %v357_v27, 4  ;;  %v367_v45 = vor.u32 %v366_v29, %v362_v25  ;;  %v6882_v23 = vld [vmem:[%s6721_s11 + $0x50] sm:$0x1]  ;;  %v6886_v27 = vld [vmem:[%s6721_s11 + $0x48] sm:$0xf] }
  0x48   : > { %v2160_v47 = vrot.slane %v2158_v35, 4  ;;  %v2163_v48 = vrot.slane %v2161_v36, 5  ;;  %v2169_v49 = vrot.slane %v2167_v38, 5  ;;  %v2177_v51 = vshll.u32 %v6856_v34, 16  ;;  %v6889_v36 = vld [vmem:[%s6721_s11 + $0x4c] sm:$0xf] }
  0x49   : > { %v2173_v50 = vrot.slane %v2171_v39, 4  ;;  %5905 = vmatmul.mubr.msk.bf16.gmra.mrb[4].mxu0 %vm688_vm3, %v5296_v43  ;;  %v363_v52 = vsel %vm6747_vm4, %v358_v44, %v362_v25  ;;  %v368_v53 = vrot.slane %v367_v45, 4  ;;  %v375_v55 = vshrl.u32 %v212_v42, 16 }
  0x4a   : > { %v378_v56 = vshll.u32 %v212_v42, 16  ;;  %v2164_v57 = vor.u32 %v2163_v48, %v2160_v47  ;;  %v2179_v59 = vrot.slane %v2177_v51, 5  ;;  %v384_v0 = vshll.u32 %v213_v26, 16 }
  0x4b   : > { %v2174_v58 = vor.u32 %v2173_v50, %v2169_v49  ;;  %v373_v4 = vsel %vm6747_vm4, %v368_v53, %v372_v31  ;;  %v377_v5 = vrot.slane %v375_v55, 4  ;;  %v388_v7 = vshrl.u32 %v213_v26, 16  ;;  %v241_v26 = vld [vmem:[%s6721_s11 + $0x50] sm:$0x1]  ;;  %v5262_v53 = vld [vmem:[%s6721_s11 + $0x54] sm:$0xf] }
  0x4c   : > { %v380_v6 = vrot.slane %v378_v56, 5  ;;  %v5070_v9 = vcombine.low %v363_v52, %v373_v4  ;;  %v2165_v17 = vrot.slane %v2164_v57, 4  ;;  %v386_v11 = vrot.slane %v384_v0, 5  ;;  %v6905_v4 = vld [vmem:[%s6721_s11 + $0x58] sm:$0xf] }
  0x4d   : > { %v2175_v10 = vrot.slane %v2174_v58, 4  ;;  %v390_v13 = vrot.slane %v388_v7, 4  ;;  %v394_v14 = vshll.u32 %v240_v61, 16  ;;  %v2182_v18 = vshrl.u32 %v5259_v2, 16 }
  0x4e   : > { %v381_v12 = vor.u32 %v380_v6, %v377_v5  ;;  %5772 = vmatprep.mubr.msk.bf16.mxu1 %vm688_vm3, %v5070_v9  ;;  %v2170_v19 = vsel %vm6747_vm4, %v2165_v17, %v2169_v49  ;;  %v2185_v24 = vshll.u32 %v5259_v2, 16  ;;  %v2191_v25 = vshll.u32 %v6874_v8, 16 }
  0x4f   : > { %v2180_v21 = vsel %vm6747_vm4, %v2175_v10, %v2179_v59  ;;  %v391_v35 = vor.u32 %v390_v13, %v386_v11  ;;  %v396_v37 = vrot.slane %v394_v14, 5  ;;  %v2184_v38 = vrot.slane %v2182_v18, 4 }
  0x50   : > { %v5297_v29 = vcombine.low %v2170_v19, %v2180_v21  ;;  %v382_v31 = vrot.slane %v381_v12, 4  ;;  %v2187_v39 = vrot.slane %v2185_v24, 5  ;;  %v2193_v42 = vrot.slane %v2191_v25, 5  ;;  %v6911_v12 = vld [vmem:[%s6721_s11 + $0x5c] sm:$0x1] }
  0x51   : > { %v2195_v43 = vshrl.u32 %v6874_v8, 16  ;;  %v392_v45 = vrot.slane %v391_v35, 4  ;;  %v2201_v47 = vshll.u32 %v6882_v23, 16  ;;  %v399_v48 = vshrl.u32 %v6886_v27, 16  ;;  %v6915_v24 = vld [vmem:[%s6721_s11 + $0x54] sm:$0xf] }
  0x52   : > { %5908 = vmatprep.mubr.msk.bf16.mxu0 %vm688_vm3, %v5297_v29  ;;  %v387_v44 = vsel %vm6747_vm4, %v382_v31, %v386_v11  ;;  %v2188_v49 = vor.u32 %v2187_v39, %v2184_v38  ;;  %v402_v51 = vshll.u32 %v6886_v27, 16  ;;  %v408_v52 = vshll.u32 %v6889_v36, 16 }
  0x53   : > { %v2197_v50 = vrot.slane %v2195_v43, 4  ;;  %v397_v55 = vsel %vm6747_vm4, %v392_v45, %v396_v37  ;;  %v2203_v56 = vrot.slane %v2201_v47, 5  ;;  %v401_v57 = vrot.slane %v399_v48, 4  ;;  %v6921_v37 = vld [vmem:[%s6721_s11 + $0x58] sm:$0xf] }
  0x54   : > { %v412_v58 = vshrl.u32 %v6889_v36, 16  ;;  %v5071_v59 = vcombine.low %v387_v44, %v397_v55  ;;  %v2189_v61 = vrot.slane %v2188_v49, 4  ;;  %v404_v2 = vrot.slane %v402_v51, 5 }
  0x55   : > { %v2198_v0 = vor.u32 %v2197_v50, %v2193_v42  ;;  %v410_v5 = vrot.slane %v408_v52, 5  ;;  %v418_v7 = vshll.u32 %v241_v26, 16  ;;  %v2206_v9 = vshrl.u32 %v5262_v53, 16  ;;  %v242_v26 = vld [vmem:[%s6721_s11 + $0x5c] sm:$0x1] }
  0x56   : > { %v414_v6 = vrot.slane %v412_v58, 4  ;;  %5773 = vmatmul.mubr.msk.bf16.gmra.mrb[8].mxu1 %vm688_vm3, %v5071_v59  ;;  %v2194_v17 = vsel %vm6747_vm4, %v2189_v61, %v2193_v42  ;;  %v405_v11 = vor.u32 %v404_v2, %v401_v57  ;;  %v2209_v13 = vshll.u32 %v5262_v53, 16  ;;  %v5265_v53 = vld [vmem:[%s6721_s11 + $0x60] sm:$0xf]  ;;  %v6935_v59 = vld [vmem:[%s6721_s11 + $0x64] sm:$0xf] }
  0x57   : > { %v2199_v10 = vrot.slane %v2198_v0, 4  ;;  %v420_v18 = vrot.slane %v418_v7, 5  ;;  %v2208_v19 = vrot.slane %v2206_v9, 4  ;;  %v2215_v21 = vshll.u32 %v6905_v4, 16  ;;  %v6942_v9 = vld [vmem:[%s6721_s11 + $0x68] sm:$0x1] }
  0x58   : > { %v415_v14 = vor.u32 %v414_v6, %v410_v5  ;;  %v406_v29 = vrot.slane %v405_v11, 4  ;;  %v2211_v31 = vrot.slane %v2209_v13, 5  ;;  %v2219_v35 = vshrl.u32 %v6905_v4, 16 }
  0x59   : > { %v2204_v25 = vsel %vm6747_vm4, %v2199_v10, %v2203_v56  ;;  %v2217_v42 = vrot.slane %v2215_v21, 5  ;;  %v2225_v43 = vshll.u32 %v6911_v12, 16  ;;  %v423_v48 = vshrl.u32 %v6915_v24, 16 }
  0x5a   : > { %v5298_v38 = vcombine.low %v2194_v17, %v2204_v25  ;;  %v416_v39 = vrot.slane %v415_v14, 4  ;;  %v411_v44 = vsel %vm6747_vm4, %v406_v29, %v410_v5  ;;  %v2212_v45 = vor.u32 %v2211_v31, %v2208_v19  ;;  %v6946_v19 = vld [vmem:[%s6721_s11 + $0x60] sm:$0xf] }
  0x5b   : > { %v2221_v47 = vrot.slane %v2219_v35, 4  ;;  %v2227_v50 = vrot.slane %v2225_v43, 5  ;;  %v426_v51 = vshll.u32 %v6915_v24, 16  ;;  %v432_v52 = vshll.u32 %v6921_v37, 16  ;;  %v6952_v35 = vld [vmem:[%s6721_s11 + $0x64] sm:$0xf] }
  0x5c   : > { %5909 = vmatmul.mubr.msk.bf16.gmra.mrb[8].mxu0 %vm688_vm3, %v5298_v38  ;;  %v421_v49 = vsel %vm6747_vm4, %v416_v39, %v420_v18  ;;  %v2213_v56 = vrot.slane %v2212_v45, 4  ;;  %v425_v58 = vrot.slane %v423_v48, 4  ;;  %v436_v2 = vshrl.u32 %v6921_v37, 16 }
  0x5d   : > { %v5072_v55 = vcombine.low %v411_v44, %v421_v49  ;;  %v2222_v57 = vor.u32 %v2221_v47, %v2217_v42  ;;  %v428_v61 = vrot.slane %v426_v51, 5  ;;  %v434_v0 = vrot.slane %v432_v52, 5 }
  0x5e   : > { %v442_v5 = vshll.u32 %v242_v26, 16  ;;  %v2218_v6 = vsel %vm6747_vm4, %v2213_v56, %v2217_v42  ;;  %v2230_v17 = vshrl.u32 %v5265_v53, 16  ;;  %v2233_v10 = vshll.u32 %v5265_v53, 16 }
  0x5f   : > { %5776 = vmatprep.mubr.msk.bf16.mxu1 %vm688_vm3, %v5072_v55  ;;  %v2223_v7 = vrot.slane %v2222_v57, 4  ;;  %v429_v11 = vor.u32 %v428_v61, %v425_v58  ;;  %v438_v13 = vrot.slane %v436_v2, 4  ;;  %v2239_v18 = vshll.u32 %v6935_v59, 16  ;;  %v5325_v58 = vld [vmem:[%s6721_s11 + $0xc] sm:$0xe] }
  0x60   : > { %v444_v14 = vrot.slane %v442_v5, 5  ;;  %v2232_v25 = vrot.slane %v2230_v17, 4  ;;  %v2235_v29 = vrot.slane %v2233_v10, 5  ;;  %v2243_v31 = vshrl.u32 %v6935_v59, 16 }
  0x61   : > { %v2228_v21 = vsel %vm6747_vm4, %v2223_v7, %v2227_v50  ;;  %v430_v39 = vrot.slane %v429_v11, 4  ;;  %v439_v42 = vor.u32 %v438_v13, %v434_v0  ;;  %v2241_v43 = vrot.slane %v2239_v18, 5  ;;  %v243_v50 = vld [vmem:[%s6721_s11 + $0x68] sm:$0x1] }
  0x62   : > { %v5299_v38 = vcombine.low %v2218_v6, %v2228_v21  ;;  %v2236_v44 = vor.u32 %v2235_v29, %v2232_v25  ;;  %v2245_v45 = vrot.slane %v2243_v31, 4  ;;  %v2249_v47 = vshll.u32 %v6942_v9, 16  ;;  %v6980_v29 = vld [vmem:[%s6721_s11 + $0x70] sm:$0xf] }
  0x63   : > { %v447_v26 = vshrl.u32 %v6946_v19, 16  ;;  %v435_v48 = vsel %vm6747_vm4, %v430_v39, %v434_v0  ;;  %v440_v49 = vrot.slane %v439_v42, 4  ;;  %v450_v51 = vshll.u32 %v6946_v19, 16  ;;  %v6967_v0 = vld [vmem:[%s6721_s11 + $0x6c] sm:$0xf] }
  0x64   : > { %5912 = vmatprep.mubr.msk.bf16.mxu0 %vm688_vm3, %v5299_v38  ;;  %v456_v52 = vshll.u32 %v6952_v35, 16  ;;  %v2237_v53 = vrot.slane %v2236_v44, 4  ;;  %v2246_v55 = vor.u32 %v2245_v45, %v2241_v43  ;;  %v2251_v56 = vrot.slane %v2249_v47, 5 }
  0x65   : > { %v449_v57 = vrot.slane %v447_v26, 4  ;;  %v445_v61 = vsel %vm6747_vm4, %v440_v49, %v444_v14  ;;  %v452_v2 = vrot.slane %v450_v51, 5  ;;  %v460_v6 = vshrl.u32 %v6952_v35, 16  ;;  %v244_v26 = vld [vmem:[%s6721_s11 + $0x74] sm:$0x1] }
  0x66   : > { %v458_v5 = vrot.slane %v456_v52, 5  ;;  %v5073_v7 = vcombine.low %v435_v48, %v445_v61  ;;  %v2242_v17 = vsel %vm6747_vm4, %v2237_v53, %v2241_v43  ;;  %v2247_v10 = vrot.slane %v2246_v55, 4  ;;  %v5326_v48 = vld [vmem:[%s6721_s11 + $0x18] sm:$0xe] }
  0x67   : > { %v466_v11 = vshll.u32 %v243_v50, 16  ;;  %v453_v14 = vor.u32 %v452_v2, %v449_v57  ;;  %v462_v18 = vrot.slane %v460_v6, 4  ;;  %v5341_v21 = vrot.slane %v5325_v58, 9  ;;  %v6999_v53 = vld [vmem:[%s6721_s11 + $0x78] sm:$0xf] }
  0x68   : > { %v2807_v25 = vrot.slane %v2805_v62, 4  ;;  %5777 = vmatmul.mubr.msk.bf16.gmra.mrb[12].mxu1 %vm688_vm3, %v5073_v7  ;;  %v2252_v31 = vsel %vm6747_vm4, %v2247_v10, %v2251_v56  ;;  %v471_v39 = vshrl.u32 %v6967_v0, 16  ;;  %v474_v42 = vshll.u32 %v6967_v0, 16  ;;  %v245_v57 = vld [vmem:[%s6721_s11 + $0x80] sm:$0x1] }
  0x69   : > { %v468_v38 = vrot.slane %v466_v11, 5  ;;  %v5300_v43 = vcombine.low %v2242_v17, %v2252_v31  ;;  %v454_v44 = vrot.slane %v453_v14, 4  ;;  %v463_v45 = vor.u32 %v462_v18, %v458_v5  ;;  %v5327_v10 = vld [vmem:[%s6721_s11 + $0x24] sm:$0xe] }
  0x6a   : > { %v2806_v47 = vsel %vm6973_vm7, %v5341_v21, %v2805_v62  ;;  %v2809_v49 = vsel %vm6973_vm7, %v2807_v25, %v2808_v63  ;;  %v473_v50 = vrot.slane %v471_v39, 4  ;;  %v476_v51 = vrot.slane %v474_v42, 5  ;;  %v7025_v39 = vld [vmem:[%s6721_s11 + $0x84] sm:$0xf] }
  0x6b   : > { %v480_v52 = vshll.u32 %v6980_v29, 16  ;;  %5913 = vmatmul.mubr.msk.bf16.gmra.mrb[12].mxu0 %vm688_vm3, %v5300_v43  ;;  %v459_v15 = vsel %vm6747_vm4, %v454_v44, %v458_v5  ;;  %v464_v62 = vrot.slane %v463_v45, 4  ;;  %v5358_v55 = vcombine.low %v2806_v47, %v2809_v49  ;;  %v7033_v43 = vld [vmem:[%s6721_s11 + $0x88] sm:$0xf] }
  0x6c   : > { %v484_v56 = vshrl.u32 %v6980_v29, 16  ;;  %v477_v63 = vor.u32 %v476_v51, %v473_v50  ;;  %v490_v61 = vshll.u32 %v244_v26, 16  ;;  %v5342_v2 = vrot.slane %v5326_v48, 9 }
  0x6d   : > { %v482_v58 = vrot.slane %v480_v52, 5  ;;  %v469_v6 = vsel %vm6747_vm4, %v464_v62, %v468_v38  ;;  %5934 = vmatprep.mubr.msk.bf16.mxu0 %vm688_vm3, %v5358_v55  ;;  %v2816_v5 = vsel %vm6973_vm7, %v6790_v30, %v2815_v28  ;;  %v495_v17 = vshrl.u32 %v6999_v53, 16  ;;  %v246_v52 = vld [vmem:[%s6721_s11 + $0x8c] sm:$0x1] }
  0x6e   : > { %v486_v7 = vrot.slane %v484_v56, 4  ;;  %v5074_v11 = vcombine.low %v459_v15, %v469_v6  ;;  %v478_v14 = vrot.slane %v477_v63, 4  ;;  %v492_v18 = vrot.slane %v490_v61, 5 }
  0x6f   : > { %v2813_v21 = vsel %vm6973_vm7, %v5342_v2, %v2812_v22  ;;  %v497_v38 = vrot.slane %v495_v17, 4  ;;  %v498_v1 = vshll.u32 %v6999_v53, 16  ;;  %v504_v30 = vshll.u32 %v7006_v16, 16  ;;  %v7038_v22 = vld [vmem:[%s8538_s1 + $0xe] sm:$0x3] }
  0x70   : > { %v487_v25 = vor.u32 %v486_v7, %v482_v58  ;;  %v5359_v31 = vcombine.low %v2813_v21, %v2816_v5  ;;  %5780 = vmatprep.mubr.msk.bf16.mxu1 %vm688_vm3, %v5074_v11  ;;  %v483_v28 = vsel %vm6747_vm4, %v478_v14, %v482_v58  ;;  %v508_v60 = vshrl.u32 %v7006_v16, 16  ;;  %v7057_v5 = vld [vmem:[%s6721_s11 + $0x90] sm:$0xf] }
  0x71   : > { %v514_v42 = vshll.u32 %v245_v57, 16  ;;  %v500_v45 = vrot.slane %v498_v1, 5  ;;  %v5343_v47 = vrot.slane %v5327_v10, 9  ;;  %v2819_v26 = vrot.slane %v6797_v46, 5  ;;  %v5328_v57 = vld [vmem:[%s6721_s11 + $0x30] sm:$0xe] }
  0x72   : > { %v488_v44 = vrot.slane %v487_v25, 4  ;;  %v506_v48 = vrot.slane %v504_v30, 5  ;;  %v510_v49 = vrot.slane %v508_v60, 4  ;;  %v2822_v51 = vrot.slane %v6806_v54, 5  ;;  %v7069_v30 = vld [vmem:[%s6721_s11 + $0x94] sm:$0xf] }
  0x73   : > { %v516_v50 = vrot.slane %v514_v42, 5  ;;  %5935 = vmatmul.mubr.msk.bf16.vlgmr.msra.gmra.mrb[0].mxu0 %vm688_vm3, %v5359_v31  ;;  %v501_v62 = vor.u32 %v500_v45, %v497_v38  ;;  %v2820_v55 = vsel %vm6973_vm7, %v5343_v47, %v2819_v26  ;;  %v2821_v56 = vrot.slane %v2819_v26, 4  ;;  %v247_v60 = vld [vmem:[%s6721_s11 + $0x98] sm:$0x1]  ;;  %v5329_v26 = vld [vmem:[%s6721_s11 + $0x3c] sm:$0xe] }
  0x74   : > { %v493_v15 = vsel %vm6747_vm4, %v488_v44, %v492_v18  ;;  %5967 = vmatpush3.bf16.msra.mxu0 %v6757_v41  ;;  %v511_v46 = vor.u32 %v510_v49, %v506_v48  ;;  %v519_v58 = vshrl.u32 %v7025_v39, 16  ;;  %v522_v54 = vshll.u32 %v7025_v39, 16 }
  0x75   : > { %v5075_v63 = vcombine.low %v483_v28, %v493_v15  ;;  %v502_v61 = vrot.slane %v501_v62, 4  ;;  %v2823_v2 = vsel %vm6973_vm7, %v2821_v56, %v2822_v51  ;;  %v528_v6 = vshll.u32 %v7033_v43, 16  ;;  %6334 = vmatprep.subr.msk.bf16.mxu0 %vm737_vm0, %v7038_v22 }
  0x76   : > { %v532_v7 = vshrl.u32 %v7033_v43, 16  ;;  %v512_v41 = vrot.slane %v511_v46, 4  ;;  %v5360_v17 = vcombine.low %v2820_v55, %v2823_v2  ;;  %v521_v10 = vrot.slane %v519_v58, 4  ;;  %v7089_v46 = vld [vmem:[%s6721_s11 + $0xa0] sm:$0xf] }
  0x77   : > { %5781 = vmatmul.mubr.msk.bf16.gmra.mrb[16].mxu1 %vm688_vm3, %v5075_v63  ;;  %v524_v11 = vrot.slane %v522_v54, 5  ;;  %v507_v14 = vsel %vm6747_vm4, %v502_v61, %v506_v48  ;;  %v530_v18 = vrot.slane %v528_v6, 5  ;;  %v538_v25 = vshll.u32 %v246_v52, 16  ;;  %v7078_v52 = vld [vmem:[%s6721_s11 + $0x9c] sm:$0xf] }
  0x78   : > { %v534_v21 = vrot.slane %v532_v7, 4  ;;  %v517_v31 = vsel %vm6747_vm4, %v512_v41, %v516_v50  ;;  %5938 = vmatprep.mubr.msk.bf16.mxu0 %vm688_vm3, %v5360_v17  ;;  %v5344_v1 = vrot.slane %v5328_v57, 9  ;;  %v2826_v28 = vrot.slane %v6826_v33, 5 }
  0x79   : > { %v525_v38 = vor.u32 %v524_v11, %v521_v10  ;;  %v5076_v42 = vcombine.low %v507_v14, %v517_v31  ;;  %v540_v45 = vrot.slane %v538_v25, 5  ;;  %v2829_v47 = vrot.slane %v6834_v40, 5  ;;  %v248_v10 = vld [vmem:[%s6721_s11 + $0xa4] sm:$0x1]  ;;  %v5330_v11 = vld [vmem:[%s6721_s11 + $0x48] sm:$0xe] }
  0x7a   : > { %v535_v44 = vor.u32 %v534_v21, %v530_v18  ;;  %v2827_v49 = vsel %vm6973_vm7, %v5344_v1, %v2826_v28  ;;  %v2828_v50 = vrot.slane %v2826_v28, 4  ;;  %v543_v51 = vshrl.u32 %v7057_v5, 16 }
  0x7b   : > { %v526_v48 = vrot.slane %v525_v38, 4  ;;  %5784 = vmatprep.mubr.msk.bf16.mxu1 %vm688_vm3, %v5076_v42  ;;  %v546_v15 = vshll.u32 %v7057_v5, 16  ;;  %v552_v62 = vshll.u32 %v7069_v30, 16  ;;  %v556_v40 = vshrl.u32 %v7069_v30, 16 }
  0x7c   : > { %v536_v33 = vrot.slane %v535_v44, 4  ;;  %v2830_v56 = vsel %vm6973_vm7, %v2828_v50, %v2829_v47  ;;  %v545_v57 = vrot.slane %v543_v51, 4  ;;  %v562_v63 = vshll.u32 %v247_v60, 16 }
  0x7d   : > { %v531_v55 = vsel %vm6747_vm4, %v526_v48, %v530_v18  ;;  %v5361_v54 = vcombine.low %v2827_v49, %v2830_v56  ;;  %v548_v61 = vrot.slane %v546_v15, 5  ;;  %v554_v2 = vrot.slane %v552_v62, 5  ;;  %v7115_v56 = vld [vmem:[%s6721_s11 + $0xac] sm:$0xf] }
  0x7e   : > { %v541_v58 = vsel %vm6747_vm4, %v536_v33, %v540_v45  ;;  %v558_v7 = vrot.slane %v556_v40, 4  ;;  %v564_v41 = vrot.slane %v562_v63, 5  ;;  %v5345_v17 = vrot.slane %v5329_v26, 9  ;;  %v7110_v33 = vld [vmem:[%s6721_s11 + $0xa8] sm:$0xf] }
  0x7f   : > { %v5077_v6 = vcombine.low %v531_v55, %v541_v58  ;;  %5939 = vmatmul.mubr.msk.bf16.gmra.mrb[4].mxu0 %vm688_vm3, %v5361_v54  ;;  %v549_v14 = vor.u32 %v548_v61, %v545_v57  ;;  %v2833_v18 = vrot.slane %v6851_v20, 5  ;;  %v2836_v21 = vrot.slane %v6856_v34, 5  ;;  %v249_v61 = vld [vmem:[%s6721_s11 + $0xb0] sm:$0x1] }
  0x80   : > { %v567_v25 = vshrl.u32 %v7078_v52, 16  ;;  %v559_v31 = vor.u32 %v558_v7, %v554_v2  ;;  %v570_v38 = vshll.u32 %v7078_v52, 16  ;;  %v576_v1 = vshll.u32 %v7089_v46, 16 }
  0x81   : > { %5785 = vmatmul.mubr.msk.bf16.gmra.mrb[20].mxu1 %vm688_vm3, %v5077_v6  ;;  %v580_v28 = vshrl.u32 %v7089_v46, 16  ;;  %v550_v60 = vrot.slane %v549_v14, 4  ;;  %v2834_v42 = vsel %vm6973_vm7, %v5345_v17, %v2833_v18  ;;  %v2835_v20 = vrot.slane %v2833_v18, 4  ;;  %v7130_v14 = vld [vmem:[%s6721_s11 + $0xb4] sm:$0xf] }
  0x82   : > { %v569_v44 = vrot.slane %v567_v25, 4  ;;  %v560_v34 = vrot.slane %v559_v31, 4  ;;  %v572_v45 = vrot.slane %v570_v38, 5  ;;  %v578_v47 = vrot.slane %v576_v1, 5 }
  0x83   : > { %v582_v26 = vrot.slane %v580_v28, 4  ;;  %v555_v48 = vsel %vm6747_vm4, %v550_v60, %v554_v2  ;;  %v2837_v49 = vsel %vm6973_vm7, %v2835_v20, %v2836_v21  ;;  %v586_v50 = vshll.u32 %v248_v10, 16  ;;  %v5331_v2 = vld [vmem:[%s6721_s11 + $0x54] sm:$0xe] }
  0x84   : > { %v5346_v51 = vrot.slane %v5330_v11, 9  ;;  %v565_v15 = vsel %vm6747_vm4, %v560_v34, %v564_v41  ;;  %v5362_v62 = vcombine.low %v2834_v42, %v2837_v49  ;;  %v573_v40 = vor.u32 %v572_v45, %v569_v44  ;;  %v7139_v42 = vld [vmem:[%s6721_s11 + $0xb8] sm:$0xf]  ;;  %v250_v49 = vld [vmem:[%s6721_s11 + $0xbc] sm:$0x1] }
  0x85   : > { %v583_v55 = vor.u32 %v582_v26, %v578_v47  ;;  %v5078_v57 = vcombine.low %v555_v48, %v565_v15  ;;  %v588_v63 = vrot.slane %v586_v50, 5  ;;  %v2840_v58 = vrot.slane %v6874_v8, 5 }
  0x86   : > { %v2843_v54 = vrot.slane %v6882_v23, 5  ;;  %5942 = vmatprep.mubr.msk.bf16.mxu0 %vm688_vm3, %v5362_v62  ;;  %v574_v6 = vrot.slane %v573_v40, 4  ;;  %v591_v41 = vshrl.u32 %v7110_v33, 16  ;;  %v594_v17 = vshll.u32 %v7110_v33, 16 }
  0x87   : > { %v584_v7 = vrot.slane %v583_v55, 4  ;;  %5788 = vmatprep.mubr.msk.bf16.mxu1 %vm688_vm3, %v5078_v57  ;;  %v2841_v10 = vsel %vm6973_vm7, %v5346_v51, %v2840_v58  ;;  %v2842_v11 = vrot.slane %v2840_v58, 4  ;;  %v600_v8 = vshll.u32 %v7115_v56, 16  ;;  %v5332_v55 = vld [vmem:[%s6721_s11 + $0x60] sm:$0xe] }
  0x88   : > { %v604_v23 = vshrl.u32 %v7115_v56, 16  ;;  %v579_v18 = vsel %vm6747_vm4, %v574_v6, %v578_v47  ;;  %v593_v25 = vrot.slane %v591_v41, 4  ;;  %v596_v31 = vrot.slane %v594_v17, 5  ;;  %v5333_v6 = vld [vmem:[%s6721_s11 + $0x6c] sm:$0xe] }
  0x89   : > { %v589_v21 = vsel %vm6747_vm4, %v584_v7, %v588_v63  ;;  %v2844_v1 = vsel %vm6973_vm7, %v2842_v11, %v2843_v54  ;;  %v602_v28 = vrot.slane %v600_v8, 5  ;;  %v610_v34 = vshll.u32 %v249_v61, 16  ;;  %v5269_v11 = vld [vmem:[%s6721_s11 + $0x70] sm:$0xf]  ;;  %v5270_v8 = vld [vmem:[%s6721_s11 + $0x74] sm:$0x1] }
  0x8a   : > { %v5079_v38 = vcombine.low %v579_v18, %v589_v21  ;;  %v606_v60 = vrot.slane %v604_v23, 4  ;;  %v5363_v20 = vcombine.low %v2841_v10, %v2844_v1  ;;  %v597_v44 = vor.u32 %v596_v31, %v593_v25 }
  0x8b   : > { %v5347_v45 = vrot.slane %v5331_v2, 9  ;;  %v2847_v26 = vrot.slane %v6905_v4, 5  ;;  %v2850_v48 = vrot.slane %v6911_v12, 5  ;;  %v615_v50 = vshrl.u32 %v7130_v14, 16 }
  0x8c   : > { %5789 = vmatmul.mubr.msk.bf16.gmra.mrb[24].mxu1 %vm688_vm3, %v5079_v38  ;;  %v607_v47 = vor.u32 %v606_v60, %v602_v28  ;;  %5943 = vmatmul.mubr.msk.bf16.gmra.mrb[8].mxu0 %vm688_vm3, %v5363_v20  ;;  %v598_v51 = vrot.slane %v597_v44, 4  ;;  %v612_v15 = vrot.slane %v610_v34, 5  ;;  %v618_v62 = vshll.u32 %v7130_v14, 16 }
  0x8d   : > { %v624_v40 = vshll.u32 %v7139_v42, 16  ;;  %v2848_v4 = vsel %vm6973_vm7, %v5347_v45, %v2847_v26  ;;  %v2849_v12 = vrot.slane %v2847_v26, 4  ;;  %v617_v63 = vrot.slane %v615_v50, 4 }
  0x8e   : > { %v608_v57 = vrot.slane %v607_v47, 4  ;;  %v603_v58 = vsel %vm6747_vm4, %v598_v51, %v602_v28  ;;  %v620_v54 = vrot.slane %v618_v62, 5  ;;  %v628_v2 = vshrl.u32 %v7139_v42, 16  ;;  %v5334_v47 = vld [vmem:[%s6721_s11 + $0x78] sm:$0xe] }
  0x8f   : > { %v626_v61 = vrot.slane %v624_v40, 5  ;;  %v2851_v41 = vsel %vm6973_vm7, %v2849_v12, %v2850_v48  ;;  %v634_v17 = vshll.u32 %v250_v49, 16  ;;  %v5348_v10 = vrot.slane %v5332_v55, 9  ;;  %v6447_v51 = vld [vmem:[%s6721_s11] sm:$0xf] }
  0x90   : > { %v613_v7 = vsel %vm6747_vm4, %v608_v57, %v612_v15  ;;  %v5364_v18 = vcombine.low %v2848_v4, %v2851_v41  ;;  %v621_v21 = vor.u32 %v620_v54, %v617_v63  ;;  %v630_v25 = vrot.slane %v628_v2, 4  ;;  %v7177_v15 = vld [vmem:[%s6721_s11 + $0x4] sm:$0xf]  ;;  %v7181_v40 = vld [vmem:[%s6721_s11 + $0x7c] sm:$0xf] }
  0x91   : > { %v5080_v23 = vcombine.low %v603_v58, %v613_v7  ;;  %v636_v31 = vrot.slane %v634_v17, 5  ;;  %v2854_v38 = vrot.slane %v6935_v59, 5  ;;  %v2857_v1 = vrot.slane %v6942_v9, 5  ;;  %v7184_v55 = vld [vmem:[%s6721_s11 + $0x80] sm:$0x1] }
  0x92   : > { %v5349_v28 = vrot.slane %v5333_v6, 9  ;;  %5946 = vmatprep.mubr.msk.bf16.mxu0 %vm688_vm3, %v5364_v18  ;;  %v622_v60 = vrot.slane %v621_v21, 4  ;;  %v631_v20 = vor.u32 %v630_v25, %v626_v61  ;;  %v2861_v44 = vrot.slane %v5269_v11, 5  ;;  %v5275_v57 = vld [vmem:[%s6721_s11 + $0x88] sm:$0xf] }
  0x93   : > { %5792 = vmatprep.mubr.msk.bf16.mxu1 %vm688_vm3, %v5080_v23  ;;  %v2864_v34 = vrot.slane %v5270_v8, 5  ;;  %v2855_v45 = vsel %vm6973_vm7, %v5348_v10, %v2854_v38  ;;  %v2856_v59 = vrot.slane %v2854_v38, 4  ;;  %v5098_v62 = vcombine.low %v6447_v51, %v7177_v15  ;;  %v5276_v54 = vld [vmem:[%s6721_s11 + $0x8c] sm:$0x1]  ;;  %v5278_v17 = vld [vmem:[%s6721_s11 + $0x94] sm:$0xf] }
  0x94   : > { %v627_v9 = vsel %vm6747_vm4, %v622_v60, %v626_v61  ;;  %v632_v26 = vrot.slane %v631_v20, 4  ;;  %v2862_v48 = vsel %vm6973_vm7, %v5349_v28, %v2861_v44  ;;  %v2863_v49 = vrot.slane %v2861_v44, 4  ;;  %v5335_v61 = vld [vmem:[%s6721_s11 + $0x84] sm:$0xe]  ;;  %v5336_v23 = vld [vmem:[%s6721_s11 + $0x90] sm:$0xe] }
  0x95   : > { %v2858_v50 = vsel %vm6973_vm7, %v2856_v59, %v2857_v1  ;;  %v5350_v58 = vrot.slane %v5334_v47, 9  ;;  %v2868_v7 = vrot.slane %v7181_v40, 5  ;;  %v2871_v41 = vrot.slane %v7184_v55, 5  ;;  %v5279_v25 = vld [vmem:[%s6721_s11 + $0x98] sm:$0x1] }
  0x96   : > { %v637_v4 = vsel %vm6747_vm4, %v632_v26, %v636_v31  ;;  %v5365_v12 = vcombine.low %v2855_v45, %v2858_v50  ;;  %v2865_v63 = vsel %vm6973_vm7, %v2863_v49, %v2864_v34  ;;  %v5351_v10 = vrot.slane %v5335_v61, 9  ;;  %v5281_v31 = vld [vmem:[%s6721_s11 + $0xa0] sm:$0xf]  ;;  %v5282_v60 = vld [vmem:[%s6721_s11 + $0xa4] sm:$0x1] }
  0x97   : > { %v5081_v2 = vcombine.low %v627_v9, %v637_v4  ;;  %v5366_v6 = vcombine.low %v2862_v48, %v2865_v63  ;;  %v2875_v11 = vrot.slane %v5275_v57, 5  ;;  %v2878_v8 = vrot.slane %v5276_v54, 5  ;;  %v5337_v20 = vld [vmem:[%s6721_s11 + $0x9c] sm:$0xe]  ;;  %v6449_v44 = vld [vmem:[%s6721_s11 + $0xc] sm:$0xf] }
  0x98   : > { %5947 = vmatmul.mubr.msk.bf16.gmra.mrb[12].mxu0 %vm688_vm3, %v5365_v12  ;;  %v2869_v18 = vsel %vm6973_vm7, %v5350_v58, %v2868_v7  ;;  %v2870_v21 = vrot.slane %v2868_v7, 4  ;;  %v2882_v28 = vrot.slane %v5278_v17, 5  ;;  %v7211_v34 = vld [vmem:[%s6721_s11 + $0x10] sm:$0xf]  ;;  %v6451_v47 = vld [vmem:[%s6721_s11 + $0x18] sm:$0xf] }
  0x99   : > { %5793 = vmatmul.mubr.msk.bf16.gmra.mrb[28].mxu1 %vm688_vm3, %v5081_v2  ;;  %5950 = vmatprep.mubr.msk.bf16.mxu0 %vm688_vm3, %v5366_v6  ;;  %v2876_v38 = vsel %vm6973_vm7, %v5351_v10, %v2875_v11  ;;  %v2877_v1 = vrot.slane %v2875_v11, 4  ;;  %v5099_v45 = vcombine.low %v6449_v44, %v7211_v34  ;;  %v7218_v9 = vld [vmem:[%s6721_s11 + $0x1c] sm:$0xf]  ;;  %v5352_v48 = vrot.slane %v5336_v23, 9  ;;  %v5284_v57 = vld [vmem:[%s6721_s11 + $0xac] sm:$0xf] }
  0x9a   : > { %5798 = vmatprep.mubr.msk.bf16.mxu1 %vm688_vm3, %v5098_v62  ;;  %v2872_v59 = vsel %vm6973_vm7, %v2870_v21, %v2871_v41  ;;  %v5100_v26 = vcombine.low %v6451_v47, %v7218_v9  ;;  %v2884_v51 = vrot.slane %v2882_v28, 4  ;;  %v2885_v62 = vrot.slane %v5279_v25, 5  ;;  %v6453_v54 = vld [vmem:[%s8538_s1 + $0x4] sm:$0x3]  ;;  %v5287_v2 = vld [vmem:[%s6721_s11 + $0xb8] sm:$0xf] }
  0x9b   : > { %v5367_v49 = vcombine.low %v2869_v18, %v2872_v59  ;;  %v2879_v50 = vsel %vm6973_vm7, %v2877_v1, %v2878_v8  ;;  %v5353_v12 = vrot.slane %v5337_v20, 9  ;;  %v2889_v63 = vrot.slane %v5281_v31, 5  ;;  %v7233_v7 = vld [vmem:[%s8538_s1 + $0x6] sm:$0x3]  ;;  %v5285_v10 = vld [vmem:[%s6721_s11 + $0xb0] sm:$0x1] }
  0x9c   : > { %v5368_v4 = vcombine.low %v2876_v38, %v2879_v50  ;;  %v2892_v58 = vrot.slane %v5282_v60, 5  ;;  %v1456_v61 = vsel %vm737_vm0, %v6453_v54, 0  ;;  %v2883_v41 = vsel %vm6973_vm7, %v5352_v48, %v2882_v28  ;;  %v5338_v11 = vld [vmem:[%s6721_s11 + $0xa8] sm:$0xe]  ;;  %v5288_v25 = vld [vmem:[%s6721_s11 + $0xbc] sm:$0x1] }
  0x9d   : > { %v2891_v6 = vrot.slane %v2889_v63, 4  ;;  %v2886_v17 = vsel %vm6973_vm7, %v2884_v51, %v2885_v62  ;;  %v2896_v8 = vrot.slane %v5284_v57, 5  ;;  %v2890_v23 = vsel %vm6973_vm7, %v5353_v12, %v2889_v63  ;;  %v5339_v31 = vld [vmem:[%s6721_s11 + $0xb4] sm:$0xe]  ;;  %v6454_v38 = vld [vmem:[%s6721_s11 + $0x24] sm:$0xf] }
  0x9e   : > { %v2903_v21 = vrot.slane %v5287_v2, 5  ;;  %v7254_v1 = vld [vmem:[%s6721_s11 + $0x28] sm:$0xf]  ;;  %v5369_v60 = vcombine.low %v2883_v41, %v2886_v17  ;;  %v5354_v44 = vrot.slane %v5338_v11, 9  ;;  %v2899_v59 = vrot.slane %v5285_v10, 5 }
  0x9f   : > { %v2893_v18 = vsel %vm6973_vm7, %v2891_v6, %v2892_v58  ;;  %v5101_v28 = vcombine.low %v6454_v38, %v7254_v1  ;;  %v6456_v47 = vld [vmem:[%s6721_s11 + $0x30] sm:$0xf]  ;;  %v2906_v51 = vrot.slane %v5288_v25, 5  ;;  %v5290_v62 = vld [vmem:[%s6721_s11 + $0xc4] sm:$0xf]  ;;  %v2291_v25 = vshrl.u32 %v7181_v40, 16 }
  0xa0   : > { %5951 = vmatmul.mubr.msk.bf16.gmra.mrb[16].mxu0 %vm688_vm3, %v5367_v49  ;;  %v5370_v20 = vcombine.low %v2890_v23, %v2893_v18  ;;  %v5355_v49 = vrot.slane %v5339_v31, 9  ;;  %v2905_v50 = vrot.slane %v2903_v21, 4  ;;  %v2897_v57 = vsel %vm6973_vm7, %v5354_v44, %v2896_v8  ;;  %v5340_v12 = vld [vmem:[%s6721_s11 + $0xc0] sm:$0xe]  ;;  %v6458_v41 = vld [vmem:[%s6721_s11 + $0x3c] sm:$0xf] }
  0xa1   : > { %5799 = vmatmul.mubr.msk.bf16.vlgmr.msra.gmra.mrb[0].mxu1 %vm688_vm3, %v5099_v45  ;;  %5954 = vmatprep.mubr.msk.bf16.mxu0 %vm688_vm3, %v5368_v4  ;;  %v2898_v45 = vrot.slane %v2896_v8, 4  ;;  %v2910_v63 = vrot.slane %v5290_v62, 5  ;;  %v5356_v6 = vrot.slane %v5340_v12, 9  ;;  %v7279_v17 = vld [vmem:[%s6721_s11 + $0x40] sm:$0xf]  ;;  %v5104_v18 = vcombine.low %v6886_v27, %v6889_v36  ;;  %v6410_v62 = vld [vmem:[%s6721_s11 + $0x24] sm:$0xff]  }
  0xa2   : > { %5831 = vmatpush3.bf16.msra.mxu1 %v1456_v61  ;;  %5802 = vmatprep.mubr.msk.bf16.mxu1 %vm688_vm3, %v5100_v26  ;;  %v7259_v26 = vld [vmem:[%s6721_s11 + $0x34] sm:$0xf]  ;;  %v2904_v58 = vsel %vm6973_vm7, %v5355_v49, %v2903_v21  ;;  %v2907_v54 = vsel %vm6973_vm7, %v2905_v50, %v2906_v51  ;;  %v5291_v61 = vld [vmem:[%s6721_s11 + $0xc8] sm:$0x1]  ;;  %v5103_v10 = vcombine.low %v6458_v41, %v7279_v17  ;;  %v2287_v21 = vshll.u32 %v7181_v40, 16 }
  0xa3   : > { %6329 = vmatprep.subr.msk.bf16.mxu1 %vm737_vm0, %v7233_v7  ;;  %v5102_v48 = vcombine.low %v6456_v47, %v7259_v26  ;;  %v2900_v4 = vsel %vm6973_vm7, %v2898_v45, %v2899_v59  ;;  %v5372_v11 = vcombine.low %v2904_v58, %v2907_v54  ;;  %v2912_v8 = vrot.slane %v2910_v63, 4  ;;  %v1194_v45 = vld [vmem:[%s6721_s11] sm:$0xe]  ;;  %v1195_v59 = vld [vmem:[%s6721_s11 + $0xc] sm:$0xe] }
  0xa4   : > { %v5371_v2 = vcombine.low %v2897_v57, %v2900_v4  ;;  %v2913_v23 = vrot.slane %v5291_v61, 5  ;;  %v2911_v31 = vsel %vm6973_vm7, %v5356_v6, %v2910_v63  ;;  %v7294_v27 = vrot.slane %v2287_v21, 5  ;;  %v1198_v41 = vld [vmem:[%s6721_s11 + $0x30] sm:$0xe] }
  0xa5   : > { %v2293_v36 = vrot.slane %v2291_v25, 4  ;;  %v5106_v44 = vcombine.low %v6946_v19, %v6952_v35  ;;  %v2297_v47 = vshll.u32 %v7184_v55, 16  ;;  %v5130_v19 = vrot.slane %v1194_v45, 9 }
  0xa6   : > { %v2914_v38 = vsel %vm6973_vm7, %v2912_v8, %v2913_v23  ;;  %8561 = vst [vmem:[#allocation9_spill] sm:$0xff] %v7294_v27  ;;  %v5131_v35 = vrot.slane %v1195_v59, 9  ;;  %v1261_v4 = vrot.slane %v7218_v9, 5  ;;  %v1268_v12 = vrot.slane %v7254_v1, 5  ;;  %v1199_v8 = vld [vmem:[%s6721_s11 + $0x3c] sm:$0xe] }
  0xa7   : > { %v5373_v40 = vcombine.low %v2911_v31, %v2914_v38  ;;  %v2294_v49 = vor.u32 %v2293_v36, %v7294_v27  ;;  %v7314_v51 = vrot.slane %v2297_v47, 5  ;;  %v5107_v58 = vcombine.low %v6967_v0, %v6980_v29  ;;  %v1200_v31 = vld [vmem:[%s6721_s11 + $0x48] sm:$0xe]  ;;  %v6464_v59 = vld [vmem:[%s6721_s11 + $0x38] sm:$0x1] }
  0xa8   : > { %5955 = vmatmul.mubr.msk.bf16.gmra.mrb[20].mxu0 %vm688_vm3, %v5369_v60  ;;  %v5105_v60 = vcombine.low %v6915_v24, %v6921_v37  ;;  %v6461_v24 = vld [vmem:[%s6721_s11 + $0x14] sm:$0x1]  ;;  %v4102_v54 = vsel %vm737_vm0, %v7038_v22, 0  ;;  %v5108_v61 = vcombine.low %v6999_v53, %v7006_v16  ;;  %v5109_v6 = vcombine.low %v7025_v39, %v7033_v43  ;;  %v6462_v16 = vld [vmem:[%s6721_s11 + $0x20] sm:$0x1] }
  0xa9   : > { %5803 = vmatmul.mubr.msk.bf16.gmra.mrb[4].mxu1 %vm688_vm3, %v5101_v28  ;;  %5958 = vmatprep.mubr.msk.bf16.mxu0 %vm688_vm3, %v5370_v20  ;;  %v1254_v28 = vrot.slane %v7211_v34, 5  ;;  %v6408_v20 = vld [vmem:[%s6721_s11 + $0x18] sm:$0xff]   ;;  %v6460_v34 = vld [vmem:[%s6721_s11 + $0x8] sm:$0x1]  ;;  %v1257_v37 = vrot.slane %v6461_v24, 5  ;;  %8562 = vst [vmem:[#allocation10_spill] sm:$0xff] %v7314_v51  ;;  %v5110_v9 = vcombine.low %v7057_v5, %v7069_v30 }
  0xaa   : > { %5806 = vmatprep.mubr.msk.bf16.mxu1 %vm688_vm3, %v5102_v48  ;;  %v1247_v48 = vrot.slane %v7177_v15, 5  ;;  %v1250_v50 = vrot.slane %v6460_v34, 5  ;;  %v1196_v15 = vld [vmem:[%s6721_s11 + $0x18] sm:$0xe]  ;;  %v7319_v63 = vrot.slane %v2294_v49, 4  ;;  %v1264_v22 = vrot.slane %v6462_v16, 5 }
  0xab   : > { %v1256_v55 = vrot.slane %v1254_v28, 4  ;;  %v5132_v1 = vrot.slane %v1196_v15, 9  ;;  %v7341_v29 = vsel %vm6973_vm7, %v5131_v35, %v1254_v28  ;;  %v1270_v25 = vrot.slane %v1268_v12, 4  ;;  %v5455_v24 = vld [vmem:[%s6721_s11 + $0x18] sm:$0xf] }
  0xac   : > { %v1249_v57 = vrot.slane %v1247_v48, 4  ;;  %8563 = vst [vmem:[#allocation11_spill] sm:$0xff] %v7319_v63  ;;  %v7337_v0 = vsel %vm6973_vm7, %v5130_v19, %v1247_v48  ;;  %v1278_v47 = vrot.slane %v6464_v59, 5  ;;  %v7378_v49 = vsel %vm737_vm0, %v7233_v7, 0  ;;  %v5456_v7 = vld [vmem:[%s6721_s11 + $0x1c] sm:$0xf] }
  0xad   : > { %v7345_v53 = vsel %vm6973_vm7, %v1256_v55, %v1257_v37  ;;  %v7382_v34 = vsel %vm6973_vm7, %v5132_v1, %v1261_v4  ;;  %v6414_v37 = vld [vmem:[%s6721_s11 + $0x3c] sm:$0xff]   ;;  %v5135_v35 = vrot.slane %v1199_v8, 9  ;;  %v6465_v55 = vld [vmem:[%s6721_s11 + $0x44] sm:$0x1]  ;;  %v3623_v8 = vshll.u32 %v5455_v24, 16 }
  0xae   : > { %v7356_v23 = vsel %vm6973_vm7, %v1249_v57, %v1250_v50  ;;  %v1201_v50 = vld [vmem:[%s6721_s11 + $0x54] sm:$0xe]  ;;  %v1285_v15 = vrot.slane %v6465_v55, 5  ;;  %v5459_v39 = vld [vmem:[%s6721_s11 + $0x28] sm:$0xf] }
  0xaf   : > { %v6472_v5 = vld [vmem:[%s6721_s11 + $0x70] sm:$0xf] }
  0xb0   : > { %5959 = vmatmul.mubr.msk.bf16.gmra.mrb[24].mxu0 %vm688_vm3, %v5371_v2  ;;  %v1197_v2 = vld [vmem:[%s6721_s11 + $0x24] sm:$0xe]  ;;  %v1310_v30 = vrot.slane %v6472_v5, 5 }
  0xb1   : > { %5807 = vmatmul.mubr.msk.bf16.gmra.mrb[8].mxu1 %vm688_vm3, %v5103_v10  ;;  %5962 = vmatprep.mubr.msk.bf16.mxu0 %vm688_vm3, %v5372_v11  ;;  %v1275_v10 = vrot.slane %v7259_v26, 5  ;;  %v6412_v11 = vld [vmem:[%s6721_s11 + $0x30] sm:$0xff]   ;;  %v5133_v21 = vrot.slane %v1197_v2, 9 }
  0xb2   : > { %5810 = vmatprep.mubr.msk.bf16.mxu1 %vm688_vm3, %v5104_v18  ;;  %v7352_v26 = vld [vmem:[%s8538_s1 + $0x10] sm:$0x3]  ;;  %v1263_v18 = vrot.slane %v1261_v4, 4  ;;  %v1312_v48 = vrot.slane %v1310_v30, 4 }
  0xb3   : > { %v1277_v45 = vrot.slane %v1275_v10, 4  ;;  %v7389_v19 = vsel %vm6973_vm7, %v5133_v21, %v1268_v12  ;;  %v3633_v21 = vshrl.u32 %v5456_v7, 16 }
  0xb4   : > { %v7398_v4 = vsel %vm6973_vm7, %v1263_v18, %v1264_v22  ;;  %v3620_v22 = vshrl.u32 %v5455_v24, 16  ;;  %v3629_v18 = vshll.u32 %v5456_v7, 16  ;;  %v5458_v24 = vld [vmem:[%s6721_s11 + $0x24] sm:$0xf] }
  0xb5   : > { %v7411_v1 = vsel %vm6973_vm7, %v1277_v45, %v1278_v47 }
  0xb6   : > { %v3622_v43 = vrot.slane %v3620_v22, 4  ;;  %v7453_v7 = vrot.slane %v3629_v18, 5  ;;  %v3647_v22 = vshll.u32 %v5458_v24, 16  ;;  %v3657_v18 = vshrl.u32 %v5459_v39, 16 }
  0xb8   : > { %5963 = vmatmul.mubr.msk.bf16.gmra.mrb[28].mxu0 %vm688_vm3, %v5373_v40  ;;  %v6463_v40 = vld [vmem:[%s6721_s11 + $0x2c] sm:$0x1]  ;;  %v3649_v27 = vrot.slane %v3647_v22, 5 }
  0xb9   : > { %5811 = vmatmul.mubr.msk.bf16.gmra.mrb[12].mxu1 %vm688_vm3, %v5105_v60  ;;  %5968 = vmatprep.mubr.msk.bf16.mxu0 %vm688_vm3, %v6408_v20  ;;  %v1271_v28 = vrot.slane %v6463_v40, 5  ;;  %v1282_v60 = vrot.slane %v7279_v17, 5  ;;  %v6468_v40 = vld [vmem:[%s6721_s11 + $0x50] sm:$0x1]  ;;  %v6473_v17 = vld [vmem:[%s6721_s11 + $0x74] sm:$0x1] }
  0xba   : > { %5814 = vmatprep.mubr.msk.bf16.mxu1 %vm688_vm3, %v5106_v44  ;;  %v5134_v44 = vrot.slane %v1198_v41, 9  ;;  %v5137_v41 = vrot.slane %v1201_v50, 9  ;;  %v1202_v50 = vld [vmem:[%s6721_s11 + $0x60] sm:$0xe]  ;;  %v5460_v20 = vld [vmem:[%s6721_s11 + $0x2c] sm:$0x1] }
  0xbb   : > { %v1284_v12 = vrot.slane %v1282_v60, 4  ;;  %v7424_v45 = vsel %vm6973_vm7, %v5135_v35, %v1282_v60  ;;  %v6469_v35 = vld [vmem:[%s6721_s11 + $0x5c] sm:$0x1] }
  0xbc   : > { %v7407_v2 = vsel %vm6973_vm7, %v5134_v44, %v1275_v10  ;;  %v1299_v55 = vrot.slane %v6469_v35, 5  ;;  %v1203_v35 = vld [vmem:[%s6721_s11 + $0x6c] sm:$0xe] }
  0xbd   : > { %v7428_v59 = vsel %vm6973_vm7, %v1284_v12, %v1285_v15  ;;  %v6470_v15 = vld [vmem:[%s6721_s11 + $0x64] sm:$0xf]  ;;  %v3635_v12 = vrot.slane %v3633_v21, 4  ;;  %v5139_v5 = vrot.slane %v1203_v35, 9 }
  0xbe   : > { %v6420_v21 = vld [vmem:[%s6721_s11 + $0x60] sm:$0xff]  }
  0xc0   : > { %5969 = vmatmul.mubr.msk.bf16.vlgmr.msra.gmra.mrb[0].mxu0 %vm688_vm3, %v6410_v62  ;;  %v6466_v62 = vld [vmem:[%s6721_s11 + $0x4c] sm:$0xf] }
  0xc1   : > { %5815 = vmatmul.mubr.msk.bf16.gmra.mrb[16].mxu1 %vm688_vm3, %v5107_v58  ;;  %6001 = vmatpush3.bf16.msra.mxu0 %v4102_v54  ;;  %v1289_v57 = vrot.slane %v6466_v62, 5  ;;  %v7402_v58 = vsel %vm6973_vm7, %v1270_v25, %v1271_v28  ;;  %v5136_v54 = vrot.slane %v1200_v31, 9  ;;  %v1292_v28 = vrot.slane %v6468_v40, 5 }
  0xc2   : > { %5818 = vmatprep.mubr.msk.bf16.mxu1 %vm688_vm3, %v5108_v61  ;;  %5972 = vmatprep.mubr.msk.bf16.mxu0 %vm688_vm3, %v6412_v11  ;;  %v6416_v61 = vld [vmem:[%s6721_s11 + $0x48] sm:$0xff]   ;;  %v6467_v11 = vld [vmem:[%s6721_s11 + $0x58] sm:$0xf]  ;;  %v1303_v62 = vrot.slane %v6470_v15, 5  ;;  %v5462_v15 = vld [vmem:[%s6721_s11 + $0x34] sm:$0xf] }
  0xc3   : > { %6335 = vmatprep.subr.msk.bf16.mxu0 %vm737_vm0, %v7352_v26  ;;  %v1296_v16 = vrot.slane %v6467_v11, 5  ;;  %v1291_v31 = vrot.slane %v1289_v57, 4  ;;  %v7432_v47 = vsel %vm6973_vm7, %v5136_v54, %v1289_v57  ;;  %v5457_v57 = vld [vmem:[%s6721_s11 + $0x20] sm:$0x1]  ;;  %v5461_v54 = vld [vmem:[%s6721_s11 + $0x30] sm:$0xf] }
  0xc4   : > { %v5138_v11 = vrot.slane %v1202_v50, 9  ;;  %v3671_v50 = vshll.u32 %v5461_v54, 16  ;;  %v3639_v25 = vshll.u32 %v5457_v57, 16  ;;  %v3677_v36 = vshll.u32 %v5462_v15, 16 }
  0xc5   : > { %v7443_v60 = vsel %vm6973_vm7, %v5137_v41, %v1296_v16  ;;  %v7459_v41 = vsel %vm6973_vm7, %v1291_v31, %v1292_v28  ;;  %v1305_v31 = vrot.slane %v1303_v62, 4  ;;  %v3668_v28 = vshrl.u32 %v5461_v54, 16 }
  0xc6   : > { %v7501_v35 = vrot.slane %v3677_v36, 5 }
  0xc8   : > { %5973 = vmatmul.mubr.msk.bf16.gmra.mrb[4].mxu0 %vm688_vm3, %v6414_v37  ;;  %v1298_v37 = vrot.slane %v1296_v16, 4  ;;  %v6471_v16 = vld [vmem:[%s6721_s11 + $0x68] sm:$0x1] }
  0xc9   : > { %5819 = vmatmul.mubr.msk.bf16.gmra.mrb[20].mxu1 %vm688_vm3, %v5109_v6  ;;  %5976 = vmatprep.mubr.msk.bf16.mxu0 %vm688_vm3, %v6416_v61  ;;  %v3625_v6 = vrot.slane %v3623_v8, 5  ;;  %v6418_v61 = vld [vmem:[%s6721_s11 + $0x54] sm:$0xff]   ;;  %v1306_v40 = vrot.slane %v6471_v16, 5  ;;  %v3653_v8 = vshll.u32 %v5459_v39, 16  ;;  %v3636_v16 = vor.u32 %v3635_v12, %v7453_v7 }
  0xca   : > { %5822 = vmatprep.mubr.msk.bf16.mxu1 %vm688_vm3, %v5110_v9  ;;  %v3644_v9 = vshrl.u32 %v5458_v24, 16  ;;  %v7468_v44 = vsel %vm6973_vm7, %v1298_v37, %v1299_v55  ;;  %v1313_v24 = vrot.slane %v6473_v17, 5  ;;  %v3681_v39 = vshrl.u32 %v5462_v15, 16 }
  0xcb   : > { %v3626_v10 = vor.u32 %v3625_v6, %v3622_v43  ;;  %v7474_v37 = vrot.slane %v3653_v8, 5  ;;  %v3659_v55 = vrot.slane %v3657_v18, 4  ;;  %v8564_v43 = vcombine.low %v7078_v52, %v7089_v46  ;;  %v6474_v8 = vld [vmem:[%s6721_s11 + $0x7c] sm:$0xf]  ;;  %v7510_v18 = vld [vmem:[%s6721_s11 + $0x38] sm:$0x1] }
  0xcc   : > { %v3646_v38 = vrot.slane %v3644_v9, 4  ;;  %v7483_v17 = vsel %vm6973_vm7, %v5138_v11, %v1303_v62  ;;  %v7487_v57 = vsel %vm6973_vm7, %v1305_v31, %v1306_v40  ;;  %v3670_v6 = vrot.slane %v3668_v28, 4  ;;  %8566 = vst [vmem:[#allocation12_spill] sm:$0xff] %v7510_v18 }
  0xcd   : > { %v3673_v12 = vrot.slane %v3671_v50, 5  ;;  %v8565_v52 = vcombine.low %v7110_v33, %v7115_v56  ;;  %v3627_v46 = vrot.slane %v3626_v10, 4  ;;  %v3637_v54 = vrot.slane %v3636_v16, 4  ;;  %v6422_v33 = vld [vmem:[%s6721_s11 + $0x6c] sm:$0xff]   ;;  %v1205_v16 = vld [vmem:[%s6721_s11 + $0x84] sm:$0xe] }
  0xce   : > { %v3663_v62 = vshll.u32 %v5460_v20, 16  ;;  %v7495_v11 = vsel %vm6973_vm7, %v5139_v5, %v1310_v30  ;;  %v7499_v40 = vsel %vm6973_vm7, %v1312_v48, %v1313_v24  ;;  %v3683_v9 = vrot.slane %v3681_v39, 4  ;;  %v6423_v48 = vld [vmem:[%s6721_s11 + $0x78] sm:$0xff]  }
  0xcf   : > { %v3650_v10 = vor.u32 %v3649_v27, %v3646_v38  ;;  %v3660_v20 = vor.u32 %v3659_v55, %v7474_v37  ;;  %v1317_v30 = vrot.slane %v6474_v8, 5  ;;  %v3674_v38 = vor.u32 %v3673_v12, %v3670_v6  ;;  %v5464_v5 = vld [vmem:[%s6721_s11 + $0x3c] sm:$0xf] }
  0xd0   : > { %5977 = vmatmul.mubr.msk.bf16.gmra.mrb[8].mxu0 %vm688_vm3, %v6418_v61  ;;  %v3641_v61 = vrot.slane %v3639_v25, 5  ;;  %v1204_v25 = vld [vmem:[%s6721_s11 + $0x78] sm:$0xe]  ;;  %v7526_v50 = vrot.slane %v3663_v62, 5  ;;  %v3684_v39 = vor.u32 %v3683_v9, %v7501_v35  ;;  %v3687_v55 = vshll.u32 %v7510_v18, 16 }
  0xd1   : > { %5823 = vmatmul.mubr.msk.bf16.gmra.mrb[24].mxu1 %vm688_vm3, %v8564_v43  ;;  %5980 = vmatprep.mubr.msk.bf16.mxu0 %vm688_vm3, %v6420_v21  ;;  %v3632_v21 = vsel %vm6747_vm4, %v3627_v46, %v7453_v7  ;;  %v5140_v24 = vrot.slane %v1204_v25, 9  ;;  %v6475_v43 = vld [vmem:[%s6721_s11 + $0x88] sm:$0xf]  ;;  %v7534_v7 = vld [vmem:[%s6721_s11 + $0x40] sm:$0xf]  ;;  %v3651_v12 = vrot.slane %v3650_v10, 4  ;;  %v8568_v62 = vcombine.low %v7130_v14, %v7139_v42 }
  0xd2   : > { %5826 = vmatprep.mubr.msk.bf16.mxu1 %vm688_vm3, %v8565_v52  ;;  %v3642_v31 = vsel %vm6747_vm4, %v3637_v54, %v3641_v61  ;;  %v1324_v6 = vrot.slane %v6475_v43, 5  ;;  %8567 = vst [vmem:[#allocation13_spill] sm:$0xff] %v7534_v7  ;;  %v3661_v52 = vrot.slane %v3660_v20, 4  ;;  %v1319_v46 = vrot.slane %v1317_v30, 4  ;;  %v6476_v54 = vld [vmem:[%s6721_s11 + $0x80] sm:$0x1] }
  0xd3   : > { %v1320_v61 = vrot.slane %v6476_v54, 5  ;;  %v3675_v9 = vrot.slane %v3674_v38, 4  ;;  %v5141_v25 = vrot.slane %v1205_v16, 9  ;;  %v3692_v8 = vshrl.u32 %v5464_v5, 16  ;;  %v6424_v10 = vld [vmem:[%s6721_s11 + $0x84] sm:$0xff]  }
  0xd4   : > { %v3695_v43 = vshll.u32 %v5464_v5, 16  ;;  %v7548_v20 = vcombine.low %v3632_v21, %v3642_v31  ;;  %v7552_v14 = vsel %vm737_vm0, %v7352_v26, 0  ;;  %v3705_v38 = vshrl.u32 %v7534_v7, 16  ;;  %v6425_v21 = vld [vmem:[%s6721_s11 + $0x90] sm:$0xff]   ;;  %v6481_v18 = vld [vmem:[%s6721_s11 + $0xa0] sm:$0xf] }
  0xd5   : > { %v3685_v16 = vrot.slane %v3684_v39, 4  ;;  %v3689_v5 = vrot.slane %v3687_v55, 5  ;;  %v1326_v54 = vrot.slane %v1324_v6, 4  ;;  %v3656_v31 = vsel %vm6747_vm4, %v3651_v12, %v7474_v37 }
  0xd6   : > { %v3666_v26 = vsel %vm6747_vm4, %v3661_v52, %v7526_v50  ;;  %v7567_v39 = vsel %vm6973_vm7, %v5140_v24, %v1317_v30  ;;  %v7571_v55 = vsel %vm6973_vm7, %v1319_v46, %v1320_v61  ;;  %v3680_v37 = vsel %vm6747_vm4, %v3675_v9, %v7501_v35  ;;  %v5470_v30 = vld [vmem:[%s6721_s11 + $0x54] sm:$0xf]  ;;  %v7588_v24 = vld [vmem:[%s6721_s11 + $0x58] sm:$0xf]  ;;  %v7593_v61 = vld [vmem:[%s6721_s11 + $0x90] sm:$0xe] }
  0xd7   : > { %v7584_v12 = vsel %vm6973_vm7, %v5141_v25, %v1324_v6  ;;  %v3694_v50 = vrot.slane %v3692_v8, 4  ;;  %v3697_v52 = vrot.slane %v3695_v43, 5  ;;  %v3707_v46 = vrot.slane %v3705_v38, 4 }
  0xd8   : > { %5981 = vmatmul.mubr.msk.bf16.gmra.mrb[12].mxu0 %vm688_vm3, %v6422_v33  ;;  %v8569_v33 = vcombine.low %v7337_v0, %v7356_v23  ;;  %v6477_v0 = vld [vmem:[%s6721_s11 + $0x8c] sm:$0x1]  ;;  %v3690_v36 = vsel %vm6747_vm4, %v3685_v16, %v3689_v5  ;;  %v3740_v25 = vshrl.u32 %v5470_v30, 16  ;;  %v3743_v8 = vshll.u32 %v5470_v30, 16 }
  0xd9   : > { %5827 = vmatmul.mubr.msk.bf16.gmra.mrb[28].mxu1 %vm688_vm3, %v8568_v62  ;;  %5984 = vmatprep.mubr.msk.bf16.mxu0 %vm688_vm3, %v6423_v48  ;;  %v3701_v48 = vshll.u32 %v7534_v7, 16  ;;  %v1327_v23 = vrot.slane %v6477_v0, 5  ;;  %v5467_v62 = vld [vmem:[%s6721_s11 + $0x48] sm:$0xf]  ;;  %v7577_v0 = vld [vmem:[%s6721_s11 + $0x4c] sm:$0xf]  ;;  %v8571_v38 = vcombine.low %v7341_v29, %v7345_v53  ;;  %v7611_v16 = vcombine.low %v3656_v31, %v3666_v26 }
  0xda   : > { %5832 = vmatprep.mubr.msk.bf16.mxu1 %vm688_vm3, %v8569_v33  ;;  %v7574_v33 = vld [vmem:[%s6721_s11 + $0x44] sm:$0x1]  ;;  %v3716_v27 = vshrl.u32 %v5467_v62, 16  ;;  %v3719_v15 = vshll.u32 %v5467_v62, 16  ;;  %v3725_v6 = vshll.u32 %v7577_v0, 16  ;;  %v3729_v9 = vshrl.u32 %v7577_v0, 16 }
  0xdb   : > { %8570 = vst [vmem:[#allocation14_spill] sm:$0xff] %v7574_v33  ;;  %v7590_v28 = vrot.slane %v3701_v48, 5  ;;  %v7599_v35 = vsel %vm6973_vm7, %v1326_v54, %v1327_v23  ;;  %v3749_v43 = vshll.u32 %v7588_v24, 16  ;;  %v3753_v48 = vshrl.u32 %v7588_v24, 16  ;;  %v5473_v31 = vld [vmem:[%s6721_s11 + $0x60] sm:$0xf] }
  0xdc   : > { %v3711_v5 = vshll.u32 %v7574_v33, 16  ;;  %v5142_v54 = vrot.slane %v7593_v61, 9  ;;  %v8572_v23 = vcombine.low %v7382_v34, %v7398_v4  ;;  %v7622_v29 = vcombine.low %v3680_v37, %v3690_v36  ;;  %v6426_v26 = vld [vmem:[%s6721_s11 + $0x9c] sm:$0xff]   ;;  %v6427_v30 = vld [vmem:[%s6721_s11 + $0xa8] sm:$0xff]  }
  0xdd   : > { %v3698_v53 = vor.u32 %v3697_v52, %v3694_v50  ;;  %v3718_v62 = vrot.slane %v3716_v27, 4  ;;  %v7633_v34 = vrot.slane %v3725_v6, 5  ;;  %v3731_v4 = vrot.slane %v3729_v9, 4  ;;  %v6478_v36 = vld [vmem:[%s8538_s1 + $0x8] sm:$0x3] }
  0xde   : > { %v3742_v27 = vrot.slane %v3740_v25, 4  ;;  %v3745_v37 = vrot.slane %v3743_v8, 5  ;;  %v7642_v50 = vrot.slane %v3749_v43, 5  ;;  %v3755_v52 = vrot.slane %v3753_v48, 4  ;;  %v6479_v6 = vld [vmem:[%s6721_s11 + $0x94] sm:$0xf] }
  0xdf   : > { %v7648_v9 = vld [vmem:[%s6721_s11 + $0x64] sm:$0xf]  ;;  %v3764_v61 = vshrl.u32 %v5473_v31, 16  ;;  %v7650_v22 = vrot.slane %v3698_v53, 4  ;;  %v1338_v25 = vrot.slane %v6481_v18, 5  ;;  %v3732_v43 = vor.u32 %v3731_v4, %v7633_v34 }
  0xe0   : > { %5985 = vmatmul.mubr.msk.bf16.gmra.mrb[16].mxu0 %vm688_vm3, %v6424_v10  ;;  %8573 = vst [vmem:[#allocation15_spill] sm:$0xff] %v7648_v9  ;;  %v3767_v10 = vshll.u32 %v5473_v31, 16  ;;  %v3746_v31 = vor.u32 %v3745_v37, %v3742_v27  ;;  %v3756_v53 = vor.u32 %v3755_v52, %v7642_v50  ;;  %v8574_v18 = vcombine.low %v7389_v19, %v7402_v58  ;;  %v6428_v37 = vld [vmem:[%s6721_s11 + $0xb4] sm:$0xff]  }
  0xe1   : > { %5833 = vmatmul.mubr.msk.bf16.vlgmr.msra.gmra.mrb[0].mxu1 %vm688_vm3, %v8571_v38  ;;  %5988 = vmatprep.mubr.msk.bf16.mxu0 %vm688_vm3, %v6425_v21  ;;  %v3721_v21 = vrot.slane %v3719_v15, 5  ;;  %v7631_v38 = vld [vmem:[%s6721_s11 + $0x50] sm:$0x1]  ;;  %v7640_v15 = vld [vmem:[%s6721_s11 + $0x5c] sm:$0x1]  ;;  %v8575_v27 = vcombine.low %v7407_v2, %v7411_v1  ;;  %v1340_v52 = vrot.slane %v1338_v25, 4 }
  0xe2   : > { %5865 = vmatpush3.bf16.msra.mxu1 %v7378_v49  ;;  %5836 = vmatprep.mubr.msk.bf16.mxu1 %vm688_vm3, %v8572_v23  ;;  %v3708_v49 = vor.u32 %v3707_v46, %v7590_v28  ;;  %v7644_v46 = vrot.slane %v3711_v5, 5  ;;  %v1331_v23 = vrot.slane %v6479_v6, 5  ;;  %v3735_v48 = vshll.u32 %v7631_v38, 16  ;;  %v1207_v5 = vld [vmem:[%s6721_s11 + $0x9c] sm:$0xe] }
  0xe3   : > { %6331 = vmatprep.subr.msk.bf16.mxu1 %vm737_vm0, %v6478_v36  ;;  %v6480_v36 = vld [vmem:[%s6721_s11 + $0x98] sm:$0x1]  ;;  %v3722_v7 = vor.u32 %v3721_v21, %v3718_v62  ;;  %v3759_v6 = vshll.u32 %v7640_v15, 16  ;;  %v3777_v62 = vshrl.u32 %v7648_v9, 16  ;;  %v3769_v4 = vrot.slane %v3767_v10, 5 }
  0xe4   : > { %v1334_v33 = vrot.slane %v6480_v36, 5  ;;  %v3709_v8 = vrot.slane %v3708_v49, 4  ;;  %v3773_v36 = vshll.u32 %v7648_v9, 16  ;;  %v7669_v21 = vsel %vm6973_vm7, %v5142_v54, %v1331_v23  ;;  %v7680_v2 = vld [vmem:[%s6721_s11 + $0x68] sm:$0x1] }
  0xe5   : > { %v3766_v49 = vrot.slane %v3764_v61, 4  ;;  %v3723_v19 = vrot.slane %v3722_v7, 4  ;;  %v5143_v58 = vrot.slane %v1207_v5, 9  ;;  %v3733_v3 = vrot.slane %v3732_v43, 4  ;;  %8576 = vst [vmem:[#allocation16_spill] sm:$0xff] %v7680_v2  ;;  %v6429_v5 = vld [vmem:[%s6721_s11 + $0xc0] sm:$0xff]  }
  0xe6   : > { %v3737_v54 = vrot.slane %v3735_v48, 5  ;;  %v3761_v63 = vrot.slane %v3759_v6, 5  ;;  %v1345_v61 = vrot.slane %v7115_v56, 5  ;;  %v3747_v10 = vrot.slane %v3746_v31, 4  ;;  %v1209_v31 = vld [vmem:[%s6721_s11 + $0xb4] sm:$0xe] }
  0xe7   : > { %v3757_v51 = vrot.slane %v3756_v53, 4  ;;  %v7682_v1 = vrot.slane %v3773_v36, 5  ;;  %v3779_v7 = vrot.slane %v3777_v62, 4  ;;  %v3704_v43 = vsel %vm6747_vm4, %v7650_v22, %v7590_v28  ;;  %v6483_v62 = vld [vmem:[%s6721_s11 + $0xb0] sm:$0x1] }
  0xe8   : > { %5989 = vmatmul.mubr.msk.bf16.gmra.mrb[20].mxu0 %vm688_vm3, %v6426_v26  ;;  %v1333_v26 = vrot.slane %v1331_v23, 4  ;;  %v1208_v23 = vld [vmem:[%s6721_s11 + $0xa8] sm:$0xe]  ;;  %v3714_v48 = vsel %vm6747_vm4, %v3709_v8, %v7644_v46  ;;  %v3770_v6 = vor.u32 %v3769_v4, %v3766_v49  ;;  %v3728_v53 = vsel %vm6747_vm4, %v3723_v19, %v7633_v34  ;;  %v5476_v46 = vld [vmem:[%s6721_s11 + $0x6c] sm:$0xf] }
  0xe9   : > { %5837 = vmatmul.mubr.msk.bf16.gmra.mrb[4].mxu1 %vm688_vm3, %v8574_v18  ;;  %5992 = vmatprep.mubr.msk.bf16.mxu0 %vm688_vm3, %v6427_v30  ;;  %v6482_v18 = vld [vmem:[%s6721_s11 + $0xa4] sm:$0x1]  ;;  %v7702_v36 = vsel %vm6973_vm7, %v5143_v58, %v1338_v25  ;;  %v5144_v28 = vrot.slane %v1208_v23, 9  ;;  %v1347_v8 = vrot.slane %v1345_v61, 4  ;;  %v3783_v49 = vshll.u32 %v7680_v2, 16 }
  0xea   : > { %5840 = vmatprep.mubr.msk.bf16.mxu1 %vm688_vm3, %v8575_v27  ;;  %v1341_v30 = vrot.slane %v6482_v18, 5  ;;  %v7694_v56 = vsel %vm6973_vm7, %v1333_v26, %v1334_v33  ;;  %v3738_v33 = vsel %vm6747_vm4, %v3733_v3, %v3737_v54  ;;  %v1348_v26 = vrot.slane %v6483_v62, 5  ;;  %v5479_v18 = vld [vmem:[%s6721_s11 + $0x78] sm:$0xf]  ;;  %v7757_v54 = vld [vmem:[%s6721_s11 + $0xbc] sm:$0x1] }
  0xeb   : > { %v3752_v34 = vsel %vm6747_vm4, %v3747_v10, %v7642_v50  ;;  %v3762_v25 = vsel %vm6747_vm4, %v3757_v51, %v3761_v63  ;;  %v3780_v4 = vor.u32 %v3779_v7, %v7682_v1  ;;  %v5145_v27 = vrot.slane %v1209_v31, 9  ;;  %v7731_v51 = vld [vmem:[%s6721_s11 + $0x70] sm:$0xf]  ;;  %v7761_v10 = vld [vmem:[%s6721_s11 + $0x7c] sm:$0xf] }
  0xec   : > { %v7706_v22 = vsel %vm6973_vm7, %v1340_v52, %v1341_v30  ;;  %v8578_v3 = vcombine.low %v7424_v45, %v7428_v59  ;;  %v7727_v19 = vrot.slane %v3770_v6, 4  ;;  %v1352_v50 = vrot.slane %v7139_v42, 5  ;;  %8579 = vst [vmem:[#allocation18_spill] sm:$0xff] %v7731_v51  ;;  %8581 = vst [vmem:[#allocation19_spill] sm:$0xff] %v7761_v10  ;;  %v5482_v7 = vld [vmem:[%s6721_s11 + $0x84] sm:$0xf] }
  0xed   : > { %8577 = vst [vmem:[#allocation17_spill] sm:$0xff] %v7706_v22  ;;  %v3788_v63 = vshrl.u32 %v5476_v46, 16  ;;  %v8580_v45 = vcombine.low %v7432_v47, %v7459_v41  ;;  %v7739_v58 = vcombine.low %v3728_v53, %v3738_v33  ;;  %v7745_v42 = vsel %vm6973_vm7, %v5144_v28, %v1345_v61  ;;  %v6430_v61 = vld [vmem:[%s6721_s11 + $0xcc] sm:$0xff]   ;;  %v7773_v31 = vld [vmem:[%s6721_s11 + $0x88] sm:$0xf] }
  0xee   : > { %v7748_v30 = vcombine.low %v3752_v34, %v3762_v25  ;;  %v7752_v47 = vsel %vm6973_vm7, %v1347_v8, %v1348_v26  ;;  %v7754_v41 = vrot.slane %v3783_v49, 5  ;;  %v3797_v6 = vshll.u32 %v7731_v51, 16  ;;  %8582 = vst [vmem:[#allocation20_spill] sm:$0xff] %v7773_v31  ;;  %v5485_v62 = vld [vmem:[%s6721_s11 + $0x90] sm:$0xf] }
  0xef   : > { %v7779_v28 = vrot.slane %v1352_v50, 4  ;;  %v7781_v33 = vrot.slane %v3788_v63, 4  ;;  %v3801_v8 = vshrl.u32 %v7731_v51, 16  ;;  %v3812_v26 = vshrl.u32 %v5479_v18, 16  ;;  %v7788_v25 = vld [vmem:[%s6721_s11 + $0x94] sm:$0xf] }
  0xf0   : > { %5993 = vmatmul.mubr.msk.bf16.gmra.mrb[24].mxu0 %vm688_vm3, %v6428_v37  ;;  %v7725_v37 = vcombine.low %v3704_v43, %v3714_v48  ;;  %v7769_v43 = vsel %vm6973_vm7, %v5145_v27, %v1352_v50  ;;  %v3791_v48 = vshll.u32 %v5476_v46, 16  ;;  %v3815_v49 = vshll.u32 %v5479_v18, 16  ;;  %8583 = vst [vmem:[#allocation21_spill] sm:$0xff] %v7788_v25  ;;  %v7826_v2 = vld [vmem:[%s6721_s11 + $0x8c] sm:$0x1] }
  0xf1   : > { %5841 = vmatmul.mubr.msk.bf16.gmra.mrb[8].mxu1 %vm688_vm3, %v8578_v3  ;;  %5996 = vmatprep.mubr.msk.bf16.mxu0 %vm688_vm3, %v6429_v5  ;;  %v7765_v5 = vrot.slane %v3780_v4, 4  ;;  %v3821_v46 = vshll.u32 %v7761_v10, 16  ;;  %v3825_v34 = vshrl.u32 %v7761_v10, 16  ;;  %v3836_v4 = vshrl.u32 %v5482_v7, 16 }
  0xf2   : > { %5844 = vmatprep.mubr.msk.bf16.mxu1 %vm688_vm3, %v8580_v45  ;;  %v3839_v27 = vshll.u32 %v5482_v7, 16  ;;  %v3845_v3 = vshll.u32 %v7773_v31, 16  ;;  %v3849_v50 = vshrl.u32 %v7773_v31, 16  ;;  %v7798_v45 = vld [vmem:[%s6721_s11 + $0x74] sm:$0x1]  ;;  %v3793_v18 = vrot.slane %v3791_v48, 5 }
  0xf3   : > { %v3860_v52 = vshrl.u32 %v5485_v62, 16  ;;  %v3863_v53 = vshll.u32 %v5485_v62, 16  ;;  %v8584_v7 = vcombine.low %v7443_v60, %v7468_v44  ;;  %v3803_v59 = vrot.slane %v3801_v8, 4  ;;  %v5488_v48 = vld [vmem:[%s6721_s11 + $0x9c] sm:$0xf] }
  0xf4   : > { %v3869_v63 = vshll.u32 %v7788_v25, 16  ;;  %v3873_v23 = vshrl.u32 %v7788_v25, 16  ;;  %v8585_v62 = vcombine.low %v7483_v17, %v7487_v57  ;;  %v7816_v44 = vld [vmem:[%s6721_s11 + $0x80] sm:$0x1]  ;;  %v3814_v60 = vrot.slane %v3812_v26, 4 }
  0xf5   : > { %8586 = vst [vmem:[#allocation22_spill] sm:$0xff] %v7816_v44  ;;  %v3838_v31 = vrot.slane %v3836_v4, 4  ;;  %v3841_v8 = vrot.slane %v3839_v27, 5  ;;  %v7820_v10 = vrot.slane %v3845_v3, 5  ;;  %v3851_v51 = vrot.slane %v3849_v50, 4 }
  0xf6   : > { %v7823_v25 = vld [vmem:[%s6721_s11 + $0xa0] sm:$0xf]  ;;  %v3862_v17 = vrot.slane %v3860_v52, 4  ;;  %v3865_v57 = vrot.slane %v3863_v53, 5  ;;  %v3887_v9 = vshll.u32 %v5488_v48, 16  ;;  %v3794_v26 = vor.u32 %v3793_v18, %v7781_v33 }
  0xf7   : > { %v3831_v27 = vshll.u32 %v7816_v44, 16  ;;  %v7835_v3 = vld [vmem:[%s6721_s11 + $0x98] sm:$0x1]  ;;  %v3893_v50 = vshll.u32 %v7823_v25, 16  ;;  %v3897_v52 = vshrl.u32 %v7823_v25, 16  ;;  %v3842_v22 = vor.u32 %v3841_v8, %v3838_v31 }
  0xf8   : > { %5997 = vmatmul.mubr.msk.bf16.gmra.mrb[28].mxu0 %vm688_vm3, %v6430_v61  ;;  %v7806_v61 = vrot.slane %v3797_v6, 5  ;;  %v3827_v6 = vrot.slane %v3825_v34, 4  ;;  %v3875_v34 = vrot.slane %v3873_v23, 4  ;;  %v3855_v33 = vshll.u32 %v7826_v2, 16 }
  0xf9   : > { %5845 = vmatmul.mubr.msk.bf16.gmra.mrb[12].mxu1 %vm688_vm3, %v8584_v7  ;;  %6002 = vmatprep.mubr.msk.bf16.mxu0 %vm688_vm3, %v7548_v20  ;;  %v3817_v7 = vrot.slane %v3815_v49, 5  ;;  %v7818_v20 = vrot.slane %v3821_v46, 5  ;;  %v3807_v49 = vshll.u32 %v7798_v45, 16  ;;  %v7830_v46 = vrot.slane %v3869_v63, 5 }
  0xfa   : > { %5848 = vmatprep.mubr.msk.bf16.mxu1 %vm688_vm3, %v8585_v62  ;;  %v3884_v62 = vshrl.u32 %v5488_v48, 16  ;;  %v3804_v4 = vor.u32 %v3803_v59, %v7806_v61  ;;  %v3852_v23 = vor.u32 %v3851_v51, %v7820_v10  ;;  %v3866_v59 = vor.u32 %v3865_v57, %v3862_v17  ;;  %v7868_v57 = vld [vmem:[%s6721_s11 + $0xa4] sm:$0x1] }
  0xfb   : > { %v3818_v53 = vor.u32 %v3817_v7, %v3814_v60  ;;  %v3828_v48 = vor.u32 %v3827_v6, %v7818_v20  ;;  %v3889_v18 = vrot.slane %v3887_v9, 5  ;;  %v8587_v44 = vcombine.low %v7495_v11, %v7499_v40 }
  0xfc   : > { %v3886_v63 = vrot.slane %v3884_v62, 4  ;;  %v8588_v31 = vrot.slane %v7757_v54, 5  ;;  %v3809_v51 = vrot.slane %v3807_v49, 5  ;;  %v3876_v60 = vor.u32 %v3875_v34, %v7830_v46  ;;  %v7871_v34 = vld [vmem:[%s6721_s11 + $0xac] sm:$0xf] }
  0xfd   : > { %v3879_v9 = vshll.u32 %v7835_v3, 16  ;;  %v8589_v11 = vcombine.low %v7567_v39, %v7571_v55  ;;  %v3795_v40 = vrot.slane %v3794_v26, 4  ;;  %v7864_v54 = vrot.slane %v3893_v50, 5 }
  0xfe   : > { %v3819_v7 = vrot.slane %v3818_v53, 4  ;;  %v3829_v6 = vrot.slane %v3828_v48, 4  ;;  %v3833_v8 = vrot.slane %v3831_v27, 5  ;;  %v3857_v17 = vrot.slane %v3855_v33, 5  ;;  %v7881_v48 = vld [vmem:[%s6721_s11 + $0xb0] sm:$0x1] }
  0xff   : > { %v3843_v39 = vrot.slane %v3842_v22, 4  ;;  %v3853_v55 = vrot.slane %v3852_v23, 4  ;;  %v3867_v62 = vrot.slane %v3866_v59, 4  ;;  %v3890_v49 = vor.u32 %v3889_v18, %v3886_v63 }
 0x100   : > { %6003 = vmatmul.mubr.msk.bf16.vlgmr.msra.gmra.mrb[0].mxu0 %vm688_vm3, %v7611_v16  ;;  %v7854_v16 = vsel %vm6973_vm7, %v7779_v28, %v8588_v31  ;;  %v3899_v28 = vrot.slane %v3897_v52, 4  ;;  %v3881_v26 = vrot.slane %v3879_v9, 5  ;;  %v3800_v52 = vsel %vm6747_vm4, %v3795_v40, %v7806_v61 }
 0x101   : > { %5849 = vmatmul.mubr.msk.bf16.gmra.mrb[16].mxu1 %vm688_vm3, %v8587_v44  ;;  %6035 = vmatpush3.bf16.msra.mxu0 %v7552_v14  ;;  %v3805_v14 = vrot.slane %v3804_v4, 4  ;;  %v5491_v44 = vld [vmem:[%s6721_s11 + $0xa8] sm:$0xf]  ;;  %v3903_v22 = vshll.u32 %v7868_v57, 16  ;;  %v3824_v33 = vsel %vm6747_vm4, %v3819_v7, %v7818_v20  ;;  %v3834_v23 = vsel %vm6747_vm4, %v3829_v6, %v3833_v8 }
 0x102   : > { %5852 = vmatprep.mubr.msk.bf16.mxu1 %vm688_vm3, %v8589_v11  ;;  %6006 = vmatprep.mubr.msk.bf16.mxu0 %vm688_vm3, %v7622_v29  ;;  %v3877_v29 = vrot.slane %v3876_v60, 4  ;;  %v3908_v4 = vshrl.u32 %v5491_v44, 16  ;;  %v3911_v50 = vshll.u32 %v5491_v44, 16  ;;  %v3900_v53 = vor.u32 %v3899_v28, %v7864_v54  ;;  %v5540_v11 = vld [vmem:[%s6721_s11 + $0x48] sm:$0xe] }
 0x103   : > { %v3810_v27 = vsel %vm6747_vm4, %v3805_v14, %v3809_v51  ;;  %v3917_v59 = vshll.u32 %v7871_v34, 16  ;;  %v3921_v61 = vshrl.u32 %v7871_v34, 16  ;;  %v3848_v63 = vsel %vm6747_vm4, %v3843_v39, %v7820_v10  ;;  %v7946_v39 = vld [vmem:[%s6721_s11 + $0xb8] sm:$0xf] }
 0x104   : > { %v3858_v18 = vsel %vm6747_vm4, %v3853_v55, %v3857_v17  ;;  %v3872_v20 = vsel %vm6747_vm4, %v3867_v62, %v7830_v46  ;;  %v3891_v31 = vrot.slane %v3890_v49, 4  ;;  %v8590_v51 = vcombine.low %v7584_v12, %v7599_v35 }
 0x105   : > { %v3910_v10 = vrot.slane %v3908_v4, 4  ;;  %v3913_v60 = vrot.slane %v3911_v50, 5  ;;  %v3927_v9 = vshll.u32 %v7881_v48, 16  ;;  %v8591_v46 = vcombine.low %v7669_v21, %v7694_v56  ;;  %v5494_v21 = vld [vmem:[%s6721_s11 + $0xb4] sm:$0xf] }
 0x106   : > { %v5161_v12 = vcombine.low %v7745_v42, %v7752_v47  ;;  %v8592_v35 = vsel %vm6747_vm4, %v7765_v5, %v7754_v41  ;;  %v3901_v14 = vrot.slane %v3900_v53, 4  ;;  %v3905_v28 = vrot.slane %v3903_v22, 5  ;;  %v5542_v4 = vld [vmem:[%s6721_s11 + $0x60] sm:$0xe]  ;;  %v5543_v53 = vld [vmem:[%s6721_s11 + $0x6c] sm:$0xe] }
 0x107   : > { %v5162_v56 = vcombine.low %v7769_v43, %v7854_v16  ;;  %v7929_v44 = vcombine.low %v3800_v52, %v3810_v27  ;;  %v7931_v42 = vrot.slane %v3917_v59, 5  ;;  %v3923_v47 = vrot.slane %v3921_v61, 4  ;;  %v8601_v16 = vld [vmem:[#allocation10_spill] sm:$0xff] }
 0x108   : > { %6007 = vmatmul.mubr.msk.bf16.gmra.mrb[4].mxu0 %vm688_vm3, %v7725_v37  ;;  %v3882_v37 = vsel %vm6747_vm4, %v3877_v29, %v3881_v26  ;;  %v7933_v41 = vcombine.low %v3824_v33, %v3834_v23  ;;  %v7935_v5 = vcombine.low %v3848_v63, %v3858_v18  ;;  %v3896_v6 = vsel %vm6747_vm4, %v3891_v31, %v7864_v54  ;;  %v8594_v23 = vld [vmem:[#allocation17_spill] sm:$0xff]  ;;  %v5497_v63 = vld [vmem:[%s6721_s11 + $0xc0] sm:$0xf]  ;;  %v8596_v18 = vld [vmem:[#allocation15_spill] sm:$0xff] }
 0x109   : > { %5853 = vmatmul.mubr.msk.bf16.gmra.mrb[20].mxu1 %vm688_vm3, %v8590_v51  ;;  %6010 = vmatprep.mubr.msk.bf16.mxu0 %vm688_vm3, %v7739_v58  ;;  %v8593_v58 = vsel %vm6747_vm4, %v7727_v19, %v7682_v1  ;;  %v7937_v7 = vcombine.low %v3872_v20, %v3882_v37  ;;  %v5556_v1 = vrot.slane %v5540_v11, 9  ;;  %v5541_v19 = vld [vmem:[%s6721_s11 + $0x54] sm:$0xe]  ;;  %v3914_v8 = vor.u32 %v3913_v60, %v3910_v10 }
 0x10a   : > { %5856 = vmatprep.mubr.msk.bf16.mxu1 %vm688_vm3, %v8591_v46  ;;  %v5510_v40 = vcombine.low %v8593_v58, %v8592_v35  ;;  %v7943_v17 = vrot.slane %v3927_v9, 5  ;;  %v3932_v55 = vshrl.u32 %v5494_v21, 16  ;;  %v3906_v62 = vsel %vm6747_vm4, %v3901_v14, %v3905_v28  ;;  %v8597_v31 = vld [vmem:[#allocation16_spill] sm:$0xff]  ;;  %v8598_v9 = vld [vmem:[#allocation18_spill] sm:$0xff]  ;;  %v7995_v35 = vld [vmem:[%s6721_s11 + $0xbc] sm:$0x1] }
 0x10b   : > { %v3935_v49 = vshll.u32 %v5494_v21, 16  ;;  %v4391_v29 = vrot.slane %v7577_v0, 5  ;;  %v4394_v26 = vrot.slane %v7631_v38, 5  ;;  %v3924_v50 = vor.u32 %v3923_v47, %v7931_v42  ;;  %v7998_v58 = vld [vmem:[%s6721_s11 + $0xc4] sm:$0xf] }
 0x10c   : > { %v5557_v52 = vrot.slane %v5541_v19, 9  ;;  %v4398_v54 = vrot.slane %v7588_v24, 5  ;;  %v4401_v27 = vrot.slane %v7640_v15, 5  ;;  %v3941_v22 = vshll.u32 %v7946_v39, 16  ;;  %v5544_v19 = vld [vmem:[%s6721_s11 + $0x78] sm:$0xe] }
 0x10d   : > { %v3945_v33 = vshrl.u32 %v7946_v39, 16  ;;  %v7963_v0 = vsel %vm6973_vm7, %v5556_v1, %v4391_v29  ;;  %v4393_v38 = vrot.slane %v4391_v29, 4  ;;  %v8595_v59 = vcombine.low %v7702_v36, %v8594_v23  ;;  %v8599_v23 = vld [vmem:[#allocation19_spill] sm:$0xff] }
 0x10e   : > { %v7970_v24 = vcombine.low %v3896_v6, %v3906_v62  ;;  %v7974_v15 = vsel %vm6973_vm7, %v5557_v52, %v4398_v54  ;;  %v5558_v61 = vrot.slane %v5542_v4, 9  ;;  %v4405_v20 = vrot.slane %v8596_v18, 5  ;;  %v6431_v6 = vld [vmem:[%s6721_s11 + $0xc] sm:$0xff]  }
 0x10f   : > { %v7980_v36 = vsel %vm6973_vm7, %v4393_v38, %v4394_v26  ;;  %v4408_v51 = vrot.slane %v8597_v31, 5  ;;  %v5559_v37 = vrot.slane %v5543_v53, 9  ;;  %v4412_v11 = vrot.slane %v8598_v9, 5 }
 0x110   : > { %6011 = vmatmul.mubr.msk.bf16.gmra.mrb[8].mxu0 %vm688_vm3, %v7748_v30  ;;  %v4400_v30 = vrot.slane %v4398_v54, 4  ;;  %v5573_v10 = vcombine.low %v7963_v0, %v7980_v36  ;;  %v4415_v46 = vrot.slane %v7798_v45, 5  ;;  %v8004_v14 = vsel %vm6973_vm7, %v5558_v61, %v4405_v20 }
 0x111   : > { %5857 = vmatmul.mubr.msk.bf16.gmra.mrb[24].mxu1 %vm688_vm3, %v8595_v59  ;;  %6014 = vmatprep.mubr.msk.bf16.mxu0 %vm688_vm3, %v5510_v40  ;;  %v4407_v28 = vrot.slane %v4405_v20, 4  ;;  %v8006_v21 = vrot.slane %v3932_v55, 4  ;;  %v3956_v47 = vshrl.u32 %v5497_v63, 16  ;;  %v8010_v45 = vsel %vm6973_vm7, %v5559_v37, %v4412_v11  ;;  %v5271_v55 = vld [vmem:[%s6721_s11 + $0x78] sm:$0xf]  ;;  %v8600_v59 = vld [vmem:[#allocation22_spill] sm:$0xff] }
 0x112   : > { %5860 = vmatprep.mubr.msk.bf16.mxu1 %vm688_vm3, %v5161_v12  ;;  %v7988_v60 = vsel %vm6973_vm7, %v4400_v30, %v4401_v27  ;;  %v7992_v12 = vrot.slane %v3914_v8, 4  ;;  %v4414_v1 = vrot.slane %v4412_v11, 4  ;;  %v8014_v8 = vrot.slane %v3924_v50, 4 }
 0x113   : > { %v5574_v40 = vcombine.low %v7974_v15, %v7988_v60  ;;  %v8016_v62 = vrot.slane %v3935_v49, 5  ;;  %v3959_v29 = vshll.u32 %v5497_v63, 16  ;;  %v8020_v26 = vsel %vm6973_vm7, %v4407_v28, %v4408_v51  ;;  %v8603_v28 = vld [vmem:[#allocation20_spill] sm:$0xff]  ;;  %v6494_v60 = vld [vmem:[%s6721_s11 + $0xa0] sm:$0xf] }
 0x114   : > { %v8023_v4 = vrot.slane %v3941_v22, 5  ;;  %v8025_v52 = vrot.slane %v3945_v33, 4  ;;  %v5575_v54 = vcombine.low %v8004_v14, %v8020_v26  ;;  %v8031_v27 = vsel %vm6973_vm7, %v4414_v1, %v4415_v46  ;;  %v5545_v33 = vld [vmem:[%s6721_s11 + $0x84] sm:$0xe]  ;;  %v6432_v1 = vld [vmem:[%s6721_s11 + $0x18] sm:$0xff]  }
 0x115   : > { %v3951_v49 = vshll.u32 %v7995_v35, 16  ;;  %v3965_v50 = vshll.u32 %v7998_v58, 16  ;;  %v5576_v53 = vcombine.low %v8010_v45, %v8031_v27  ;;  %v5560_v22 = vrot.slane %v5544_v19, 9  ;;  %v6498_v27 = vld [vmem:[%s6721_s11 + $0xac] sm:$0xf] }
 0x116   : > { %v3958_v38 = vrot.slane %v3956_v47, 4  ;;  %v4422_v30 = vrot.slane %v8600_v59, 5  ;;  %v2278_v61 = vshrl.u32 %v5271_v55, 16  ;;  %v3961_v63 = vrot.slane %v3959_v29, 5  ;;  %v5500_v29 = vld [vmem:[%s6721_s11 + $0xcc] sm:$0xf] }
 0x117   : > { %v3969_v18 = vshrl.u32 %v7998_v58, 16  ;;  %v2281_v43 = vshll.u32 %v5271_v55, 16  ;;  %v5561_v37 = vrot.slane %v5545_v33, 9  ;;  %v3920_v9 = vsel %vm6747_vm4, %v7992_v12, %v7931_v42  ;;  %v8074_v55 = vld [vmem:[%s6721_s11 + $0xd0] sm:$0xf] }
 0x118   : > { %6015 = vmatmul.mubr.msk.bf16.gmra.mrb[12].mxu0 %vm688_vm3, %v7929_v44  ;;  %v4419_v44 = vrot.slane %v8599_v23, 5  ;;  %v2280_v51 = vrot.slane %v2278_v61, 4  ;;  %v3938_v11 = vor.u32 %v8016_v62, %v8006_v21  ;;  %v4426_v47 = vrot.slane %v8603_v28, 5  ;;  %v6433_v21 = vld [vmem:[%s6721_s11 + $0x24] sm:$0xff]  }
 0x119   : > { %5861 = vmatmul.mubr.msk.bf16.gmra.mrb[28].mxu1 %vm688_vm3, %v5162_v56  ;;  %6018 = vmatprep.mubr.msk.bf16.mxu0 %vm688_vm3, %v7933_v41  ;;  %v8602_v56 = vld [vmem:[#allocation11_spill] sm:$0xff]  ;;  %v2283_v46 = vrot.slane %v2281_v43, 5  ;;  %v3930_v19 = vsel %vm6747_vm4, %v8014_v8, %v7943_v17  ;;  %v4429_v12 = vrot.slane %v7826_v2, 5  ;;  %v8082_v62 = vrot.slane %v3965_v50, 5  ;;  %v5546_v8 = vld [vmem:[%s6721_s11 + $0x90] sm:$0xe] }
 0x11a   : > { %5866 = vmatprep.mubr.msk.bf16.mxu1 %vm688_vm3, %v6431_v6  ;;  %v2300_v41 = vsel %vm6747_vm4, %v8602_v56, %v8601_v16  ;;  %v8056_v20 = vsel %vm6973_vm7, %v5560_v22, %v4419_v44  ;;  %v4421_v31 = vrot.slane %v4419_v44, 4  ;;  %v3948_v6 = vor.u32 %v8025_v52, %v8023_v4  ;;  %v8088_v52 = vld [vmem:[%s6721_s11 + $0xc8] sm:$0x1]  ;;  %v8605_v16 = vld [vmem:[#allocation8_spill] sm:$0xff] }
 0x11b   : > { %v3971_v22 = vrot.slane %v3969_v18, 4  ;;  %v2284_v17 = vor.u32 %v2283_v46, %v2280_v51  ;;  %v3953_v23 = vrot.slane %v3951_v49, 5  ;;  %v3962_v44 = vor.u32 %v3961_v63, %v3958_v38  ;;  %v8606_v51 = vld [vmem:[#allocation9_spill] sm:$0xff] }
 0x11c   : > { %v8078_v42 = vsel %vm6973_vm7, %v4421_v31, %v4422_v30  ;;  %v8092_v59 = vsel %vm6973_vm7, %v5561_v37, %v4426_v47  ;;  %v4428_v30 = vrot.slane %v4426_v47, 4  ;;  %v3980_v2 = vshrl.u32 %v5500_v29, 16 }
 0x11d   : > { %v5577_v33 = vcombine.low %v8056_v20, %v8078_v42  ;;  %v3983_v50 = vshll.u32 %v5500_v29, 16  ;;  %v3989_v61 = vshll.u32 %v8074_v55, 16  ;;  %v2285_v18 = vrot.slane %v2284_v17, 4  ;;  %v6434_v29 = vld [vmem:[%s6721_s11 + $0x30] sm:$0xff]  }
 0x11e   : > { %v3993_v49 = vshrl.u32 %v8074_v55, 16  ;;  %v8103_v38 = vsel %vm6973_vm7, %v4428_v30, %v4429_v12  ;;  %v5562_v63 = vrot.slane %v5546_v8, 9  ;;  %v3972_v56 = vor.u32 %v3971_v22, %v8082_v62 }
 0x11f   : > { %v3975_v31 = vshll.u32 %v8088_v52, 16  ;;  %v5578_v37 = vcombine.low %v8092_v59, %v8103_v38  ;;  %v5516_v46 = vcombine.low %v3920_v9, %v3930_v19  ;;  %v3939_v28 = vrot.slane %v3938_v11, 4  ;;  %v5547_v11 = vld [vmem:[%s6721_s11 + $0x9c] sm:$0xe] }
 0x120   : > { %6019 = vmatmul.mubr.msk.bf16.gmra.mrb[16].mxu0 %vm688_vm3, %v7935_v5  ;;  %v8604_v5 = vld [vmem:[#allocation21_spill] sm:$0xff]  ;;  %v3949_v47 = vrot.slane %v3948_v6, 4  ;;  %v3963_v12 = vrot.slane %v3962_v44, 4  ;;  %v4436_v8 = vrot.slane %v7835_v3, 5  ;;  %v3982_v30 = vrot.slane %v3980_v2, 4 }
 0x121   : > { %5867 = vmatmul.mubr.msk.bf16.vlgmr.msra.gmra.mrb[0].mxu1 %vm688_vm3, %v6432_v1  ;;  %6022 = vmatprep.mubr.msk.bf16.mxu0 %vm688_vm3, %v7937_v7  ;;  %v4433_v43 = vrot.slane %v8604_v5, 5  ;;  %v2290_v7 = vsel %vm6747_vm4, %v2285_v18, %v8606_v51  ;;  %v3985_v18 = vrot.slane %v3983_v50, 5  ;;  %v8126_v5 = vrot.slane %v3989_v61, 5  ;;  %v6435_v19 = vld [vmem:[%s6721_s11 + $0x3c] sm:$0xff]  }
 0x122   : > { %6069 = vmatpush3.bf16.msra.mxu1 %v8605_v16  ;;  %5870 = vmatprep.mubr.msk.bf16.mxu1 %vm688_vm3, %v6433_v21  ;;  %v8115_v1 = vcombine.low %v2290_v7, %v2300_v41  ;;  %v8119_v21 = vld [vmem:[%s6721_s11 + $0xd4] sm:$0x1]  ;;  %v3995_v9 = vrot.slane %v3993_v49, 4  ;;  %v3973_v41 = vrot.slane %v3972_v56, 4  ;;  %v3977_v6 = vrot.slane %v3975_v31, 5 }
 0x123   : > { %v8123_v22 = vsel %vm6973_vm7, %v5562_v63, %v4433_v43  ;;  %v4435_v17 = vrot.slane %v4433_v43, 4  ;;  %v3944_v63 = vsel %vm6747_vm4, %v3939_v28, %v8023_v4  ;;  %v3954_v2 = vsel %vm6747_vm4, %v3949_v47, %v3953_v23  ;;  %v6485_v16 = vld [vmem:[%s6721_s11 + $0x1c] sm:$0xf]  ;;  %v5548_v28 = vld [vmem:[%s6721_s11 + $0xa8] sm:$0xe] }
 0x124   : > { %v3999_v50 = vshll.u32 %v8119_v21, 16  ;;  %v5563_v61 = vrot.slane %v5547_v11, 9  ;;  %v4440_v49 = vrot.slane %v7823_v25, 5  ;;  %v3968_v4 = vsel %vm6747_vm4, %v3963_v12, %v8082_v62  ;;  %v5536_v62 = vld [vmem:[%s6721_s11 + $0x18] sm:$0xe]  ;;  %v6436_v47 = vld [vmem:[%s6721_s11 + $0x48] sm:$0xff]  }
 0x125   : > { %v8132_v44 = vsel %vm6973_vm7, %v4435_v17, %v4436_v8  ;;  %v3996_v43 = vor.u32 %v3995_v9, %v8126_v5  ;;  %v4443_v23 = vrot.slane %v7868_v57, 5  ;;  %v3978_v25 = vsel %vm6747_vm4, %v3973_v41, %v3977_v6  ;;  %v6486_v11 = vld [vmem:[%s6721_s11 + $0x20] sm:$0x1] }
 0x126   : > { %v5579_v3 = vcombine.low %v8123_v22, %v8132_v44  ;;  %v4363_v56 = vrot.slane %v6485_v16, 5  ;;  %v8158_v31 = vsel %vm6973_vm7, %v5563_v61, %v4440_v49  ;;  %v4442_v51 = vrot.slane %v4440_v49, 4  ;;  %v5549_v49 = vld [vmem:[%s6721_s11 + $0xb4] sm:$0xe] }
 0x127   : > { %v5517_v7 = vcombine.low %v3944_v63, %v3954_v2  ;;  %v3997_v17 = vrot.slane %v3996_v43, 4  ;;  %v5564_v41 = vrot.slane %v5548_v28, 9  ;;  %v4447_v6 = vrot.slane %v7871_v34, 5  ;;  %v5537_v2 = vld [vmem:[%s6721_s11 + $0x24] sm:$0xe] }
 0x128   : > { %6023 = vmatmul.mubr.msk.bf16.gmra.mrb[20].mxu0 %vm688_vm3, %v7970_v24  ;;  %v3986_v24 = vor.u32 %v3985_v18, %v3982_v30  ;;  %v8163_v57 = vsel %vm6973_vm7, %v4442_v51, %v4443_v23  ;;  %v6437_v30 = vld [vmem:[%s6721_s11 + $0x54] sm:$0xff]   ;;  %v5552_v18 = vrot.slane %v5536_v62, 9  ;;  %v4365_v9 = vrot.slane %v4363_v56, 4  ;;  %v6489_v28 = vld [vmem:[%s6721_s11 + $0x2c] sm:$0x1] }
 0x129   : > { %5871 = vmatmul.mubr.msk.bf16.gmra.mrb[4].mxu1 %vm688_vm3, %v6434_v29  ;;  %6026 = vmatprep.mubr.msk.bf16.mxu0 %vm688_vm3, %v5516_v46  ;;  %v4001_v46 = vrot.slane %v3999_v50, 5  ;;  %v5518_v29 = vcombine.low %v3968_v4, %v3978_v25  ;;  %v5580_v8 = vcombine.low %v8158_v31, %v8163_v57  ;;  %v4450_v63 = vrot.slane %v7881_v48, 5  ;;  %v6487_v50 = vld [vmem:[%s6721_s11 + $0x28] sm:$0xf]  ;;  %v5538_v25 = vld [vmem:[%s6721_s11 + $0x30] sm:$0xe] }
 0x12a   : > { %5874 = vmatprep.mubr.msk.bf16.mxu1 %vm688_vm3, %v6435_v19  ;;  %v3987_v12 = vrot.slane %v3986_v24, 4  ;;  %v4366_v19 = vrot.slane %v6486_v11, 5  ;;  %v4370_v61 = vrot.slane %v6487_v50, 5  ;;  %v8186_v48 = vsel %vm6973_vm7, %v5564_v41, %v4447_v6  ;;  %v6439_v11 = vld [vmem:[%s6721_s11 + $0x6c] sm:$0xff]   ;;  %v5550_v50 = vld [vmem:[%s6721_s11 + $0xc0] sm:$0xe] }
 0x12b   : > { %v4002_v34 = vsel %vm6747_vm4, %v3997_v17, %v4001_v46  ;;  %v4449_v24 = vrot.slane %v4447_v6, 4  ;;  %v4364_v43 = vsel %vm6973_vm7, %v5552_v18, %v4363_v56  ;;  %v5553_v51 = vrot.slane %v5537_v2, 9  ;;  %v8607_v41 = vld [vmem:[#allocation12_spill] sm:$0xff]  ;;  %v6503_v31 = vld [vmem:[%s6721_s11 + $0xc8] sm:$0x1] }
 0x12c   : > { %v3992_v4 = vsel %vm6747_vm4, %v3987_v12, %v8126_v5  ;;  %v4367_v23 = vsel %vm6973_vm7, %v4365_v9, %v4366_v19  ;;  %v6488_v5 = vld [vmem:[%s6721_s11 + $0x34] sm:$0xf]  ;;  %v6438_v12 = vld [vmem:[%s6721_s11 + $0x60] sm:$0xff]   ;;  %v5554_v18 = vrot.slane %v5538_v25, 9  ;;  %v4457_v9 = vrot.slane %v7995_v35, 5 }
 0x12d   : > { %v4377_v16 = vrot.slane %v6488_v5, 5  ;;  %v8197_v62 = vsel %vm6973_vm7, %v4449_v24, %v4450_v63  ;;  %v5519_v46 = vcombine.low %v3992_v4, %v4002_v34  ;;  %v5569_v17 = vcombine.low %v4364_v43, %v4367_v23  ;;  %v5539_v24 = vld [vmem:[%s6721_s11 + $0x3c] sm:$0xe] }
 0x12e   : > { %v5581_v56 = vcombine.low %v8186_v48, %v8197_v62  ;;  %v4380_v6 = vrot.slane %v8607_v41, 5  ;;  %v4371_v35 = vsel %vm6973_vm7, %v5553_v51, %v4370_v61  ;;  %v5566_v5 = vrot.slane %v5550_v50, 9 }
 0x12f   : > { %v4379_v19 = vrot.slane %v4377_v16, 4  ;;  %v4378_v23 = vsel %vm6973_vm7, %v5554_v18, %v4377_v16  ;;  %v4464_v51 = vrot.slane %v8088_v52, 5  ;;  %v2441_v57 = vshll.u32 %v6503_v31, 16 }
 0x130   : > { %6027 = vmatmul.mubr.msk.bf16.gmra.mrb[24].mxu0 %vm688_vm3, %v5517_v7  ;;  %v5565_v7 = vrot.slane %v5549_v49, 9 }
 0x131   : > { %5875 = vmatmul.mubr.msk.bf16.gmra.mrb[8].mxu1 %vm688_vm3, %v6436_v47  ;;  %6030 = vmatprep.mubr.msk.bf16.mxu0 %vm688_vm3, %v5518_v29  ;;  %v4373_v47 = vrot.slane %v6489_v28, 5  ;;  %v4454_v29 = vrot.slane %v7946_v39, 5  ;;  %v8608_v39 = vld [vmem:[#allocation13_spill] sm:$0xff]  ;;  %v4381_v25 = vsel %vm6973_vm7, %v4379_v19, %v4380_v6  ;;  %v5555_v28 = vrot.slane %v5539_v24, 9 }
 0x132   : > { %5878 = vmatprep.mubr.msk.bf16.mxu1 %vm688_vm3, %v6437_v30  ;;  %v4372_v30 = vrot.slane %v4370_v61, 4  ;;  %v4384_v49 = vrot.slane %v8608_v39, 5  ;;  %v4461_v61 = vrot.slane %v7998_v58, 5  ;;  %v6490_v39 = vld [vmem:[%s6721_s11 + $0x70] sm:$0xf]  ;;  %v4468_v24 = vrot.slane %v8074_v55, 5 }
 0x133   : > { %v8209_v63 = vsel %vm6973_vm7, %v5565_v7, %v4454_v29  ;;  %v4456_v2 = vrot.slane %v4454_v29, 4  ;;  %v5268_v7 = vld [vmem:[%s6721_s11 + $0x6c] sm:$0xf]  ;;  %v8609_v29 = vld [vmem:[#allocation14_spill] sm:$0xff] }
 0x134   : > { %v4374_v34 = vsel %vm6973_vm7, %v4372_v30, %v4373_v47  ;;  %v4386_v47 = vrot.slane %v4384_v49, 4  ;;  %v6440_v30 = vld [vmem:[%s6721_s11 + $0x78] sm:$0xff]   ;;  %v8240_v16 = vsel %vm6973_vm7, %v5566_v5, %v4461_v61  ;;  %v4463_v18 = vrot.slane %v4461_v61, 4 }
 0x135   : > { %v8216_v4 = vsel %vm6973_vm7, %v4456_v2, %v4457_v9  ;;  %v5571_v9 = vcombine.low %v4378_v23, %v4381_v25  ;;  %v2254_v19 = vshrl.u32 %v5268_v7, 16  ;;  %v2257_v41 = vshll.u32 %v5268_v7, 16 }
 0x136   : > { %v5582_v43 = vcombine.low %v8209_v63, %v8216_v4  ;;  %v8245_v58 = vsel %vm6973_vm7, %v4463_v18, %v4464_v51  ;;  %v4385_v6 = vsel %vm6973_vm7, %v5555_v28, %v4384_v49  ;;  %v4471_v49 = vrot.slane %v8119_v21, 5  ;;  %v6442_v51 = vld [vmem:[%s6721_s11 + $0x90] sm:$0xff]   ;;  %v6443_v21 = vld [vmem:[%s6721_s11 + $0x9c] sm:$0xff]  }
 0x137   : > { %v5583_v50 = vcombine.low %v8240_v16, %v8245_v58  ;;  %v2256_v23 = vrot.slane %v2254_v19, 4  ;;  %v2259_v25 = vrot.slane %v2257_v41, 5  ;;  %v4470_v7 = vrot.slane %v4468_v24, 4 }
 0x138   : > { %6031 = vmatmul.mubr.msk.bf16.gmra.mrb[28].mxu0 %vm688_vm3, %v5519_v46  ;;  %v5570_v46 = vcombine.low %v4371_v35, %v4374_v34  ;;  %v2263_v35 = vshll.u32 %v6490_v39, 16  ;;  %v2267_v34 = vshrl.u32 %v6490_v39, 16 }
 0x139   : > { %5879 = vmatmul.mubr.msk.bf16.gmra.mrb[12].mxu1 %vm688_vm3, %v6438_v12  ;;  %6036 = vmatprep.mubr.msk.bf16.mxu0 %vm688_vm3, %v5569_v17  ;;  %v4387_v12 = vrot.slane %v8609_v29, 5  ;;  %v5551_v17 = vld [vmem:[%s6721_s11 + $0xcc] sm:$0xe]  ;;  %v8267_v55 = vsel %vm6973_vm7, %v4470_v7, %v4471_v49 }
 0x13a   : > { %5882 = vmatprep.mubr.msk.bf16.mxu1 %vm688_vm3, %v6439_v11  ;;  %v6441_v11 = vld [vmem:[%s6721_s11 + $0x84] sm:$0xff]   ;;  %v5567_v52 = vrot.slane %v5551_v17, 9  ;;  %v2269_v28 = vrot.slane %v2267_v34, 4  ;;  %v6491_v17 = vld [vmem:[%s6721_s11 + $0x74] sm:$0x1] }
 0x13b   : > { %v4388_v2 = vsel %vm6973_vm7, %v4386_v47, %v4387_v12  ;;  %v5274_v47 = vld [vmem:[%s6721_s11 + $0x84] sm:$0xf]  ;;  %v2260_v12 = vor.u32 %v2259_v25, %v2256_v23  ;;  %v6445_v34 = vld [vmem:[%s6721_s11 + $0xb4] sm:$0xff]  }
 0x13c   : > { %v8262_v5 = vsel %vm6973_vm7, %v5567_v52, %v4468_v24  ;;  %v5572_v61 = vcombine.low %v4385_v6, %v4388_v2  ;;  %v2305_v18 = vshll.u32 %v5274_v47, 16  ;;  %v5277_v6 = vld [vmem:[%s6721_s11 + $0x90] sm:$0xf]  ;;  %v6444_v2 = vld [vmem:[%s6721_s11 + $0xa8] sm:$0xff]  }
 0x13d   : > { %v5584_v29 = vcombine.low %v8262_v5, %v8267_v55  ;;  %v2261_v52 = vrot.slane %v2260_v12, 4  ;;  %v2326_v23 = vshrl.u32 %v5277_v6, 16  ;;  %v2329_v25 = vshll.u32 %v5277_v6, 16 }
 0x13e   : > { %v2359_v12 = vshll.u32 %v6494_v60, 16 }
 0x13f   : > { %v2331_v14 = vrot.slane %v2329_v25, 5  ;;  %v6497_v25 = vld [vmem:[%s6721_s11 + $0xa4] sm:$0x1] }
 0x140   : > { %6037 = vmatmul.mubr.msk.bf16.vlgmr.msra.gmra.mrb[0].mxu0 %vm688_vm3, %v5570_v46  ;;  %v2265_v46 = vrot.slane %v2263_v35, 5  ;;  %v5280_v35 = vld [vmem:[%s6721_s11 + $0x9c] sm:$0xf]  ;;  %v8309_v6 = vrot.slane %v2359_v12, 5 }
 0x141   : > { %5883 = vmatmul.mubr.msk.bf16.gmra.mrb[16].mxu1 %vm688_vm3, %v6440_v30  ;;  %6040 = vmatprep.mubr.msk.bf16.mxu0 %vm688_vm3, %v5571_v9  ;;  %v2273_v30 = vshll.u32 %v6491_v17, 16  ;;  %v2302_v9 = vshrl.u32 %v5274_v47, 16  ;;  %v2353_v47 = vshll.u32 %v5280_v35, 16  ;;  %v6495_v17 = vld [vmem:[%s6721_s11 + $0x8c] sm:$0x1] }
 0x142   : > { %5886 = vmatprep.mubr.msk.bf16.mxu1 %vm688_vm3, %v6441_v11  ;;  %v2270_v13 = vor.u32 %v2269_v28, %v2265_v46  ;;  %v6492_v11 = vld [vmem:[%s6721_s11 + $0x88] sm:$0xf]  ;;  %v2266_v7 = vsel %vm6747_vm4, %v2261_v52, %v2265_v46 }
 0x143   : > { %v2311_v19 = vshll.u32 %v6492_v11, 16  ;;  %v2315_v41 = vshrl.u32 %v6492_v11, 16  ;;  %v2275_v0 = vrot.slane %v2273_v30, 5  ;;  %v2304_v36 = vrot.slane %v2302_v9, 4 }
 0x144   : > { %v2271_v39 = vrot.slane %v2270_v13, 4  ;;  %v2321_v30 = vshll.u32 %v6495_v17, 16  ;;  %v2328_v9 = vrot.slane %v2326_v23, 4  ;;  %v2355_v11 = vrot.slane %v2353_v47, 5 }
 0x145   : > { %v8286_v24 = vrot.slane %v2311_v19, 5  ;;  %v2317_v49 = vrot.slane %v2315_v41, 4  ;;  %v6446_v19 = vld [vmem:[%s6721_s11 + $0xc0] sm:$0xff]  }
 0x146   : > { %v2276_v46 = vsel %vm6747_vm4, %v2271_v39, %v2275_v0  ;;  %v5283_v39 = vld [vmem:[%s6721_s11 + $0xa8] sm:$0xf] }
 0x147   : > { %v2318_v13 = vor.u32 %v2317_v49, %v8286_v24  ;;  %v5301_v41 = vcombine.low %v2266_v7, %v2276_v46  ;;  %v2369_v7 = vshll.u32 %v6497_v25, 16  ;;  %v2377_v45 = vshll.u32 %v5283_v39, 16 }
 0x148   : > { %6041 = vmatmul.mubr.msk.bf16.gmra.mrb[4].mxu0 %vm688_vm3, %v5572_v61  ;;  %v6493_v61 = vld [vmem:[%s6721_s11 + $0x94] sm:$0xf] }
 0x149   : > { %5887 = vmatmul.mubr.msk.bf16.gmra.mrb[20].mxu1 %vm688_vm3, %v6442_v51  ;;  %6044 = vmatprep.mubr.msk.bf16.mxu0 %vm688_vm3, %v5573_v10  ;;  %v2307_v10 = vrot.slane %v2305_v18, 5  ;;  %v2335_v51 = vshll.u32 %v6493_v61, 16  ;;  %v2339_v28 = vshrl.u32 %v6493_v61, 16  ;;  %v2319_v0 = vrot.slane %v2318_v13, 4 }
 0x14a   : > { %5890 = vmatprep.mubr.msk.bf16.mxu1 %vm688_vm3, %v6443_v21  ;;  %v2350_v21 = vshrl.u32 %v5280_v35, 16  ;;  %v6496_v35 = vld [vmem:[%s6721_s11 + $0x98] sm:$0x1]  ;;  %v2374_v61 = vshrl.u32 %v5283_v39, 16  ;;  %v5289_v39 = vld [vmem:[%s6721_s11 + $0xc0] sm:$0xf] }
 0x14b   : > { %v2308_v15 = vor.u32 %v2307_v10, %v2304_v36  ;;  %v8306_v26 = vrot.slane %v2335_v51, 5  ;;  %v2323_v36 = vrot.slane %v2321_v30, 5  ;;  %v2332_v10 = vor.u32 %v2331_v14, %v2328_v9  ;;  %v5286_v51 = vld [vmem:[%s6721_s11 + $0xb4] sm:$0xf] }
 0x14c   : > { %v2352_v18 = vrot.slane %v2350_v21, 4  ;;  %v2387_v21 = vshrl.u32 %v6498_v27, 16  ;;  %v2398_v20 = vshrl.u32 %v5286_v51, 16  ;;  %v2401_v42 = vshll.u32 %v5286_v51, 16 }
 0x14d   : > { %v2309_v52 = vrot.slane %v2308_v15, 4  ;;  %v2324_v46 = vsel %vm6747_vm4, %v2319_v0, %v2323_v36  ;;  %v2333_v15 = vrot.slane %v2332_v10, 4  ;;  %v2371_v30 = vrot.slane %v2369_v7, 5 }
 0x14e   : > { %v2356_v23 = vor.u32 %v2355_v11, %v2352_v18  ;;  %v2376_v9 = vrot.slane %v2374_v61, 4  ;;  %v2389_v11 = vrot.slane %v2387_v21, 4  ;;  %v6502_v61 = vld [vmem:[%s6721_s11 + $0xbc] sm:$0x1] }
 0x14f   : > { %v2314_v47 = vsel %vm6747_vm4, %v2309_v52, %v8286_v24  ;;  %v2338_v0 = vsel %vm6747_vm4, %v2333_v15, %v8306_v26  ;;  %v2417_v22 = vshll.u32 %v6502_v61, 16 }
 0x150   : > { %6045 = vmatmul.mubr.msk.bf16.gmra.mrb[8].mxu0 %vm688_vm3, %v5574_v40  ;;  %v2363_v40 = vshrl.u32 %v6494_v60, 16  ;;  %v2357_v17 = vrot.slane %v2356_v23, 4  ;;  %v5303_v24 = vcombine.low %v2314_v47, %v2324_v46 }
 0x151   : > { %5891 = vmatmul.mubr.msk.bf16.gmra.mrb[24].mxu1 %vm688_vm3, %v6444_v2  ;;  %6048 = vmatprep.mubr.msk.bf16.mxu0 %vm688_vm3, %v5575_v54  ;;  %v2341_v54 = vrot.slane %v2339_v28, 4 }
 0x152   : > { %5894 = vmatprep.mubr.msk.bf16.mxu1 %vm688_vm3, %v6445_v34  ;;  %v2365_v2 = vrot.slane %v2363_v40, 4  ;;  %v2345_v34 = vshll.u32 %v6496_v35, 16  ;;  %v2362_v10 = vsel %vm6747_vm4, %v2357_v17, %v8309_v6  ;;  %v2443_v17 = vrot.slane %v2441_v57, 5 }
 0x153   : > { %v2342_v49 = vor.u32 %v2341_v54, %v8306_v26  ;;  %v2379_v54 = vrot.slane %v2377_v45, 5  ;;  %v6500_v26 = vld [vmem:[%s6721_s11 + $0xb0] sm:$0x1] }
 0x154   : > { %v2366_v28 = vor.u32 %v2365_v2, %v8309_v6  ;;  %v2347_v60 = vrot.slane %v2345_v34, 5  ;;  %v2393_v35 = vshll.u32 %v6500_v26, 16  ;;  %v2422_v34 = vshrl.u32 %v5289_v39, 16 }
 0x155   : > { %v2343_v13 = vrot.slane %v2342_v49, 4  ;;  %v2380_v38 = vor.u32 %v2379_v54, %v2376_v9  ;;  %v2425_v6 = vshll.u32 %v5289_v39, 16  ;;  %v6501_v49 = vld [vmem:[%s6721_s11 + $0xc4] sm:$0xf] }
 0x156   : > { %v2367_v14 = vrot.slane %v2366_v28, 4  ;;  %v2431_v23 = vshll.u32 %v6501_v49, 16  ;;  %v2435_v25 = vshrl.u32 %v6501_v49, 16  ;;  %v2395_v45 = vrot.slane %v2393_v35, 5 }
 0x157   : > { %v2348_v36 = vsel %vm6747_vm4, %v2343_v13, %v2347_v60  ;;  %v2381_v51 = vrot.slane %v2380_v38, 4  ;;  %v2419_v60 = vrot.slane %v2417_v22, 5 }
 0x158   : > { %6049 = vmatmul.mubr.msk.bf16.gmra.mrb[12].mxu0 %vm688_vm3, %v5576_v53  ;;  %v2383_v53 = vshll.u32 %v6498_v27, 16  ;;  %v2372_v59 = vsel %vm6747_vm4, %v2367_v14, %v2371_v30  ;;  %v5304_v44 = vcombine.low %v2338_v0, %v2348_v36  ;;  %v2424_v27 = vrot.slane %v2422_v34, 4 }
 0x159   : > { %5895 = vmatmul.mubr.msk.bf16.gmra.mrb[28].mxu1 %vm688_vm3, %v6446_v19  ;;  %6052 = vmatprep.mubr.msk.bf16.mxu0 %vm688_vm3, %v5577_v33  ;;  %v6499_v33 = vld [vmem:[%s6721_s11 + $0xb8] sm:$0xf]  ;;  %v2400_v19 = vrot.slane %v2398_v20, 4  ;;  %v2433_v21 = vrot.slane %v2431_v23, 5  ;;  %v2437_v47 = vrot.slane %v2435_v25, 4  ;;  %s8411_s11 = scalar_lea.vmem [#allocation2], %s5062_s10 }
 0x15a   : > { %5916 = vmatprep.mubr.msk.bf16.mxu1 %vm688_vm3, %v5301_v41  ;;  %v2407_v12 = vshll.u32 %v6499_v33, 16  ;;  %v2411_v40 = vshrl.u32 %v6499_v33, 16  ;;  %v2385_v18 = vrot.slane %v2383_v53, 5  ;;  %v2403_v41 = vrot.slane %v2401_v42, 5  ;;  %s4929_s19 = sshll.u32 %s8411_s11, 4  ;;  %s8454_s19 = int_to_ptr.vmem [resolvable:$true] %s4929_s19 }
 0x15b   : > { %v2427_v53 = vrot.slane %v2425_v6, 5  ;;  %s6504_s28 = scalar_lea.vmem %s8454_s19, 4096  ;;  %p6511_p1 = scmp.lt.s32.totalorder %s8454_s19, %s6509_s30 }
 0x15c   : > { %v2409_v52 = vrot.slane %v2407_v12, 5  ;;  %v2413_v2 = vrot.slane %v2411_v40, 4  ;;  %v2386_v20 = vsel %vm6747_vm4, %v2381_v51, %v2385_v18  ;;  %v2438_v12 = vor.u32 %v2437_v47, %v2433_v21  ;;  %p6505_p12 = scmp.ne.s32.totalorder %s8454_s19, %s6504_s28  ;;  %p6512_p2 = scmp.lt.s32.totalorder %s6510_s4, %s6504_s28 }
 0x15d   : > { %v2428_v33 = vor.u32 %v2427_v53, %v2424_v27 }
 0x15e   : > { %v2414_v7 = vor.u32 %v2413_v2, %v2409_v52  ;;  %v2439_v13 = vrot.slane %v2438_v12, 4  ;;  %p6506_p13 = pnand %p6505_p12, %p6680_p4  ;;  %p6513_p3 = por %p6512_p2, %p6511_p1 }
 0x15f   : > { %v2429_v40 = vrot.slane %v2428_v33, 4 }
 0x160   : > { %6053 = vmatmul.mubr.msk.bf16.gmra.mrb[16].mxu0 %vm688_vm3, %v5578_v37  ;;  %v2390_v37 = vor.u32 %v2389_v11, %v2385_v18  ;;  %v2415_v15 = vrot.slane %v2414_v7, 4  ;;  %v2444_v9 = vsel %vm6747_vm4, %v2439_v13, %v2443_v17  ;;  %p6507_p0 = pneg %p6506_p13 }
 0x161   : > { %5917 = vmatmul.mubr.msk.bf16.vlgmr.msra.gmra.mrb[16].mxu1 %vm688_vm3, %v8115_v1  ;;  %6056 = vmatprep.mubr.msk.bf16.mxu0 %vm688_vm3, %v5579_v3  ;;  %v2404_v1 = vor.u32 %v2403_v41, %v2400_v19  ;;  %v5305_v3 = vcombine.low %v2362_v10, %v2372_v59  ;;  %v2434_v30 = vsel %vm6747_vm4, %v2429_v40, %v2433_v21 }
 0x162   : > { %5920 = vmatprep.mubr.msk.bf16.mxu1 %vm688_vm3, %v5303_v24  ;;  %v2391_v28 = vrot.slane %v2390_v37, 4  ;;  %v2420_v48 = vsel %vm6747_vm4, %v2415_v15, %v2419_v60  ;;  %v5308_v14 = vcombine.low %v2434_v30, %v2444_v9  ;;  %p6514_p5 = pnand %p6513_p3, %p6507_p0 }
 0x163   : > { %v2405_v46 = vrot.slane %v2404_v1, 4 }
 0x164   : > { %v2396_v42 = vsel %vm6747_vm4, %v2391_v28, %v2395_v45 }
 0x165   : > { %v5306_v62 = vcombine.low %v2386_v20, %v2396_v42 }
 0x168   : > { %6057 = vmatmul.mubr.msk.bf16.gmra.mrb[20].mxu0 %vm688_vm3, %v5580_v8  ;;  %v2410_v8 = vsel %vm6747_vm4, %v2405_v46, %v2409_v52 }
 0x169   : > { %5921 = vmatmul.mubr.msk.bf16.gmra.mrb[20].mxu1 %vm688_vm3, %v5304_v44  ;;  %6060 = vmatprep.mubr.msk.bf16.mxu0 %vm688_vm3, %v5581_v56  ;;  %v5307_v56 = vcombine.low %v2410_v8, %v2420_v48 }
 0x16a   : > { %5924 = vmatprep.mubr.msk.bf16.mxu1 %vm688_vm3, %v5305_v3 }
 0x170   : > { %6061 = vmatmul.mubr.msk.bf16.gmra.mrb[24].mxu0 %vm688_vm3, %v5582_v43 }
 0x171   : > { %5925 = vmatmul.mubr.msk.bf16.gmra.mrb[24].mxu1 %vm688_vm3, %v5306_v62  ;;  %6064 = vmatprep.mubr.msk.bf16.mxu0 %vm688_vm3, %v5583_v50 }
 0x172   : > { %5928 = vmatprep.mubr.msk.bf16.mxu1 %vm688_vm3, %v5307_v56 }
 0x178   : > { %6065 = vmatmul.mubr.msk.bf16.gmra.mrb[28].mxu0 %vm688_vm3, %v5584_v29 }
 0x179   : > { %5929 = vmatmul.mubr.msk.bf16.gmra.mrb[28].mxu1 %vm688_vm3, %v5308_v14 }
 0x1f4   : > { %v5868_v63 = vpop.f32.mrb[0].mxu1 }
 0x1f5   : > { %v1854_v4 = vpop.f32.mrb[1].mxu1 }
 0x1f6   : > { %v5869_v43 = vpop.f32.mrb[2].mxu1 }
 0x1f7   : > { %v1857_v16 = vpop.f32.mrb[3].mxu1 }
 0x1fc   : > { %v5872_v58 = vpop.f32.mrb[4].mxu1 }
 0x1fd   : > { %v1870_v50 = vpop.f32.mrb[5].mxu1 }
 0x1fe   : > { %v5873_v54 = vpop.f32.mrb[6].mxu1 }
 0x1ff   : > { %v1873_v18 = vpop.f32.mrb[7].mxu1 }
 0x204   : > { %v5876_v11 = vpop.f32.mrb[8].mxu1 }
 0x205   : > { %v1886_v32 = vpop.f32.mrb[9].mxu1 }
 0x206   : > { %v5877_v24 = vpop.f32.mrb[10].mxu1 }
 0x207   : > { %v8397_v19 = vpop.f32.mrb[11].mxu1 }
 0x20c   : > { %v8399_v41 = vpop.f32.mrb[12].mxu1 }
 0x20d   : > { %v8401_v5 = vpop.f32.mrb[13].mxu1 }
 0x20e   : > { %v8406_v55 = vpop.f32.mrb[14].mxu1 }
 0x20f   : > { %v8408_v29 = vpop.f32.mrb[15].mxu1 }
 0x213   : > { %v6038_v52 = vpop.f32.mrb[0].mxu0 }
 0x214   : > { %v6070_v2 = vadd.f32 %v6038_v52, %v5868_v63  ;;  %v4608_v39 = vpop.f32.mrb[1].mxu0 }
 0x215   : > { %v6071_v0 = vadd.f32 %v4608_v39, %v1854_v4  ;;  %v6039_v36 = vpop.f32.mrb[2].mxu0 }
 0x216   : > { %4769 = vst [vmem:[%s8411_s11 + $0x10] sm:$0xff] %v6070_v2  ;;  %v6072_v10 = vadd.f32 %v6039_v36, %v5869_v43  ;;  %v4611_v59 = vpop.f32.mrb[3].mxu0  ;;  %v4838_v34 = vmul.f32 %v6070_v2, %v6070_v2 }
 0x217   : > { %4767 = vst [vmem:[%s8411_s11] sm:$0xff] %v6071_v0  ;;  %v6073_v38 = vadd.f32 %v4611_v59, %v1857_v16  ;;  %v4836_v37 = vmul.f32 %v6071_v0, %v6071_v0 }
 0x218   : > { %4770 = vst [vmem:[%s8411_s11 + $0x18] sm:$0xff] %v6072_v10  ;;  %v4839_v7 = vmul.f32 %v6072_v10, %v6072_v10 }
 0x219   : > { %4768 = vst [vmem:[%s8411_s11 + $0x8] sm:$0xff] %v6073_v38  ;;  %v4799_v26 = vadd.f32 %v6073_v38, %v6071_v0  ;;  %v4837_v35 = vmul.f32 %v6073_v38, %v6073_v38 }
 0x21b   : > { %v4800_v6 = vadd.f32 %v6070_v2, %v4799_v26  ;;  %v4868_v49 = vadd.f32 %v4837_v35, %v4836_v37  ;;  %v6042_v23 = vpop.f32.mrb[4].mxu0 }
 0x21c   : > { %v6074_v25 = vadd.f32 %v6042_v23, %v5872_v58  ;;  %v4624_v1 = vpop.f32.mrb[5].mxu0 }
 0x21d   : > { %v4869_v61 = vadd.f32 %v4868_v49, %v4838_v34  ;;  %v6075_v22 = vadd.f32 %v4624_v1, %v1870_v50  ;;  %v4801_v44 = vadd.f32 %v6072_v10, %v4800_v6  ;;  %v6043_v3 = vpop.f32.mrb[6].mxu0 }
 0x21e   : > { %4773 = vst [vmem:[%s8411_s11 + $0x30] sm:$0xff] %v6074_v25  ;;  %v6076_v51 = vadd.f32 %v6043_v3, %v5873_v54  ;;  %v4627_v28 = vpop.f32.mrb[7].mxu0  ;;  %v4842_v60 = vmul.f32 %v6074_v25, %v6074_v25 }
 0x21f   : > { %4771 = vst [vmem:[%s8411_s11 + $0x20] sm:$0xff] %v6075_v22  ;;  %v4802_v45 = vadd.f32 %v6075_v22, %v4801_v44  ;;  %v4840_v27 = vmul.f32 %v6075_v22, %v6075_v22  ;;  %v4870_v53 = vadd.f32 %v4869_v61, %v4839_v7  ;;  %v6077_v21 = vadd.f32 %v4627_v28, %v1873_v18 }
 0x220   : > { %4774 = vst [vmem:[%s8411_s11 + $0x38] sm:$0xff] %v6076_v51  ;;  %v4843_v57 = vmul.f32 %v6076_v51, %v6076_v51 }
 0x221   : > { %v4871_v47 = vadd.f32 %v4870_v53, %v4840_v27  ;;  %4772 = vst [vmem:[%s8411_s11 + $0x28] sm:$0xff] %v6077_v21  ;;  %v4803_v46 = vadd.f32 %v6077_v21, %v4802_v45  ;;  %v4841_v15 = vmul.f32 %v6077_v21, %v6077_v21 }
 0x223   : > { %v4804_v20 = vadd.f32 %v6074_v25, %v4803_v46  ;;  %v4872_v42 = vadd.f32 %v4871_v47, %v4841_v15  ;;  %v6046_v33 = vpop.f32.mrb[8].mxu0 }
 0x224   : > { %v6078_v12 = vadd.f32 %v6046_v33, %v5876_v11  ;;  %v4640_v31 = vpop.f32.mrb[9].mxu0 }
 0x225   : > { %v4873_v8 = vadd.f32 %v4872_v42, %v4842_v60  ;;  %v6079_v48 = vadd.f32 %v4640_v31, %v1886_v32  ;;  %v4805_v62 = vadd.f32 %v6076_v51, %v4804_v20  ;;  %v6047_v56 = vpop.f32.mrb[10].mxu0 }
 0x226   : > { %4777 = vst [vmem:[%s8411_s11 + $0x50] sm:$0xff] %v6078_v12  ;;  %v6080_v40 = vadd.f32 %v6047_v56, %v5877_v24  ;;  %v4643_v13 = vpop.f32.mrb[11].mxu0  ;;  %v4846_v16 = vmul.f32 %v6078_v12, %v6078_v12 }
 0x227   : > { %4775 = vst [vmem:[%s8411_s11 + $0x40] sm:$0xff] %v6079_v48  ;;  %v4806_v17 = vadd.f32 %v6079_v48, %v4805_v62  ;;  %v4844_v30 = vmul.f32 %v6079_v48, %v6079_v48  ;;  %v4874_v9 = vadd.f32 %v4873_v8, %v4843_v57  ;;  %v6081_v14 = vadd.f32 %v4643_v13, %v8397_v19 }
 0x228   : > { %4778 = vst [vmem:[%s8411_s11 + $0x58] sm:$0xff] %v6080_v40  ;;  %v4847_v32 = vmul.f32 %v6080_v40, %v6080_v40 }
 0x229   : > { %v4875_v63 = vadd.f32 %v4874_v9, %v4844_v30  ;;  %4776 = vst [vmem:[%s8411_s11 + $0x48] sm:$0xff] %v6081_v14  ;;  %v4807_v4 = vadd.f32 %v6081_v14, %v4806_v17  ;;  %v4845_v43 = vmul.f32 %v6081_v14, %v6081_v14 }
 0x22b   : > { %v4808_v58 = vadd.f32 %v6078_v12, %v4807_v4  ;;  %v4876_v50 = vadd.f32 %v4875_v63, %v4845_v43  ;;  %v6050_v54 = vpop.f32.mrb[12].mxu0 }
 0x22c   : > { %v6082_v18 = vadd.f32 %v6050_v54, %v8399_v41  ;;  %v4656_v11 = vpop.f32.mrb[13].mxu0 }
 0x22d   : > { %v4877_v24 = vadd.f32 %v4876_v50, %v4846_v16  ;;  %v6083_v19 = vadd.f32 %v4656_v11, %v8401_v5  ;;  %v4809_v52 = vadd.f32 %v6080_v40, %v4808_v58  ;;  %v6051_v2 = vpop.f32.mrb[14].mxu0 }
 0x22e   : > { %4781 = vst [vmem:[%s8411_s11 + $0x70] sm:$0xff] %v6082_v18  ;;  %v6084_v39 = vadd.f32 %v6051_v2, %v8406_v55  ;;  %v4659_v0 = vpop.f32.mrb[15].mxu0  ;;  %v4850_v35 = vmul.f32 %v6082_v18, %v6082_v18 }
 0x22f   : > { %4779 = vst [vmem:[%s8411_s11 + $0x60] sm:$0xff] %v6083_v19  ;;  %v4810_v36 = vadd.f32 %v6083_v19, %v4809_v52  ;;  %v4848_v10 = vmul.f32 %v6083_v19, %v6083_v19  ;;  %v4878_v59 = vadd.f32 %v4877_v24, %v4847_v32  ;;  %v6085_v38 = vadd.f32 %v4659_v0, %v8408_v29 }
 0x230   : > { %4782 = vst [vmem:[%s8411_s11 + $0x78] sm:$0xff] %v6084_v39  ;;  %v4851_v23 = vmul.f32 %v6084_v39, %v6084_v39 }
 0x231   : > { %v4879_v41 = vadd.f32 %v4878_v59, %v4848_v10  ;;  %4780 = vst [vmem:[%s8411_s11 + $0x68] sm:$0xff] %v6085_v38  ;;  %v4811_v37 = vadd.f32 %v6085_v38, %v4810_v36  ;;  %v4849_v26 = vmul.f32 %v6085_v38, %v6085_v38 }
 0x233   : > { %v4812_v5 = vadd.f32 %v6082_v18, %v4811_v37  ;;  %v4880_v34 = vadd.f32 %v4879_v41, %v4849_v26  ;;  %v6054_v6 = vpop.f32.mrb[16].mxu0 }
 0x234   : > { %v5918_v49 = vpop.f32.mrb[16].mxu1  ;;  %v4672_v55 = vpop.f32.mrb[17].mxu0 }
 0x235   : > { %v4881_v25 = vadd.f32 %v4880_v34, %v4850_v35  ;;  %v6086_v1 = vadd.f32 %v6054_v6, %v5918_v49  ;;  %v2644_v7 = vpop.f32.mrb[17].mxu1  ;;  %v4813_v29 = vadd.f32 %v6084_v39, %v4812_v5  ;;  %v6055_v61 = vpop.f32.mrb[18].mxu0 }
 0x236   : > { %v6087_v22 = vadd.f32 %v4672_v55, %v2644_v7  ;;  %v5919_v44 = vpop.f32.mrb[18].mxu1  ;;  %v4675_v3 = vpop.f32.mrb[19].mxu0 }
 0x237   : > { %4785 = vst [vmem:[%s8411_s11 + $0x90] sm:$0xff] %v6086_v1  ;;  %v4882_v51 = vadd.f32 %v4881_v25, %v4851_v23  ;;  %v6088_v28 = vadd.f32 %v6055_v61, %v5919_v44  ;;  %v2647_v45 = vpop.f32.mrb[19].mxu1  ;;  %v4854_v20 = vmul.f32 %v6086_v1, %v6086_v1 }
 0x238   : > { %4783 = vst [vmem:[%s8411_s11 + $0x80] sm:$0xff] %v6087_v22  ;;  %v4814_v27 = vadd.f32 %v6087_v22, %v4813_v29  ;;  %v4852_v53 = vmul.f32 %v6087_v22, %v6087_v22  ;;  %v6089_v21 = vadd.f32 %v4675_v3, %v2647_v45 }
 0x239   : > { %4786 = vst [vmem:[%s8411_s11 + $0x98] sm:$0xff] %v6088_v28  ;;  %v4855_v62 = vmul.f32 %v6088_v28, %v6088_v28 }
 0x23a   : > { %v4883_v47 = vadd.f32 %v4882_v51, %v4852_v53  ;;  %4784 = vst [vmem:[%s8411_s11 + $0x88] sm:$0xff] %v6089_v21  ;;  %v4815_v46 = vadd.f32 %v6089_v21, %v4814_v27  ;;  %v4853_v15 = vmul.f32 %v6089_v21, %v6089_v21 }
 0x23b   : > { %v6058_v60 = vpop.f32.mrb[20].mxu0 }
 0x23c   : > { %v4816_v42 = vadd.f32 %v6086_v1, %v4815_v46  ;;  %v4884_v33 = vadd.f32 %v4883_v47, %v4853_v15  ;;  %v5922_v12 = vpop.f32.mrb[20].mxu1  ;;  %v4688_v31 = vpop.f32.mrb[21].mxu0 }
 0x23d   : > { %v6090_v57 = vadd.f32 %v6058_v60, %v5922_v12  ;;  %v2660_v8 = vpop.f32.mrb[21].mxu1  ;;  %v6059_v48 = vpop.f32.mrb[22].mxu0 }
 0x23e   : > { %v4885_v56 = vadd.f32 %v4884_v33, %v4854_v20  ;;  %v6091_v40 = vadd.f32 %v4688_v31, %v2660_v8  ;;  %v4817_v13 = vadd.f32 %v6088_v28, %v4816_v42  ;;  %v5923_v17 = vpop.f32.mrb[22].mxu1  ;;  %v4691_v30 = vpop.f32.mrb[23].mxu0 }
 0x23f   : > { %4789 = vst [vmem:[%s8411_s11 + $0xb0] sm:$0xff] %v6090_v57  ;;  %v6092_v9 = vadd.f32 %v6059_v48, %v5923_v17  ;;  %v2663_v14 = vpop.f32.mrb[23].mxu1  ;;  %v4858_v11 = vmul.f32 %v6090_v57, %v6090_v57 }
 0x240   : > { %4787 = vst [vmem:[%s8411_s11 + $0xa0] sm:$0xff] %v6091_v40  ;;  %v4818_v63 = vadd.f32 %v6091_v40, %v4817_v13  ;;  %v4856_v4 = vmul.f32 %v6091_v40, %v6091_v40  ;;  %v4886_v43 = vadd.f32 %v4885_v56, %v4855_v62  ;;  %v6093_v16 = vadd.f32 %v4691_v30, %v2663_v14 }
 0x241   : > { %4790 = vst [vmem:[%s8411_s11 + $0xb8] sm:$0xff] %v6092_v9  ;;  %v4859_v36 = vmul.f32 %v6092_v9, %v6092_v9 }
 0x242   : > { %v4887_v58 = vadd.f32 %v4886_v43, %v4856_v4  ;;  %4788 = vst [vmem:[%s8411_s11 + $0xa8] sm:$0xff] %v6093_v16  ;;  %v4819_v50 = vadd.f32 %v6093_v16, %v4818_v63  ;;  %v4857_v54 = vmul.f32 %v6093_v16, %v6093_v16 }
 0x243   : > { %v6062_v18 = vpop.f32.mrb[24].mxu0 }
 0x244   : > { %v4820_v32 = vadd.f32 %v6090_v57, %v4819_v50  ;;  %v4888_v24 = vadd.f32 %v4887_v58, %v4857_v54  ;;  %v5926_v19 = vpop.f32.mrb[24].mxu1  ;;  %v4704_v52 = vpop.f32.mrb[25].mxu0 }
 0x245   : > { %v6094_v2 = vadd.f32 %v6062_v18, %v5926_v19  ;;  %v2676_v39 = vpop.f32.mrb[25].mxu1  ;;  %v6063_v0 = vpop.f32.mrb[26].mxu0 }
 0x246   : > { %v4889_v10 = vadd.f32 %v4888_v24, %v4858_v11  ;;  %v6095_v59 = vadd.f32 %v4704_v52, %v2676_v39  ;;  %v4821_v38 = vadd.f32 %v6092_v9, %v4820_v32  ;;  %v5927_v41 = vpop.f32.mrb[26].mxu1  ;;  %v4707_v37 = vpop.f32.mrb[27].mxu0 }
 0x247   : > { %4793 = vst [vmem:[%s8411_s11 + $0xd0] sm:$0xff] %v6094_v2  ;;  %v6096_v26 = vadd.f32 %v6063_v0, %v5927_v41  ;;  %v2679_v35 = vpop.f32.mrb[27].mxu1  ;;  %v4862_v7 = vmul.f32 %v6094_v2, %v6094_v2 }
 0x248   : > { %4791 = vst [vmem:[%s8411_s11 + $0xc0] sm:$0xff] %v6095_v59  ;;  %v4822_v5 = vadd.f32 %v6095_v59, %v4821_v38  ;;  %v4860_v34 = vmul.f32 %v6095_v59, %v6095_v59  ;;  %v4890_v6 = vadd.f32 %v4889_v10, %v4859_v36  ;;  %v6097_v49 = vadd.f32 %v4707_v37, %v2679_v35 }
 0x249   : > { %4794 = vst [vmem:[%s8411_s11 + $0xd8] sm:$0xff] %v6096_v26  ;;  %v4863_v45 = vmul.f32 %v6096_v26, %v6096_v26 }
 0x24a   : > { %v4891_v55 = vadd.f32 %v4890_v6, %v4860_v34  ;;  %4792 = vst [vmem:[%s8411_s11 + $0xc8] sm:$0xff] %v6097_v49  ;;  %v4823_v23 = vadd.f32 %v6097_v49, %v4822_v5  ;;  %v4861_v25 = vmul.f32 %v6097_v49, %v6097_v49 }
 0x24b   : > { %v6066_v1 = vpop.f32.mrb[28].mxu0 }
 0x24c   : > { %v4824_v29 = vadd.f32 %v6094_v2, %v4823_v23  ;;  %v4892_v61 = vadd.f32 %v4891_v55, %v4861_v25  ;;  %v5930_v22 = vpop.f32.mrb[28].mxu1  ;;  %v4720_v44 = vpop.f32.mrb[29].mxu0 }
 0x24d   : > { %v6098_v3 = vadd.f32 %v6066_v1, %v5930_v22  ;;  %v2692_v51 = vpop.f32.mrb[29].mxu1  ;;  %v6067_v28 = vpop.f32.mrb[30].mxu0 }
 0x24e   : > { %v4893_v27 = vadd.f32 %v4892_v61, %v4862_v7  ;;  %v6099_v53 = vadd.f32 %v4720_v44, %v2692_v51  ;;  %v4825_v21 = vadd.f32 %v6096_v26, %v4824_v29  ;;  %v5931_v47 = vpop.f32.mrb[30].mxu1  ;;  %v4723_v46 = vpop.f32.mrb[31].mxu0 }
 0x24f   : > { %4797 = vst [vmem:[%s8411_s11 + $0xf0] sm:$0xff] %v6098_v3  ;;  %v6100_v15 = vadd.f32 %v6067_v28, %v5931_v47  ;;  %v2695_v60 = vpop.f32.mrb[31].mxu1 }
 0x250   : > { %4795 = vst [vmem:[%s8411_s11 + $0xe0] sm:$0xff] %v6099_v53  ;;  %v4826_v20 = vadd.f32 %v6099_v53, %v4825_v21  ;;  %v4864_v42 = vmul.f32 %v6099_v53, %v6099_v53  ;;  %v4894_v33 = vadd.f32 %v4893_v27, %v4863_v45  ;;  %v6101_v12 = vadd.f32 %v4723_v46, %v2695_v60 }
 0x251   : > { %4798 = vst [vmem:[%s8411_s11 + $0xf8] sm:$0xff] %v6100_v15 }
 0x252   : > { %v4895_v31 = vadd.f32 %v4894_v33, %v4864_v42  ;;  %4796 = vst [vmem:[%s8411_s11 + $0xe8] sm:$0xff] %v6101_v12  ;;  %v4827_v57 = vadd.f32 %v6101_v12, %v4826_v20  ;;  %v4865_v8 = vmul.f32 %v6101_v12, %v6101_v12 }
 0x253   : > { %6517 = shalt.err (!%p6514_p5)
}
 0x254   : > { %s6518_s5 = scalar_lea.hbm %s8452_s26, 4096  ;;  %s6522_s8 = scalar_lea.hbm %s8539_s2, 8192 }
 0x255   : > { %p6519_p6 = scmp.ne.s32.totalorder %s8452_s26, %s6518_s5  ;;  %p6523_p10 = scmp.lt.u32.totalorder %s8452_s26, %s8539_s2 }
 0x256   : > { %p6524_p11 = scmp.lt.u32.totalorder %s6522_s8, %s6518_s5  ;;  %p6526_p13 = scmp.lt.u32.totalorder %s6518_s5, %s8452_s26 }
 0x257   : > { %p6520_p7 = pnand %p6519_p6, %p6680_p4 }
 0x258   : > { %p6525_p12 = por %p6524_p11, %p6523_p10 }
 0x259   : > { %p6521_p9 = pneg %p6520_p7 }
 0x25a   : > { %p6527_p0 = por %p6526_p13, %p6525_p12 }
 0x25c   : > { %p6528_p1 = pnand %p6527_p0, %p6521_p9 }
 0x25e   : > { %6531 = shalt.err (!%p6528_p1)
}
 0x25f   : > { %s6617_s18 = smov 128   ;;  %s6618_s21 = smov 8   ;;  %v4866_v48 = vmul.f32 %v6098_v3, %v6098_v3  ;;  %v4828_v62 = vadd.f32 %v6098_v3, %v4827_v57  ;;  %v4896_v56 = vadd.f32 %v4895_v31, %v4865_v8  ;;  %v4867_v40 = vmul.f32 %v6100_v15, %v6100_v15 }
 0x260   : > { %6337 = dma.vmem_to_hbm [thread:$0]  (%p6680_p4), %s8454_s19, 4096, %s8452_s26, %s4910_s27, %s6617_s18, %s6617_s18, %s6618_s21   ;;  %vm4905_vm8 = vcmask 1040384  }
 0x261   : > { %v4829_v13 = vadd.f32 %v6100_v15, %v4828_v62  ;;  %v4897_v17 = vadd.f32 %v4896_v56, %v4866_v48  ;;  %s5063_s23 = sshll.u32 %s8404_s9, 3  ;;  %s5605_s19 = sshll.u32 %s6606_s15, 7 }
 0x262   : > { %s190_s26 = scalar_lea.vmem [#allocation4], %s5063_s23  ;;  %s8488_s30 = scalar_lea.hbm %s8540_s3, %s5605_s19 }
 0x263   : > { %v4830_v30 = vrot.slane %v4829_v13, 4  ;;  %v4898_v9 = vadd.f32 %v4897_v17, %v4867_v40  ;;  %s4946_s27 = sshll.u32 %s190_s26, 4  ;;  %s4915_s4 = scalar_lea.sflag [#allocation5], %s8404_s9  ;;  %s8490_s27 = int_to_ptr.vmem [resolvable:$true] %s4946_s27 }
 0x264   : > { %s6532_s15 = scalar_lea.vmem %s8490_s27, 128  ;;  %s6619_s5 = smov [#allocation4]  }
 0x265   : > { %v4831_v14 = vadd.f32 %v4830_v30, %v4829_v13  ;;  %v4899_v63 = vrot.slane %v4898_v9, 4  ;;  %p6533_p2 = scmp.ne.s32.totalorder %s8490_s27, %s6532_s15  ;;  %s6536_s6 = sshll.u32 %s6619_s5, 4  ;;  %s6537_s6 = int_to_ptr.vmem [resolvable:$false] %s6536_s6 }
 0x266   : > { %s6538_s7 = scalar_lea.vmem %s6537_s6, 256  ;;  %p6539_p6 = scmp.lt.s32.totalorder %s8490_s27, %s6537_s6 }
 0x267   : > { %v4832_v4 = vrot.slane %v4831_v14, 2  ;;  %v4900_v43 = vadd.f32 %v4899_v63, %v4898_v9  ;;  %p6534_p3 = pnand %p6533_p2, %p6680_p4  ;;  %p6540_p7 = scmp.lt.s32.totalorder %s6538_s7, %s6532_s15 }
 0x269   : > { %v4833_v16 = vadd.f32 %v4832_v4, %v4831_v14  ;;  %v4901_v58 = vrot.slane %v4900_v43, 2  ;;  %p6535_p5 = pneg %p6534_p3  ;;  %p6541_p9 = por %p6540_p7, %p6539_p6 }
 0x26b   : > { %v4834_v50 = vrot.slane %v4833_v16, 1  ;;  %v4902_v54 = vadd.f32 %v4901_v58, %v4900_v43  ;;  %p6542_p10 = pnand %p6541_p9, %p6535_p5 }
 0x26d   : > { %v4903_v18 = vrot.slane %v4902_v54, 1  ;;  %v4835_v11 = vadd.f32 %v4834_v50, %v4833_v16 }
 0x26f   : > { %v4904_v32 = vadd.f32 %v4903_v18, %v4902_v54 }
 0x271   : > { %v4906_v24 = vsel %vm4905_vm8, %v4835_v11, %v4904_v32 }
 0x272   : > { %v4907_v19 = vsel %vm737_vm0, %v4906_v24, 0.0 }
 0x273   : > { %4908 = vst [vmem:[%s190_s26] sm:$0xff] %v4907_v19 }
 0x274   : > { %6545 = shalt.err (!%p6542_p10)
}
 0x275   : > { %s6546_s9 = scalar_lea.hbm %s8488_s30, 128  ;;  %s6550_s11 = scalar_lea.hbm %s8540_s3, 256 }
 0x276   : > { %p6547_p11 = scmp.ne.s32.totalorder %s8488_s30, %s6546_s9  ;;  %p6551_p0 = scmp.lt.u32.totalorder %s8488_s30, %s8540_s3 }
 0x277   : > { %p6552_p1 = scmp.lt.u32.totalorder %s6550_s11, %s6546_s9  ;;  %p6554_p3 = scmp.lt.u32.totalorder %s6546_s9, %s8488_s30 }
 0x278   : > { %p6548_p12 = pnand %p6547_p11, %p6680_p4 }
 0x279   : > { %p6553_p2 = por %p6552_p1, %p6551_p0 }
 0x27a   : > { %p6549_p13 = pneg %p6548_p12 }
 0x27b   : > { %p6555_p5 = por %p6554_p3, %p6553_p2 }
 0x27d   : > { %p6556_p6 = pnand %p6555_p5, %p6549_p13 }
 0x27f   : > { %6559 = shalt.err (!%p6556_p6)
}
 0x280   : > { %6338 = dma.vmem_to_hbm [thread:$0]  (%p6680_p4), %s8490_s27, 128, %s8488_s30, %s4915_s4  }
 0x281 PF: > { %p6348_p7 = scmp.ge.s32.totalorder %s6614_s17, 2  ;;  %s4958_s23 = sand.u32 1, %s6594_s12  }
 0x282   : > { %s4959_s19 = scalar_lea.sflag [#allocation3], %s4958_s23 }
 0x283   : > { %p6342_p9 = pnand %p6348_p7, %p6687_p8 }
 0x285   : > { %6585 = dma.done.wait (!%p6342_p9), %s4959_s19, 4096  }
 0x286   : > { %6587 = vsyncadd (!%p6342_p9), %s4959_s19, 4294963200  ;;  %s4968_s26 = scalar_lea.sflag [#allocation5], %s4958_s23 }
 0x287   : > { %6589 = dma.done.wait (!%p6342_p9), %s4968_s26, 128  }
 0x288   : > { %6591 = vsyncadd (!%p6342_p9), %s4968_s26, 4294967168  ;;  %s20_s17 = sadd.s32 1, %s6614_s17   ;;  %s8610_s12 = smov %s6598_s13 }
 0x289   : > { %p17_p10 = scmp.ge.s32.totalorder %s20_s17, 4   ;;  %s8611_s13 = smov %s6602_s14 }
 0x28a   : > { %s8612_s14 = smov %s6693_s25  ;;  %s8613_s15 = smov %s6610_s16 }
 0x28b   : > { %s8614_s16 = smov %s8616_s20  ;;  %19 = sbr.rel (!%p17_p10) target bundleno = 6 (0x6), region = 91 }
 0x292   :  { %4973 = vsyncpa [#allocation3], 1 }
 0x293   :  { %4975 = vsyncpa [#allocation3 + $0x1], 1 }
 0x294   :  { %4976 = vsyncpa [#allocation5], 1 }
 0x295   :  { %4978 = vsyncpa [#allocation5 + $0x1], 1 }

</bundles_post_ra>
